<compile_context>
chip_gen: v6e
topology: v6e:2x2x1
jax: 0.10.0
libtpu: 0.0.40
codegen_flags: <defaults>
</compile_context>

<pallas_src>
import math

import jax
import jax.numpy as jnp
from jax.experimental import pallas as pl
from jax.experimental.pallas import tpu as pltpu

# ---------------- config ----------------
B = 2
IMG = 32
C_IN = 3
PATCH = 16
N_PATCH = (IMG // PATCH) ** 2          # 4
SEQ = N_PATCH + 1                      # 5 (cls + patches)
SEQ_PAD = 8                            # padded token axis (full sublanes)
D = 32                                 # embed dim
HEADS = 4
HEAD_DIM = D // HEADS                  # 8
DEPTH = 2
MLP_HIDDEN = 4 * D                     # 128
NUM_CLASSES = 200
NUM_CLASSES_PAD = 256                  # lane-dense head output, sliced back in wrapper
FEAT_PAD = 128                         # lane-dense cls-feature slot in the output slab
OUT_W = NUM_CLASSES_PAD + FEAT_PAD     # 384
LN_EPS = 1e-6
CPP = C_IN * PATCH * PATCH             # 768 (im2col feature dim)


# ---------------- in-kernel helpers (pure value math) ----------------

def _erf(x):
    # Abramowitz & Stegun 7.1.26, |abs err| < 1.5e-7 (below f32 ulp for GELU).
    pp = 0.3275911
    a1, a2, a3, a4, a5 = (0.254829592, -0.284496736, 1.421413741,
                          -1.453152027, 1.061405429)
    ax = jnp.abs(x)
    t = 1.0 / (1.0 + pp * ax)
    poly = ((((a5 * t + a4) * t + a3) * t + a2) * t + a1) * t
    y = 1.0 - poly * jnp.exp(-ax * ax)
    return jnp.where(x >= 0, y, -y)


def _gelu(x):
    return 0.5 * x * (1.0 + _erf(x * (1.0 / math.sqrt(2.0))))


def _layernorm(x, g, b):
    mu = jnp.mean(x, axis=-1, keepdims=True)
    xc = x - mu
    var = jnp.mean(xc * xc, axis=-1, keepdims=True)
    return xc * jax.lax.rsqrt(var + LN_EPS) * g + b


# ---------------- fused kernel (one grid step == `ipb` images) ----------------
# Weight slabs:
#   patch_w  : (CPP, D)
#   attn_w   : (DEPTH, 2D, 3D)  rows 0:D = qkv_w (q scaled), rows D:2D lanes 0:D = proj_w
#   mlp_w    : (DEPTH, 2D, MLP) rows 0:D = fc1_w, rows D:2D = fc2_w^T
#   vecs     : (DEPTH, 8, 128)  rows: ln1_g, ln1_b, ln2_g, ln2_b, qkv_b, proj_b, fc1_b, fc2_b
#   head     : (48, 256)        rows 0:32 head_w, 32 head_b, 33 norm_g, 34 norm_b,
#                               40:48 embed_add (cls_token/pos_embed/conv-bias, padded rows zero)

def _make_kernel(ipb):
    def kernel(patches_ref, patch_w_ref, attn_w_ref, mlp_w_ref, vecs_ref, head_ref,
               out_ref):
        f32 = jnp.float32

        # patch embed (im2col matmul) + cls token + positional embedding
        emb = head_ref[40:48, 0:D]                                        # (8, D)
        emb_full = jnp.concatenate([emb] * ipb, axis=0) if ipb > 1 else emb
        xs = jnp.dot(patches_ref[0], patch_w_ref[...],
                     preferred_element_type=f32) + emb_full               # (rows, D)

        # additive mask for padded key columns (tokens SEQ..SEQ_PAD-1)
        col = jax.lax.broadcasted_iota(jnp.int32, (1, SEQ_PAD), 1)
        key_mask = jnp.where(col < SEQ, 0.0, -1e30).astype(f32)

        for d in range(DEPTH):
            ln1_g = vecs_ref[d, 0:1, 0:D]
            ln1_b = vecs_ref[d, 1:2, 0:D]
            ln2_g = vecs_ref[d, 2:3, 0:D]
            ln2_b = vecs_ref[d, 3:4, 0:D]
            qkv_b = vecs_ref[d, 4:5, 0:3 * D]
            proj_b = vecs_ref[d, 5:6, 0:D]
            fc1_b = vecs_ref[d, 6:7, 0:MLP_HIDDEN]
            fc2_b = vecs_ref[d, 7:8, 0:D]
            qkv_w = attn_w_ref[d, 0:D, :]                                 # (D, 3D)
            proj_w = attn_w_ref[d, D:2 * D, 0:D]                          # (D, D)
            fc1_w = mlp_w_ref[d, 0:D, :]                                  # (D, MLP)
            fc2_wt = mlp_w_ref[d, D:2 * D, :]                             # (D, MLP) = fc2^T

            # ---- multi-head self-attention (fused qkv + fused proj)
            h = _layernorm(xs, ln1_g, ln1_b)
            qkv = jnp.dot(h, qkv_w, preferred_element_type=f32) + qkv_b   # (rows, 3D)
            o_imgs = []
            for img in range(ipb):
                r0 = img * SEQ_PAD
                heads = []
                for hh in range(HEADS):
                    c = hh * HEAD_DIM
                    q = qkv[r0:r0 + SEQ_PAD, c:c + HEAD_DIM]
                    k = qkv[r0:r0 + SEQ_PAD, D + c:D + c + HEAD_DIM]
                    v = qkv[r0:r0 + SEQ_PAD, 2 * D + c:2 * D + c + HEAD_DIM]
                    s = jax.lax.dot_general(q, k, (((1,), (1,)), ((), ())),
                                            preferred_element_type=f32)   # (8, 8)
                    s = s + key_mask
                    m = jnp.max(s, axis=-1, keepdims=True)
                    p = jnp.exp(s - m)
                    p = p * pl.reciprocal(jnp.sum(p, axis=-1, keepdims=True),
                                          approx=True)
                    heads.append(jnp.dot(p, v, preferred_element_type=f32))
                o_imgs.append(jnp.concatenate(heads, axis=-1))            # (8, D)
            o_all = jnp.concatenate(o_imgs, axis=0) if ipb > 1 else o_imgs[0]
            xs = xs + jnp.dot(o_all, proj_w, preferred_element_type=f32) + proj_b

            # ---- MLP branch with in-kernel erf-GELU (fc2 applied via transposed weights)
            h = _layernorm(xs, ln2_g, ln2_b)
            h = jnp.dot(h, fc1_w, preferred_element_type=f32) + fc1_b     # (rows, MLP)
            h = _gelu(h)
            h = jax.lax.dot_general(h, fc2_wt, (((1,), (1,)), ((), ())),
                                    preferred_element_type=f32) + fc2_b   # (rows, D)
            xs = xs + h

        # ---- final norm + head, cls row(s) only
        if ipb > 1:
            cls = jnp.concatenate(
                [xs[i * SEQ_PAD:i * SEQ_PAD + 1] for i in range(ipb)], axis=0)
        else:
            cls = xs[0:1]
        norm_g = head_ref[33:34, 0:D]
        norm_b = head_ref[34:35, 0:D]
        cls_n = _layernorm(cls, norm_g, norm_b)                           # (ipb, D)
        head_w = head_ref[0:D, :]                                         # (D, 256)
        head_b = head_ref[32:33, :]                                       # (1, 256)
        logits = jnp.dot(cls_n, head_w, preferred_element_type=f32) + head_b
        pad = jnp.zeros((ipb, OUT_W - NUM_CLASSES_PAD - D), f32)
        out_ref[0] = jnp.concatenate([logits, cls_n, pad], axis=-1)       # (ipb, 384)

    return kernel


# ---------------- parameter init (deterministic, synthetic, kernel-ready layout) ----------------

def _normal(key, shape, std=0.02):
    return std * jax.random.normal(key, shape, dtype=jnp.float32)


def init_params(key):
    ks = iter(jax.random.split(key, 4 + DEPTH * 4))
    scale = HEAD_DIM ** -0.5

    patch_w = _normal(next(ks), (CPP, D))                 # conv stored pre-transposed
    patch_b = jnp.zeros((D,), jnp.float32)
    cls_token = _normal(next(ks), (1, D))
    pos_embed = _normal(next(ks), (SEQ, D))

    # cls token + pos embed + conv bias folded into one additive term; padded rows zero.
    embed_add = jnp.zeros((SEQ_PAD, D), jnp.float32)
    embed_add = embed_add.at[0].set(cls_token[0] + pos_embed[0])
    embed_add = embed_add.at[1:SEQ].set(patch_b[None, :] + pos_embed[1:])

    head_w = _normal(next(ks), (D, NUM_CLASSES))
    head_w = jnp.pad(head_w, ((0, 0), (0, NUM_CLASSES_PAD - NUM_CLASSES)))
    head_b = jnp.zeros((NUM_CLASSES_PAD,), jnp.float32)

    head_slab = jnp.zeros((48, NUM_CLASSES_PAD), jnp.float32)
    head_slab = head_slab.at[0:D, :].set(head_w)
    head_slab = head_slab.at[32, :].set(head_b)
    head_slab = head_slab.at[33, 0:D].set(jnp.ones((D,), jnp.float32))    # norm gamma
    head_slab = head_slab.at[34, 0:D].set(jnp.zeros((D,), jnp.float32))   # norm beta
    head_slab = head_slab.at[40:48, 0:D].set(embed_add)

    attn_w, mlp_w, vecs = [], [], []
    for _ in range(DEPTH):
        qkv_w = _normal(next(ks), (D, 3 * D))
        qkv_w = qkv_w.at[:, 0:D].multiply(scale)          # attn scale folded into q weights
        qkv_b = jnp.zeros((3 * D,), jnp.float32)
        qkv_b = qkv_b.at[0:D].multiply(scale)             # ...and q bias (zero here, kept safe)
        proj_w = _normal(next(ks), (D, D))
        fc1_w = _normal(next(ks), (D, MLP_HIDDEN))
        fc2_w = _normal(next(ks), (MLP_HIDDEN, D))

        a = jnp.zeros((2 * D, 3 * D), jnp.float32)
        a = a.at[0:D, :].set(qkv_w)
        a = a.at[D:2 * D, 0:D].set(proj_w)
        attn_w.append(a)

        m = jnp.zeros((2 * D, MLP_HIDDEN), jnp.float32)
        m = m.at[0:D, :].set(fc1_w)
        m = m.at[D:2 * D, :].set(fc2_w.T)
        mlp_w.append(m)

        v = jnp.zeros((8, 128), jnp.float32)
        v = v.at[0, 0:D].set(jnp.ones((D,), jnp.float32))         # ln1_g
        v = v.at[1, 0:D].set(jnp.zeros((D,), jnp.float32))        # ln1_b
        v = v.at[2, 0:D].set(jnp.ones((D,), jnp.float32))         # ln2_g
        v = v.at[3, 0:D].set(jnp.zeros((D,), jnp.float32))        # ln2_b
        v = v.at[4, 0:3 * D].set(qkv_b)                           # qkv_b
        v = v.at[5, 0:D].set(jnp.zeros((D,), jnp.float32))        # proj_b
        v = v.at[6, 0:MLP_HIDDEN].set(jnp.zeros((MLP_HIDDEN,), jnp.float32))  # fc1_b
        v = v.at[7, 0:D].set(jnp.zeros((D,), jnp.float32))        # fc2_b
        vecs.append(v)

    return {
        "patch_w": patch_w,
        "attn_w": jnp.stack(attn_w),      # (DEPTH, 64, 96)
        "mlp_w": jnp.stack(mlp_w),        # (DEPTH, 64, 128)
        "vecs": jnp.stack(vecs),          # (DEPTH, 8, 128)
        "head_slab": head_slab,           # (48, 256)
    }


# ---------------- generation-aware batch handling ----------------

def _default_images_per_block():
    # v7x has 2 TensorCores per chip: keep one image per grid step so the "parallel"
    # batch axis shards across cores.  Single-TC v5e/v6e: fold the whole batch into
    # one grid step (no extra pipeline step, doubled MXU sublane occupancy).
    try:
        kind = jax.devices()[0].device_kind.lower()
    except Exception:
        return B
    if "v7" in kind or "7x" in kind:
        return 1
    return B


# ---------------- forward pass (CustomViT.forward semantics) ----------------

def vit_forward(params, x):
    # x: NCHW (B, C, H, W) float32, exactly like the PyTorch Conv2d patch embed.
    Bx, Cx, Hx, Wx = x.shape
    nh, nw = Hx // PATCH, Wx // PATCH
    n = nh * nw
    assert n == N_PATCH and Cx == C_IN

    ipb = _default_images_per_block()
    if Bx % ipb != 0:
        ipb = 1
    nb = Bx // ipb
    rows = ipb * SEQ_PAD

    # im2col for the 16x16/stride-16 conv; row 0 per image = cls slot (all-zero),
    # rows SEQ..7 = token padding (all-zero, keys masked in-kernel).
    p = x.reshape(Bx, Cx, nh, PATCH, nw, PATCH)
    p = p.transpose(0, 2, 4, 1, 3, 5).reshape(Bx, n, CPP)
    p = jnp.pad(p, ((0, 0), (1, SEQ_PAD - SEQ), (0, 0)))          # (B, SEQ_PAD, CPP)
    p = p.reshape(nb, rows, CPP)

    weights = (params["patch_w"], params["attn_w"], params["mlp_w"],
               params["vecs"], params["head_slab"])

    def _rep(arr):
        zeros = (0,) * arr.ndim
        return pl.BlockSpec(arr.shape, lambda b, z=zeros: z)      # whole-array block

    in_specs = [pl.BlockSpec((1, rows, CPP), lambda b: (b, 0, 0))]
    in_specs += [_rep(w) for w in weights]

    out = pl.pallas_call(
        _make_kernel(ipb),
        grid=(nb,),
        out_shape=jax.ShapeDtypeStruct((nb, ipb, OUT_W), jnp.float32),
        in_specs=in_specs,
        out_specs=pl.BlockSpec((1, ipb, OUT_W), lambda b: (b, 0, 0)),
        compiler_params=pltpu.CompilerParams(dimension_semantics=("parallel",)),
    )(p, *weights)

    out = out.reshape(Bx, OUT_W)
    # CustomViT.forward: cls_token = forward_features(x)[:, 0]; output = head(cls_token)
    output = out[:, :NUM_CLASSES]                                  # (B, 200)
    cls_token = out[:, NUM_CLASSES_PAD:NUM_CLASSES_PAD + D]        # (B, D)
    return output, cls_token


if __name__ == "__main__":
    key = jax.random.PRNGKey(0)
    pkey, xkey = jax.random.split(key)
    params = init_params(pkey)
    x = jax.random.normal(xkey, (B, C_IN, IMG, IMG), dtype=jnp.float32)

    fwd = jax.jit(vit_forward)
    output, cls_token = fwd(params, x)
    jax.block_until_ready((output, cls_token))

    assert output.shape == (B, NUM_CLASSES)
    assert cls_token.shape == (B, D)
    assert bool(jnp.all(jnp.isfinite(output)))
    assert bool(jnp.all(jnp.isfinite(cls_token)))
    print("KERNEL_OK")
</pallas_src>

<mosaic_0001>
module attributes {stable_mosaic.version = 11 : i64} {
  func.func @kernel(%arg0: i32, %arg1: memref<1x16x768xf32, #tpu.memory_space<vmem>>, %arg2: memref<768x32xf32, #tpu.memory_space<vmem>>, %arg3: memref<2x64x96xf32, #tpu.memory_space<vmem>>, %arg4: memref<2x64x128xf32, #tpu.memory_space<vmem>>, %arg5: memref<2x8x128xf32, #tpu.memory_space<vmem>>, %arg6: memref<48x256xf32, #tpu.memory_space<vmem>>, %arg7: memref<1x2x384xf32, #tpu.memory_space<vmem>>) attributes {dimension_semantics = [#tpu.dimension_semantics<parallel>], iteration_bounds = array<i64: 1>, scalar_prefetch = 0 : i64, scratch_operands = 0 : i64, tpu.core_type = #tpu.core_type<tc>, window_params = [{transform_indices = @transform_0, window_bounds = array<i64: 1, 16, 768>}, {pipeline_mode = #tpu.pipeline_mode<synchronous>, transform_indices = @transform_1, window_bounds = array<i64: 768, 32>}, {pipeline_mode = #tpu.pipeline_mode<synchronous>, transform_indices = @transform_2, window_bounds = array<i64: 2, 64, 96>}, {pipeline_mode = #tpu.pipeline_mode<synchronous>, transform_indices = @transform_3, window_bounds = array<i64: 2, 64, 128>}, {pipeline_mode = #tpu.pipeline_mode<synchronous>, transform_indices = @transform_4, window_bounds = array<i64: 2, 8, 128>}, {pipeline_mode = #tpu.pipeline_mode<synchronous>, transform_indices = @transform_5, window_bounds = array<i64: 48, 256>}, {transform_indices = @transform_6, window_bounds = array<i64: 1, 2, 384>}]} {
    %c40 = arith.constant 40 : index
    %c0 = arith.constant 0 : index
    %0 = vector.load %arg6[%c40, %c0] : memref<48x256xf32, #tpu.memory_space<vmem>>, vector<8x32xf32>
    %1 = tpu.concatenate %0, %0 in 0 : vector<8x32xf32>, vector<8x32xf32> -> vector<16x32xf32>
    %c0_0 = arith.constant 0 : index
    %c0_1 = arith.constant 0 : index
    %c0_2 = arith.constant 0 : index
    %2 = vector.load %arg1[%c0_0, %c0_1, %c0_2] : memref<1x16x768xf32, #tpu.memory_space<vmem>>, vector<1x16x768xf32>
    %3 = vector.shape_cast %2 : vector<1x16x768xf32> to vector<16x768xf32>
    %c0_3 = arith.constant 0 : index
    %c0_4 = arith.constant 0 : index
    %4 = vector.load %arg2[%c0_3, %c0_4] : memref<768x32xf32, #tpu.memory_space<vmem>>, vector<768x32xf32>
    %cst = arith.constant dense<0.000000e+00> : vector<16x32xf32>
    %5 = tpu.matmul %3, %4, %cst {dimension_numbers = #tpu.dot_dimension_numbers<[1], [0], [0], [1], [0, 0, 1, 1], [], []>} : vector<16x768xf32>, vector<768x32xf32>, vector<16x32xf32> -> vector<16x32xf32>
    %6 = arith.addf %5, %1 : vector<16x32xf32>
    %7 = tpu.iota {dimensions = array<i32: 1>} : vector<1x8xi32>
    %c5_i32 = arith.constant 5 : i32
    %8 = vector.broadcast %c5_i32 : i32 to vector<1x8xi32>
    %9 = arith.cmpi slt, %7, %8 : vector<1x8xi32>
    %cst_5 = arith.constant 0.000000e+00 : f32
    %cst_6 = arith.constant -1.000000e+30 : f32
    %10 = vector.broadcast %cst_5 : f32 to vector<1x8xf32>
    %11 = vector.broadcast %cst_6 : f32 to vector<1x8xf32>
    %12 = arith.select %9, %10, %11 : vector<1x8xi1>, vector<1x8xf32>
    %c0_7 = arith.constant 0 : index
    %c0_8 = arith.constant 0 : index
    %c0_9 = arith.constant 0 : index
    %13 = vector.load %arg5[%c0_7, %c0_8, %c0_9] : memref<2x8x128xf32, #tpu.memory_space<vmem>>, vector<1x1x32xf32>
    %14 = vector.shape_cast %13 : vector<1x1x32xf32> to vector<1x32xf32>
    %c0_10 = arith.constant 0 : index
    %c1 = arith.constant 1 : index
    %c0_11 = arith.constant 0 : index
    %15 = vector.load %arg5[%c0_10, %c1, %c0_11] : memref<2x8x128xf32, #tpu.memory_space<vmem>>, vector<1x1x32xf32>
    %16 = vector.shape_cast %15 : vector<1x1x32xf32> to vector<1x32xf32>
    %c0_12 = arith.constant 0 : index
    %c2 = arith.constant 2 : index
    %c0_13 = arith.constant 0 : index
    %17 = vector.load %arg5[%c0_12, %c2, %c0_13] : memref<2x8x128xf32, #tpu.memory_space<vmem>>, vector<1x1x32xf32>
    %18 = vector.shape_cast %17 : vector<1x1x32xf32> to vector<1x32xf32>
    %c0_14 = arith.constant 0 : index
    %c3 = arith.constant 3 : index
    %c0_15 = arith.constant 0 : index
    %19 = vector.load %arg5[%c0_14, %c3, %c0_15] : memref<2x8x128xf32, #tpu.memory_space<vmem>>, vector<1x1x32xf32>
    %20 = vector.shape_cast %19 : vector<1x1x32xf32> to vector<1x32xf32>
    %c0_16 = arith.constant 0 : index
    %c4 = arith.constant 4 : index
    %c0_17 = arith.constant 0 : index
    %21 = vector.load %arg5[%c0_16, %c4, %c0_17] : memref<2x8x128xf32, #tpu.memory_space<vmem>>, vector<1x1x96xf32>
    %22 = vector.shape_cast %21 : vector<1x1x96xf32> to vector<1x96xf32>
    %c0_18 = arith.constant 0 : index
    %c5 = arith.constant 5 : index
    %c0_19 = arith.constant 0 : index
    %23 = vector.load %arg5[%c0_18, %c5, %c0_19] : memref<2x8x128xf32, #tpu.memory_space<vmem>>, vector<1x1x32xf32>
    %24 = vector.shape_cast %23 : vector<1x1x32xf32> to vector<1x32xf32>
    %c0_20 = arith.constant 0 : index
    %c6 = arith.constant 6 : index
    %c0_21 = arith.constant 0 : index
    %25 = vector.load %arg5[%c0_20, %c6, %c0_21] : memref<2x8x128xf32, #tpu.memory_space<vmem>>, vector<1x1x128xf32>
    %26 = vector.shape_cast %25 : vector<1x1x128xf32> to vector<1x128xf32>
    %c0_22 = arith.constant 0 : index
    %c7 = arith.constant 7 : index
    %c0_23 = arith.constant 0 : index
    %27 = vector.load %arg5[%c0_22, %c7, %c0_23] : memref<2x8x128xf32, #tpu.memory_space<vmem>>, vector<1x1x32xf32>
    %28 = vector.shape_cast %27 : vector<1x1x32xf32> to vector<1x32xf32>
    %c0_24 = arith.constant 0 : index
    %c0_25 = arith.constant 0 : index
    %c0_26 = arith.constant 0 : index
    %29 = vector.load %arg3[%c0_24, %c0_25, %c0_26] : memref<2x64x96xf32, #tpu.memory_space<vmem>>, vector<1x32x96xf32>
    %30 = vector.shape_cast %29 : vector<1x32x96xf32> to vector<32x96xf32>
    %c0_27 = arith.constant 0 : index
    %c32 = arith.constant 32 : index
    %c0_28 = arith.constant 0 : index
    %31 = vector.load %arg3[%c0_27, %c32, %c0_28] : memref<2x64x96xf32, #tpu.memory_space<vmem>>, vector<1x32x32xf32>
    %32 = vector.shape_cast %31 : vector<1x32x32xf32> to vector<32x32xf32>
    %c0_29 = arith.constant 0 : index
    %c0_30 = arith.constant 0 : index
    %c0_31 = arith.constant 0 : index
    %33 = vector.load %arg4[%c0_29, %c0_30, %c0_31] : memref<2x64x128xf32, #tpu.memory_space<vmem>>, vector<1x32x128xf32>
    %34 = vector.shape_cast %33 : vector<1x32x128xf32> to vector<32x128xf32>
    %c0_32 = arith.constant 0 : index
    %c32_33 = arith.constant 32 : index
    %c0_34 = arith.constant 0 : index
    %35 = vector.load %arg4[%c0_32, %c32_33, %c0_34] : memref<2x64x128xf32, #tpu.memory_space<vmem>>, vector<1x32x128xf32>
    %36 = vector.shape_cast %35 : vector<1x32x128xf32> to vector<32x128xf32>
    %cst_35 = arith.constant dense<0.000000e+00> : vector<16xf32>
    %37 = vector.multi_reduction <add>, %6, %cst_35 [1] : vector<16x32xf32> to vector<16xf32>
    %38 = vector.shape_cast %37 : vector<16xf32> to vector<16x1xf32>
    %cst_36 = arith.constant 3.200000e+01 : f32
    %39 = vector.broadcast %cst_36 : f32 to vector<16x1xf32>
    %40 = arith.divf %38, %39 : vector<16x1xf32>
    %41 = vector.broadcast %40 : vector<16x1xf32> to vector<16x32xf32>
    %42 = arith.subf %6, %41 : vector<16x32xf32>
    %43 = arith.mulf %42, %42 : vector<16x32xf32>
    %cst_37 = arith.constant dense<0.000000e+00> : vector<16xf32>
    %44 = vector.multi_reduction <add>, %43, %cst_37 [1] : vector<16x32xf32> to vector<16xf32>
    %45 = vector.shape_cast %44 : vector<16xf32> to vector<16x1xf32>
    %cst_38 = arith.constant 3.200000e+01 : f32
    %46 = vector.broadcast %cst_38 : f32 to vector<16x1xf32>
    %47 = arith.divf %45, %46 : vector<16x1xf32>
    %cst_39 = arith.constant 9.99999997E-7 : f32
    %48 = vector.broadcast %cst_39 : f32 to vector<16x1xf32>
    %49 = arith.addf %47, %48 : vector<16x1xf32>
    %50 = math.rsqrt %49 : vector<16x1xf32>
    %51 = vector.broadcast %50 : vector<16x1xf32> to vector<16x32xf32>
    %52 = arith.mulf %42, %51 : vector<16x32xf32>
    %53 = vector.broadcast %14 : vector<1x32xf32> to vector<16x32xf32>
    %54 = arith.mulf %52, %53 : vector<16x32xf32>
    %55 = vector.broadcast %16 : vector<1x32xf32> to vector<16x32xf32>
    %56 = arith.addf %54, %55 : vector<16x32xf32>
    %cst_40 = arith.constant dense<0.000000e+00> : vector<16x96xf32>
    %57 = tpu.matmul %56, %30, %cst_40 {dimension_numbers = #tpu.dot_dimension_numbers<[1], [0], [0], [1], [0, 0, 1, 1], [], []>} : vector<16x32xf32>, vector<32x96xf32>, vector<16x96xf32> -> vector<16x96xf32>
    %58 = vector.broadcast %22 : vector<1x96xf32> to vector<16x96xf32>
    %59 = arith.addf %57, %58 : vector<16x96xf32>
    %60 = vector.extract_strided_slice %59 {offsets = [0, 0], sizes = [8, 8], strides = [1, 1]} : vector<16x96xf32> to vector<8x8xf32>
    %61 = vector.extract_strided_slice %59 {offsets = [0, 32], sizes = [8, 8], strides = [1, 1]} : vector<16x96xf32> to vector<8x8xf32>
    %62 = vector.extract_strided_slice %59 {offsets = [0, 64], sizes = [8, 8], strides = [1, 1]} : vector<16x96xf32> to vector<8x8xf32>
    %cst_41 = arith.constant dense<0.000000e+00> : vector<8x8xf32>
    %63 = tpu.matmul %60, %61, %cst_41 {dimension_numbers = #tpu.dot_dimension_numbers<[1], [1], [0], [0], [0, 0, 1, 0], [], []>} : vector<8x8xf32>, vector<8x8xf32>, vector<8x8xf32> -> vector<8x8xf32>
    %64 = vector.broadcast %12 : vector<1x8xf32> to vector<8x8xf32>
    %65 = arith.addf %63, %64 : vector<8x8xf32>
    %cst_42 = arith.constant dense<0xFF800000> : vector<8xf32>
    %66 = vector.multi_reduction <maximumf>, %65, %cst_42 [1] : vector<8x8xf32> to vector<8xf32>
    %67 = vector.shape_cast %66 : vector<8xf32> to vector<8x1xf32>
    %68 = vector.broadcast %67 : vector<8x1xf32> to vector<8x8xf32>
    %69 = arith.subf %65, %68 : vector<8x8xf32>
    %70 = math.exp %69 : vector<8x8xf32>
    %cst_43 = arith.constant dense<0.000000e+00> : vector<8xf32>
    %71 = vector.multi_reduction <add>, %70, %cst_43 [1] : vector<8x8xf32> to vector<8xf32>
    %72 = vector.shape_cast %71 : vector<8xf32> to vector<8x1xf32>
    %73 = tpu.reciprocal %72 {approx = true} : vector<8x1xf32> -> vector<8x1xf32>
    %74 = vector.broadcast %73 : vector<8x1xf32> to vector<8x8xf32>
    %75 = arith.mulf %70, %74 : vector<8x8xf32>
    %cst_44 = arith.constant dense<0.000000e+00> : vector<8x8xf32>
    %76 = tpu.matmul %75, %62, %cst_44 {dimension_numbers = #tpu.dot_dimension_numbers<[1], [0], [0], [1], [0, 0, 1, 1], [], []>} : vector<8x8xf32>, vector<8x8xf32>, vector<8x8xf32> -> vector<8x8xf32>
    %77 = vector.extract_strided_slice %59 {offsets = [0, 8], sizes = [8, 8], strides = [1, 1]} : vector<16x96xf32> to vector<8x8xf32>
    %78 = vector.extract_strided_slice %59 {offsets = [0, 40], sizes = [8, 8], strides = [1, 1]} : vector<16x96xf32> to vector<8x8xf32>
    %79 = vector.extract_strided_slice %59 {offsets = [0, 72], sizes = [8, 8], strides = [1, 1]} : vector<16x96xf32> to vector<8x8xf32>
    %cst_45 = arith.constant dense<0.000000e+00> : vector<8x8xf32>
    %80 = tpu.matmul %77, %78, %cst_45 {dimension_numbers = #tpu.dot_dimension_numbers<[1], [1], [0], [0], [0, 0, 1, 0], [], []>} : vector<8x8xf32>, vector<8x8xf32>, vector<8x8xf32> -> vector<8x8xf32>
    %81 = vector.broadcast %12 : vector<1x8xf32> to vector<8x8xf32>
    %82 = arith.addf %80, %81 : vector<8x8xf32>
    %cst_46 = arith.constant dense<0xFF800000> : vector<8xf32>
    %83 = vector.multi_reduction <maximumf>, %82, %cst_46 [1] : vector<8x8xf32> to vector<8xf32>
    %84 = vector.shape_cast %83 : vector<8xf32> to vector<8x1xf32>
    %85 = vector.broadcast %84 : vector<8x1xf32> to vector<8x8xf32>
    %86 = arith.subf %82, %85 : vector<8x8xf32>
    %87 = math.exp %86 : vector<8x8xf32>
    %cst_47 = arith.constant dense<0.000000e+00> : vector<8xf32>
    %88 = vector.multi_reduction <add>, %87, %cst_47 [1] : vector<8x8xf32> to vector<8xf32>
    %89 = vector.shape_cast %88 : vector<8xf32> to vector<8x1xf32>
    %90 = tpu.reciprocal %89 {approx = true} : vector<8x1xf32> -> vector<8x1xf32>
    %91 = vector.broadcast %90 : vector<8x1xf32> to vector<8x8xf32>
    %92 = arith.mulf %87, %91 : vector<8x8xf32>
    %cst_48 = arith.constant dense<0.000000e+00> : vector<8x8xf32>
    %93 = tpu.matmul %92, %79, %cst_48 {dimension_numbers = #tpu.dot_dimension_numbers<[1], [0], [0], [1], [0, 0, 1, 1], [], []>} : vector<8x8xf32>, vector<8x8xf32>, vector<8x8xf32> -> vector<8x8xf32>
    %94 = vector.extract_strided_slice %59 {offsets = [0, 16], sizes = [8, 8], strides = [1, 1]} : vector<16x96xf32> to vector<8x8xf32>
    %95 = vector.extract_strided_slice %59 {offsets = [0, 48], sizes = [8, 8], strides = [1, 1]} : vector<16x96xf32> to vector<8x8xf32>
    %96 = vector.extract_strided_slice %59 {offsets = [0, 80], sizes = [8, 8], strides = [1, 1]} : vector<16x96xf32> to vector<8x8xf32>
    %cst_49 = arith.constant dense<0.000000e+00> : vector<8x8xf32>
    %97 = tpu.matmul %94, %95, %cst_49 {dimension_numbers = #tpu.dot_dimension_numbers<[1], [1], [0], [0], [0, 0, 1, 0], [], []>} : vector<8x8xf32>, vector<8x8xf32>, vector<8x8xf32> -> vector<8x8xf32>
    %98 = vector.broadcast %12 : vector<1x8xf32> to vector<8x8xf32>
    %99 = arith.addf %97, %98 : vector<8x8xf32>
    %cst_50 = arith.constant dense<0xFF800000> : vector<8xf32>
    %100 = vector.multi_reduction <maximumf>, %99, %cst_50 [1] : vector<8x8xf32> to vector<8xf32>
    %101 = vector.shape_cast %100 : vector<8xf32> to vector<8x1xf32>
    %102 = vector.broadcast %101 : vector<8x1xf32> to vector<8x8xf32>
    %103 = arith.subf %99, %102 : vector<8x8xf32>
    %104 = math.exp %103 : vector<8x8xf32>
    %cst_51 = arith.constant dense<0.000000e+00> : vector<8xf32>
    %105 = vector.multi_reduction <add>, %104, %cst_51 [1] : vector<8x8xf32> to vector<8xf32>
    %106 = vector.shape_cast %105 : vector<8xf32> to vector<8x1xf32>
    %107 = tpu.reciprocal %106 {approx = true} : vector<8x1xf32> -> vector<8x1xf32>
    %108 = vector.broadcast %107 : vector<8x1xf32> to vector<8x8xf32>
    %109 = arith.mulf %104, %108 : vector<8x8xf32>
    %cst_52 = arith.constant dense<0.000000e+00> : vector<8x8xf32>
    %110 = tpu.matmul %109, %96, %cst_52 {dimension_numbers = #tpu.dot_dimension_numbers<[1], [0], [0], [1], [0, 0, 1, 1], [], []>} : vector<8x8xf32>, vector<8x8xf32>, vector<8x8xf32> -> vector<8x8xf32>
    %111 = vector.extract_strided_slice %59 {offsets = [0, 24], sizes = [8, 8], strides = [1, 1]} : vector<16x96xf32> to vector<8x8xf32>
    %112 = vector.extract_strided_slice %59 {offsets = [0, 56], sizes = [8, 8], strides = [1, 1]} : vector<16x96xf32> to vector<8x8xf32>
    %113 = vector.extract_strided_slice %59 {offsets = [0, 88], sizes = [8, 8], strides = [1, 1]} : vector<16x96xf32> to vector<8x8xf32>
    %cst_53 = arith.constant dense<0.000000e+00> : vector<8x8xf32>
    %114 = tpu.matmul %111, %112, %cst_53 {dimension_numbers = #tpu.dot_dimension_numbers<[1], [1], [0], [0], [0, 0, 1, 0], [], []>} : vector<8x8xf32>, vector<8x8xf32>, vector<8x8xf32> -> vector<8x8xf32>
    %115 = vector.broadcast %12 : vector<1x8xf32> to vector<8x8xf32>
    %116 = arith.addf %114, %115 : vector<8x8xf32>
    %cst_54 = arith.constant dense<0xFF800000> : vector<8xf32>
    %117 = vector.multi_reduction <maximumf>, %116, %cst_54 [1] : vector<8x8xf32> to vector<8xf32>
    %118 = vector.shape_cast %117 : vector<8xf32> to vector<8x1xf32>
    %119 = vector.broadcast %118 : vector<8x1xf32> to vector<8x8xf32>
    %120 = arith.subf %116, %119 : vector<8x8xf32>
    %121 = math.exp %120 : vector<8x8xf32>
    %cst_55 = arith.constant dense<0.000000e+00> : vector<8xf32>
    %122 = vector.multi_reduction <add>, %121, %cst_55 [1] : vector<8x8xf32> to vector<8xf32>
    %123 = vector.shape_cast %122 : vector<8xf32> to vector<8x1xf32>
    %124 = tpu.reciprocal %123 {approx = true} : vector<8x1xf32> -> vector<8x1xf32>
    %125 = vector.broadcast %124 : vector<8x1xf32> to vector<8x8xf32>
    %126 = arith.mulf %121, %125 : vector<8x8xf32>
    %cst_56 = arith.constant dense<0.000000e+00> : vector<8x8xf32>
    %127 = tpu.matmul %126, %113, %cst_56 {dimension_numbers = #tpu.dot_dimension_numbers<[1], [0], [0], [1], [0, 0, 1, 1], [], []>} : vector<8x8xf32>, vector<8x8xf32>, vector<8x8xf32> -> vector<8x8xf32>
    %128 = tpu.concatenate %76, %93, %110, %127 in 1 : vector<8x8xf32>, vector<8x8xf32>, vector<8x8xf32>, vector<8x8xf32> -> vector<8x32xf32>
    %129 = vector.extract_strided_slice %59 {offsets = [8, 0], sizes = [8, 8], strides = [1, 1]} : vector<16x96xf32> to vector<8x8xf32>
    %130 = vector.extract_strided_slice %59 {offsets = [8, 32], sizes = [8, 8], strides = [1, 1]} : vector<16x96xf32> to vector<8x8xf32>
    %131 = vector.extract_strided_slice %59 {offsets = [8, 64], sizes = [8, 8], strides = [1, 1]} : vector<16x96xf32> to vector<8x8xf32>
    %cst_57 = arith.constant dense<0.000000e+00> : vector<8x8xf32>
    %132 = tpu.matmul %129, %130, %cst_57 {dimension_numbers = #tpu.dot_dimension_numbers<[1], [1], [0], [0], [0, 0, 1, 0], [], []>} : vector<8x8xf32>, vector<8x8xf32>, vector<8x8xf32> -> vector<8x8xf32>
    %133 = vector.broadcast %12 : vector<1x8xf32> to vector<8x8xf32>
    %134 = arith.addf %132, %133 : vector<8x8xf32>
    %cst_58 = arith.constant dense<0xFF800000> : vector<8xf32>
    %135 = vector.multi_reduction <maximumf>, %134, %cst_58 [1] : vector<8x8xf32> to vector<8xf32>
    %136 = vector.shape_cast %135 : vector<8xf32> to vector<8x1xf32>
    %137 = vector.broadcast %136 : vector<8x1xf32> to vector<8x8xf32>
    %138 = arith.subf %134, %137 : vector<8x8xf32>
    %139 = math.exp %138 : vector<8x8xf32>
    %cst_59 = arith.constant dense<0.000000e+00> : vector<8xf32>
    %140 = vector.multi_reduction <add>, %139, %cst_59 [1] : vector<8x8xf32> to vector<8xf32>
    %141 = vector.shape_cast %140 : vector<8xf32> to vector<8x1xf32>
    %142 = tpu.reciprocal %141 {approx = true} : vector<8x1xf32> -> vector<8x1xf32>
    %143 = vector.broadcast %142 : vector<8x1xf32> to vector<8x8xf32>
    %144 = arith.mulf %139, %143 : vector<8x8xf32>
    %cst_60 = arith.constant dense<0.000000e+00> : vector<8x8xf32>
    %145 = tpu.matmul %144, %131, %cst_60 {dimension_numbers = #tpu.dot_dimension_numbers<[1], [0], [0], [1], [0, 0, 1, 1], [], []>} : vector<8x8xf32>, vector<8x8xf32>, vector<8x8xf32> -> vector<8x8xf32>
    %146 = vector.extract_strided_slice %59 {offsets = [8, 8], sizes = [8, 8], strides = [1, 1]} : vector<16x96xf32> to vector<8x8xf32>
    %147 = vector.extract_strided_slice %59 {offsets = [8, 40], sizes = [8, 8], strides = [1, 1]} : vector<16x96xf32> to vector<8x8xf32>
    %148 = vector.extract_strided_slice %59 {offsets = [8, 72], sizes = [8, 8], strides = [1, 1]} : vector<16x96xf32> to vector<8x8xf32>
    %cst_61 = arith.constant dense<0.000000e+00> : vector<8x8xf32>
    %149 = tpu.matmul %146, %147, %cst_61 {dimension_numbers = #tpu.dot_dimension_numbers<[1], [1], [0], [0], [0, 0, 1, 0], [], []>} : vector<8x8xf32>, vector<8x8xf32>, vector<8x8xf32> -> vector<8x8xf32>
    %150 = vector.broadcast %12 : vector<1x8xf32> to vector<8x8xf32>
    %151 = arith.addf %149, %150 : vector<8x8xf32>
    %cst_62 = arith.constant dense<0xFF800000> : vector<8xf32>
    %152 = vector.multi_reduction <maximumf>, %151, %cst_62 [1] : vector<8x8xf32> to vector<8xf32>
    %153 = vector.shape_cast %152 : vector<8xf32> to vector<8x1xf32>
    %154 = vector.broadcast %153 : vector<8x1xf32> to vector<8x8xf32>
    %155 = arith.subf %151, %154 : vector<8x8xf32>
    %156 = math.exp %155 : vector<8x8xf32>
    %cst_63 = arith.constant dense<0.000000e+00> : vector<8xf32>
    %157 = vector.multi_reduction <add>, %156, %cst_63 [1] : vector<8x8xf32> to vector<8xf32>
    %158 = vector.shape_cast %157 : vector<8xf32> to vector<8x1xf32>
    %159 = tpu.reciprocal %158 {approx = true} : vector<8x1xf32> -> vector<8x1xf32>
    %160 = vector.broadcast %159 : vector<8x1xf32> to vector<8x8xf32>
    %161 = arith.mulf %156, %160 : vector<8x8xf32>
    %cst_64 = arith.constant dense<0.000000e+00> : vector<8x8xf32>
    %162 = tpu.matmul %161, %148, %cst_64 {dimension_numbers = #tpu.dot_dimension_numbers<[1], [0], [0], [1], [0, 0, 1, 1], [], []>} : vector<8x8xf32>, vector<8x8xf32>, vector<8x8xf32> -> vector<8x8xf32>
    %163 = vector.extract_strided_slice %59 {offsets = [8, 16], sizes = [8, 8], strides = [1, 1]} : vector<16x96xf32> to vector<8x8xf32>
    %164 = vector.extract_strided_slice %59 {offsets = [8, 48], sizes = [8, 8], strides = [1, 1]} : vector<16x96xf32> to vector<8x8xf32>
    %165 = vector.extract_strided_slice %59 {offsets = [8, 80], sizes = [8, 8], strides = [1, 1]} : vector<16x96xf32> to vector<8x8xf32>
    %cst_65 = arith.constant dense<0.000000e+00> : vector<8x8xf32>
    %166 = tpu.matmul %163, %164, %cst_65 {dimension_numbers = #tpu.dot_dimension_numbers<[1], [1], [0], [0], [0, 0, 1, 0], [], []>} : vector<8x8xf32>, vector<8x8xf32>, vector<8x8xf32> -> vector<8x8xf32>
    %167 = vector.broadcast %12 : vector<1x8xf32> to vector<8x8xf32>
    %168 = arith.addf %166, %167 : vector<8x8xf32>
    %cst_66 = arith.constant dense<0xFF800000> : vector<8xf32>
    %169 = vector.multi_reduction <maximumf>, %168, %cst_66 [1] : vector<8x8xf32> to vector<8xf32>
    %170 = vector.shape_cast %169 : vector<8xf32> to vector<8x1xf32>
    %171 = vector.broadcast %170 : vector<8x1xf32> to vector<8x8xf32>
    %172 = arith.subf %168, %171 : vector<8x8xf32>
    %173 = math.exp %172 : vector<8x8xf32>
    %cst_67 = arith.constant dense<0.000000e+00> : vector<8xf32>
    %174 = vector.multi_reduction <add>, %173, %cst_67 [1] : vector<8x8xf32> to vector<8xf32>
    %175 = vector.shape_cast %174 : vector<8xf32> to vector<8x1xf32>
    %176 = tpu.reciprocal %175 {approx = true} : vector<8x1xf32> -> vector<8x1xf32>
    %177 = vector.broadcast %176 : vector<8x1xf32> to vector<8x8xf32>
    %178 = arith.mulf %173, %177 : vector<8x8xf32>
    %cst_68 = arith.constant dense<0.000000e+00> : vector<8x8xf32>
    %179 = tpu.matmul %178, %165, %cst_68 {dimension_numbers = #tpu.dot_dimension_numbers<[1], [0], [0], [1], [0, 0, 1, 1], [], []>} : vector<8x8xf32>, vector<8x8xf32>, vector<8x8xf32> -> vector<8x8xf32>
    %180 = vector.extract_strided_slice %59 {offsets = [8, 24], sizes = [8, 8], strides = [1, 1]} : vector<16x96xf32> to vector<8x8xf32>
    %181 = vector.extract_strided_slice %59 {offsets = [8, 56], sizes = [8, 8], strides = [1, 1]} : vector<16x96xf32> to vector<8x8xf32>
    %182 = vector.extract_strided_slice %59 {offsets = [8, 88], sizes = [8, 8], strides = [1, 1]} : vector<16x96xf32> to vector<8x8xf32>
    %cst_69 = arith.constant dense<0.000000e+00> : vector<8x8xf32>
    %183 = tpu.matmul %180, %181, %cst_69 {dimension_numbers = #tpu.dot_dimension_numbers<[1], [1], [0], [0], [0, 0, 1, 0], [], []>} : vector<8x8xf32>, vector<8x8xf32>, vector<8x8xf32> -> vector<8x8xf32>
    %184 = vector.broadcast %12 : vector<1x8xf32> to vector<8x8xf32>
    %185 = arith.addf %183, %184 : vector<8x8xf32>
    %cst_70 = arith.constant dense<0xFF800000> : vector<8xf32>
    %186 = vector.multi_reduction <maximumf>, %185, %cst_70 [1] : vector<8x8xf32> to vector<8xf32>
    %187 = vector.shape_cast %186 : vector<8xf32> to vector<8x1xf32>
    %188 = vector.broadcast %187 : vector<8x1xf32> to vector<8x8xf32>
    %189 = arith.subf %185, %188 : vector<8x8xf32>
    %190 = math.exp %189 : vector<8x8xf32>
    %cst_71 = arith.constant dense<0.000000e+00> : vector<8xf32>
    %191 = vector.multi_reduction <add>, %190, %cst_71 [1] : vector<8x8xf32> to vector<8xf32>
    %192 = vector.shape_cast %191 : vector<8xf32> to vector<8x1xf32>
    %193 = tpu.reciprocal %192 {approx = true} : vector<8x1xf32> -> vector<8x1xf32>
    %194 = vector.broadcast %193 : vector<8x1xf32> to vector<8x8xf32>
    %195 = arith.mulf %190, %194 : vector<8x8xf32>
    %cst_72 = arith.constant dense<0.000000e+00> : vector<8x8xf32>
    %196 = tpu.matmul %195, %182, %cst_72 {dimension_numbers = #tpu.dot_dimension_numbers<[1], [0], [0], [1], [0, 0, 1, 1], [], []>} : vector<8x8xf32>, vector<8x8xf32>, vector<8x8xf32> -> vector<8x8xf32>
    %197 = tpu.concatenate %145, %162, %179, %196 in 1 : vector<8x8xf32>, vector<8x8xf32>, vector<8x8xf32>, vector<8x8xf32> -> vector<8x32xf32>
    %198 = tpu.concatenate %128, %197 in 0 : vector<8x32xf32>, vector<8x32xf32> -> vector<16x32xf32>
    %cst_73 = arith.constant dense<0.000000e+00> : vector<16x32xf32>
    %199 = tpu.matmul %198, %32, %cst_73 {dimension_numbers = #tpu.dot_dimension_numbers<[1], [0], [0], [1], [0, 0, 1, 1], [], []>} : vector<16x32xf32>, vector<32x32xf32>, vector<16x32xf32> -> vector<16x32xf32>
    %200 = arith.addf %6, %199 : vector<16x32xf32>
    %201 = vector.broadcast %24 : vector<1x32xf32> to vector<16x32xf32>
    %202 = arith.addf %200, %201 : vector<16x32xf32>
    %cst_74 = arith.constant dense<0.000000e+00> : vector<16xf32>
    %203 = vector.multi_reduction <add>, %202, %cst_74 [1] : vector<16x32xf32> to vector<16xf32>
    %204 = vector.shape_cast %203 : vector<16xf32> to vector<16x1xf32>
    %cst_75 = arith.constant 3.200000e+01 : f32
    %205 = vector.broadcast %cst_75 : f32 to vector<16x1xf32>
    %206 = arith.divf %204, %205 : vector<16x1xf32>
    %207 = vector.broadcast %206 : vector<16x1xf32> to vector<16x32xf32>
    %208 = arith.subf %202, %207 : vector<16x32xf32>
    %209 = arith.mulf %208, %208 : vector<16x32xf32>
    %cst_76 = arith.constant dense<0.000000e+00> : vector<16xf32>
    %210 = vector.multi_reduction <add>, %209, %cst_76 [1] : vector<16x32xf32> to vector<16xf32>
    %211 = vector.shape_cast %210 : vector<16xf32> to vector<16x1xf32>
    %cst_77 = arith.constant 3.200000e+01 : f32
    %212 = vector.broadcast %cst_77 : f32 to vector<16x1xf32>
    %213 = arith.divf %211, %212 : vector<16x1xf32>
    %cst_78 = arith.constant 9.99999997E-7 : f32
    %214 = vector.broadcast %cst_78 : f32 to vector<16x1xf32>
    %215 = arith.addf %213, %214 : vector<16x1xf32>
    %216 = math.rsqrt %215 : vector<16x1xf32>
    %217 = vector.broadcast %216 : vector<16x1xf32> to vector<16x32xf32>
    %218 = arith.mulf %208, %217 : vector<16x32xf32>
    %219 = vector.broadcast %18 : vector<1x32xf32> to vector<16x32xf32>
    %220 = arith.mulf %218, %219 : vector<16x32xf32>
    %221 = vector.broadcast %20 : vector<1x32xf32> to vector<16x32xf32>
    %222 = arith.addf %220, %221 : vector<16x32xf32>
    %cst_79 = arith.constant dense<0.000000e+00> : vector<16x128xf32>
    %223 = tpu.matmul %222, %34, %cst_79 {dimension_numbers = #tpu.dot_dimension_numbers<[1], [0], [0], [1], [0, 0, 1, 1], [], []>} : vector<16x32xf32>, vector<32x128xf32>, vector<16x128xf32> -> vector<16x128xf32>
    %224 = vector.broadcast %26 : vector<1x128xf32> to vector<16x128xf32>
    %225 = arith.addf %223, %224 : vector<16x128xf32>
    %cst_80 = arith.constant 5.000000e-01 : f32
    %226 = vector.broadcast %cst_80 : f32 to vector<16x128xf32>
    %227 = arith.mulf %226, %225 : vector<16x128xf32>
    %cst_81 = arith.constant 0.707106769 : f32
    %228 = vector.broadcast %cst_81 : f32 to vector<16x128xf32>
    %229 = arith.mulf %225, %228 : vector<16x128xf32>
    %230 = math.absf %229 : vector<16x128xf32>
    %cst_82 = arith.constant 0.327591091 : f32
    %231 = vector.broadcast %cst_82 : f32 to vector<16x128xf32>
    %232 = arith.mulf %231, %230 : vector<16x128xf32>
    %cst_83 = arith.constant 1.000000e+00 : f32
    %233 = vector.broadcast %cst_83 : f32 to vector<16x128xf32>
    %234 = arith.addf %233, %232 : vector<16x128xf32>
    %cst_84 = arith.constant 1.000000e+00 : f32
    %235 = vector.broadcast %cst_84 : f32 to vector<16x128xf32>
    %236 = arith.divf %235, %234 : vector<16x128xf32>
    %cst_85 = arith.constant 1.06140542 : f32
    %237 = vector.broadcast %cst_85 : f32 to vector<16x128xf32>
    %238 = arith.mulf %237, %236 : vector<16x128xf32>
    %cst_86 = arith.constant -1.45315206 : f32
    %239 = vector.broadcast %cst_86 : f32 to vector<16x128xf32>
    %240 = arith.addf %238, %239 : vector<16x128xf32>
    %241 = arith.mulf %240, %236 : vector<16x128xf32>
    %cst_87 = arith.constant 1.42141378 : f32
    %242 = vector.broadcast %cst_87 : f32 to vector<16x128xf32>
    %243 = arith.addf %241, %242 : vector<16x128xf32>
    %244 = arith.mulf %243, %236 : vector<16x128xf32>
    %cst_88 = arith.constant -0.284496725 : f32
    %245 = vector.broadcast %cst_88 : f32 to vector<16x128xf32>
    %246 = arith.addf %244, %245 : vector<16x128xf32>
    %247 = arith.mulf %246, %236 : vector<16x128xf32>
    %cst_89 = arith.constant 0.254829586 : f32
    %248 = vector.broadcast %cst_89 : f32 to vector<16x128xf32>
    %249 = arith.addf %247, %248 : vector<16x128xf32>
    %250 = arith.mulf %249, %236 : vector<16x128xf32>
    %cst_90 = arith.constant 0.000000e+00 : f32
    %251 = vector.broadcast %cst_90 : f32 to vector<16x128xf32>
    %252 = arith.subf %251, %230 : vector<16x128xf32>
    %253 = arith.mulf %252, %230 : vector<16x128xf32>
    %254 = math.exp %253 : vector<16x128xf32>
    %255 = arith.mulf %250, %254 : vector<16x128xf32>
    %cst_91 = arith.constant 1.000000e+00 : f32
    %256 = vector.broadcast %cst_91 : f32 to vector<16x128xf32>
    %257 = arith.subf %256, %255 : vector<16x128xf32>
    %cst_92 = arith.constant 0.000000e+00 : f32
    %258 = vector.broadcast %cst_92 : f32 to vector<16x128xf32>
    %259 = arith.cmpf oge, %229, %258 : vector<16x128xf32>
    %cst_93 = arith.constant 0.000000e+00 : f32
    %260 = vector.broadcast %cst_93 : f32 to vector<16x128xf32>
    %261 = arith.subf %260, %257 : vector<16x128xf32>
    %262 = arith.select %259, %257, %261 : vector<16x128xi1>, vector<16x128xf32>
    %cst_94 = arith.constant 1.000000e+00 : f32
    %263 = vector.broadcast %cst_94 : f32 to vector<16x128xf32>
    %264 = arith.addf %263, %262 : vector<16x128xf32>
    %265 = arith.mulf %227, %264 : vector<16x128xf32>
    %cst_95 = arith.constant dense<0.000000e+00> : vector<16x32xf32>
    %266 = tpu.matmul %265, %36, %cst_95 {dimension_numbers = #tpu.dot_dimension_numbers<[1], [1], [0], [0], [0, 0, 1, 0], [], []>} : vector<16x128xf32>, vector<32x128xf32>, vector<16x32xf32> -> vector<16x32xf32>
    %267 = vector.broadcast %28 : vector<1x32xf32> to vector<16x32xf32>
    %268 = arith.addf %266, %267 : vector<16x32xf32>
    %269 = arith.addf %202, %268 : vector<16x32xf32>
    %c1_96 = arith.constant 1 : index
    %c0_97 = arith.constant 0 : index
    %c0_98 = arith.constant 0 : index
    %270 = vector.load %arg5[%c1_96, %c0_97, %c0_98] : memref<2x8x128xf32, #tpu.memory_space<vmem>>, vector<1x1x32xf32>
    %271 = vector.shape_cast %270 : vector<1x1x32xf32> to vector<1x32xf32>
    %c1_99 = arith.constant 1 : index
    %c1_100 = arith.constant 1 : index
    %c0_101 = arith.constant 0 : index
    %272 = vector.load %arg5[%c1_99, %c1_100, %c0_101] : memref<2x8x128xf32, #tpu.memory_space<vmem>>, vector<1x1x32xf32>
    %273 = vector.shape_cast %272 : vector<1x1x32xf32> to vector<1x32xf32>
    %c1_102 = arith.constant 1 : index
    %c2_103 = arith.constant 2 : index
    %c0_104 = arith.constant 0 : index
    %274 = vector.load %arg5[%c1_102, %c2_103, %c0_104] : memref<2x8x128xf32, #tpu.memory_space<vmem>>, vector<1x1x32xf32>
    %275 = vector.shape_cast %274 : vector<1x1x32xf32> to vector<1x32xf32>
    %c1_105 = arith.constant 1 : index
    %c3_106 = arith.constant 3 : index
    %c0_107 = arith.constant 0 : index
    %276 = vector.load %arg5[%c1_105, %c3_106, %c0_107] : memref<2x8x128xf32, #tpu.memory_space<vmem>>, vector<1x1x32xf32>
    %277 = vector.shape_cast %276 : vector<1x1x32xf32> to vector<1x32xf32>
    %c1_108 = arith.constant 1 : index
    %c4_109 = arith.constant 4 : index
    %c0_110 = arith.constant 0 : index
    %278 = vector.load %arg5[%c1_108, %c4_109, %c0_110] : memref<2x8x128xf32, #tpu.memory_space<vmem>>, vector<1x1x96xf32>
    %279 = vector.shape_cast %278 : vector<1x1x96xf32> to vector<1x96xf32>
    %c1_111 = arith.constant 1 : index
    %c5_112 = arith.constant 5 : index
    %c0_113 = arith.constant 0 : index
    %280 = vector.load %arg5[%c1_111, %c5_112, %c0_113] : memref<2x8x128xf32, #tpu.memory_space<vmem>>, vector<1x1x32xf32>
    %281 = vector.shape_cast %280 : vector<1x1x32xf32> to vector<1x32xf32>
    %c1_114 = arith.constant 1 : index
    %c6_115 = arith.constant 6 : index
    %c0_116 = arith.constant 0 : index
    %282 = vector.load %arg5[%c1_114, %c6_115, %c0_116] : memref<2x8x128xf32, #tpu.memory_space<vmem>>, vector<1x1x128xf32>
    %283 = vector.shape_cast %282 : vector<1x1x128xf32> to vector<1x128xf32>
    %c1_117 = arith.constant 1 : index
    %c7_118 = arith.constant 7 : index
    %c0_119 = arith.constant 0 : index
    %284 = vector.load %arg5[%c1_117, %c7_118, %c0_119] : memref<2x8x128xf32, #tpu.memory_space<vmem>>, vector<1x1x32xf32>
    %285 = vector.shape_cast %284 : vector<1x1x32xf32> to vector<1x32xf32>
    %c1_120 = arith.constant 1 : index
    %c0_121 = arith.constant 0 : index
    %c0_122 = arith.constant 0 : index
    %286 = vector.load %arg3[%c1_120, %c0_121, %c0_122] : memref<2x64x96xf32, #tpu.memory_space<vmem>>, vector<1x32x96xf32>
    %287 = vector.shape_cast %286 : vector<1x32x96xf32> to vector<32x96xf32>
    %c1_123 = arith.constant 1 : index
    %c32_124 = arith.constant 32 : index
    %c0_125 = arith.constant 0 : index
    %288 = vector.load %arg3[%c1_123, %c32_124, %c0_125] : memref<2x64x96xf32, #tpu.memory_space<vmem>>, vector<1x32x32xf32>
    %289 = vector.shape_cast %288 : vector<1x32x32xf32> to vector<32x32xf32>
    %c1_126 = arith.constant 1 : index
    %c0_127 = arith.constant 0 : index
    %c0_128 = arith.constant 0 : index
    %290 = vector.load %arg4[%c1_126, %c0_127, %c0_128] : memref<2x64x128xf32, #tpu.memory_space<vmem>>, vector<1x32x128xf32>
    %291 = vector.shape_cast %290 : vector<1x32x128xf32> to vector<32x128xf32>
    %c1_129 = arith.constant 1 : index
    %c32_130 = arith.constant 32 : index
    %c0_131 = arith.constant 0 : index
    %292 = vector.load %arg4[%c1_129, %c32_130, %c0_131] : memref<2x64x128xf32, #tpu.memory_space<vmem>>, vector<1x32x128xf32>
    %293 = vector.shape_cast %292 : vector<1x32x128xf32> to vector<32x128xf32>
    %cst_132 = arith.constant dense<0.000000e+00> : vector<16xf32>
    %294 = vector.multi_reduction <add>, %269, %cst_132 [1] : vector<16x32xf32> to vector<16xf32>
    %295 = vector.shape_cast %294 : vector<16xf32> to vector<16x1xf32>
    %cst_133 = arith.constant 3.200000e+01 : f32
    %296 = vector.broadcast %cst_133 : f32 to vector<16x1xf32>
    %297 = arith.divf %295, %296 : vector<16x1xf32>
    %298 = vector.broadcast %297 : vector<16x1xf32> to vector<16x32xf32>
    %299 = arith.subf %269, %298 : vector<16x32xf32>
    %300 = arith.mulf %299, %299 : vector<16x32xf32>
    %cst_134 = arith.constant dense<0.000000e+00> : vector<16xf32>
    %301 = vector.multi_reduction <add>, %300, %cst_134 [1] : vector<16x32xf32> to vector<16xf32>
    %302 = vector.shape_cast %301 : vector<16xf32> to vector<16x1xf32>
    %cst_135 = arith.constant 3.200000e+01 : f32
    %303 = vector.broadcast %cst_135 : f32 to vector<16x1xf32>
    %304 = arith.divf %302, %303 : vector<16x1xf32>
    %cst_136 = arith.constant 9.99999997E-7 : f32
    %305 = vector.broadcast %cst_136 : f32 to vector<16x1xf32>
    %306 = arith.addf %304, %305 : vector<16x1xf32>
    %307 = math.rsqrt %306 : vector<16x1xf32>
    %308 = vector.broadcast %307 : vector<16x1xf32> to vector<16x32xf32>
    %309 = arith.mulf %299, %308 : vector<16x32xf32>
    %310 = vector.broadcast %271 : vector<1x32xf32> to vector<16x32xf32>
    %311 = arith.mulf %309, %310 : vector<16x32xf32>
    %312 = vector.broadcast %273 : vector<1x32xf32> to vector<16x32xf32>
    %313 = arith.addf %311, %312 : vector<16x32xf32>
    %cst_137 = arith.constant dense<0.000000e+00> : vector<16x96xf32>
    %314 = tpu.matmul %313, %287, %cst_137 {dimension_numbers = #tpu.dot_dimension_numbers<[1], [0], [0], [1], [0, 0, 1, 1], [], []>} : vector<16x32xf32>, vector<32x96xf32>, vector<16x96xf32> -> vector<16x96xf32>
    %315 = vector.broadcast %279 : vector<1x96xf32> to vector<16x96xf32>
    %316 = arith.addf %314, %315 : vector<16x96xf32>
    %317 = vector.extract_strided_slice %316 {offsets = [0, 0], sizes = [8, 8], strides = [1, 1]} : vector<16x96xf32> to vector<8x8xf32>
    %318 = vector.extract_strided_slice %316 {offsets = [0, 32], sizes = [8, 8], strides = [1, 1]} : vector<16x96xf32> to vector<8x8xf32>
    %319 = vector.extract_strided_slice %316 {offsets = [0, 64], sizes = [8, 8], strides = [1, 1]} : vector<16x96xf32> to vector<8x8xf32>
    %cst_138 = arith.constant dense<0.000000e+00> : vector<8x8xf32>
    %320 = tpu.matmul %317, %318, %cst_138 {dimension_numbers = #tpu.dot_dimension_numbers<[1], [1], [0], [0], [0, 0, 1, 0], [], []>} : vector<8x8xf32>, vector<8x8xf32>, vector<8x8xf32> -> vector<8x8xf32>
    %321 = vector.broadcast %12 : vector<1x8xf32> to vector<8x8xf32>
    %322 = arith.addf %320, %321 : vector<8x8xf32>
    %cst_139 = arith.constant dense<0xFF800000> : vector<8xf32>
    %323 = vector.multi_reduction <maximumf>, %322, %cst_139 [1] : vector<8x8xf32> to vector<8xf32>
    %324 = vector.shape_cast %323 : vector<8xf32> to vector<8x1xf32>
    %325 = vector.broadcast %324 : vector<8x1xf32> to vector<8x8xf32>
    %326 = arith.subf %322, %325 : vector<8x8xf32>
    %327 = math.exp %326 : vector<8x8xf32>
    %cst_140 = arith.constant dense<0.000000e+00> : vector<8xf32>
    %328 = vector.multi_reduction <add>, %327, %cst_140 [1] : vector<8x8xf32> to vector<8xf32>
    %329 = vector.shape_cast %328 : vector<8xf32> to vector<8x1xf32>
    %330 = tpu.reciprocal %329 {approx = true} : vector<8x1xf32> -> vector<8x1xf32>
    %331 = vector.broadcast %330 : vector<8x1xf32> to vector<8x8xf32>
    %332 = arith.mulf %327, %331 : vector<8x8xf32>
    %cst_141 = arith.constant dense<0.000000e+00> : vector<8x8xf32>
    %333 = tpu.matmul %332, %319, %cst_141 {dimension_numbers = #tpu.dot_dimension_numbers<[1], [0], [0], [1], [0, 0, 1, 1], [], []>} : vector<8x8xf32>, vector<8x8xf32>, vector<8x8xf32> -> vector<8x8xf32>
    %334 = vector.extract_strided_slice %316 {offsets = [0, 8], sizes = [8, 8], strides = [1, 1]} : vector<16x96xf32> to vector<8x8xf32>
    %335 = vector.extract_strided_slice %316 {offsets = [0, 40], sizes = [8, 8], strides = [1, 1]} : vector<16x96xf32> to vector<8x8xf32>
    %336 = vector.extract_strided_slice %316 {offsets = [0, 72], sizes = [8, 8], strides = [1, 1]} : vector<16x96xf32> to vector<8x8xf32>
    %cst_142 = arith.constant dense<0.000000e+00> : vector<8x8xf32>
    %337 = tpu.matmul %334, %335, %cst_142 {dimension_numbers = #tpu.dot_dimension_numbers<[1], [1], [0], [0], [0, 0, 1, 0], [], []>} : vector<8x8xf32>, vector<8x8xf32>, vector<8x8xf32> -> vector<8x8xf32>
    %338 = vector.broadcast %12 : vector<1x8xf32> to vector<8x8xf32>
    %339 = arith.addf %337, %338 : vector<8x8xf32>
    %cst_143 = arith.constant dense<0xFF800000> : vector<8xf32>
    %340 = vector.multi_reduction <maximumf>, %339, %cst_143 [1] : vector<8x8xf32> to vector<8xf32>
    %341 = vector.shape_cast %340 : vector<8xf32> to vector<8x1xf32>
    %342 = vector.broadcast %341 : vector<8x1xf32> to vector<8x8xf32>
    %343 = arith.subf %339, %342 : vector<8x8xf32>
    %344 = math.exp %343 : vector<8x8xf32>
    %cst_144 = arith.constant dense<0.000000e+00> : vector<8xf32>
    %345 = vector.multi_reduction <add>, %344, %cst_144 [1] : vector<8x8xf32> to vector<8xf32>
    %346 = vector.shape_cast %345 : vector<8xf32> to vector<8x1xf32>
    %347 = tpu.reciprocal %346 {approx = true} : vector<8x1xf32> -> vector<8x1xf32>
    %348 = vector.broadcast %347 : vector<8x1xf32> to vector<8x8xf32>
    %349 = arith.mulf %344, %348 : vector<8x8xf32>
    %cst_145 = arith.constant dense<0.000000e+00> : vector<8x8xf32>
    %350 = tpu.matmul %349, %336, %cst_145 {dimension_numbers = #tpu.dot_dimension_numbers<[1], [0], [0], [1], [0, 0, 1, 1], [], []>} : vector<8x8xf32>, vector<8x8xf32>, vector<8x8xf32> -> vector<8x8xf32>
    %351 = vector.extract_strided_slice %316 {offsets = [0, 16], sizes = [8, 8], strides = [1, 1]} : vector<16x96xf32> to vector<8x8xf32>
    %352 = vector.extract_strided_slice %316 {offsets = [0, 48], sizes = [8, 8], strides = [1, 1]} : vector<16x96xf32> to vector<8x8xf32>
    %353 = vector.extract_strided_slice %316 {offsets = [0, 80], sizes = [8, 8], strides = [1, 1]} : vector<16x96xf32> to vector<8x8xf32>
    %cst_146 = arith.constant dense<0.000000e+00> : vector<8x8xf32>
    %354 = tpu.matmul %351, %352, %cst_146 {dimension_numbers = #tpu.dot_dimension_numbers<[1], [1], [0], [0], [0, 0, 1, 0], [], []>} : vector<8x8xf32>, vector<8x8xf32>, vector<8x8xf32> -> vector<8x8xf32>
    %355 = vector.broadcast %12 : vector<1x8xf32> to vector<8x8xf32>
    %356 = arith.addf %354, %355 : vector<8x8xf32>
    %cst_147 = arith.constant dense<0xFF800000> : vector<8xf32>
    %357 = vector.multi_reduction <maximumf>, %356, %cst_147 [1] : vector<8x8xf32> to vector<8xf32>
    %358 = vector.shape_cast %357 : vector<8xf32> to vector<8x1xf32>
    %359 = vector.broadcast %358 : vector<8x1xf32> to vector<8x8xf32>
    %360 = arith.subf %356, %359 : vector<8x8xf32>
    %361 = math.exp %360 : vector<8x8xf32>
    %cst_148 = arith.constant dense<0.000000e+00> : vector<8xf32>
    %362 = vector.multi_reduction <add>, %361, %cst_148 [1] : vector<8x8xf32> to vector<8xf32>
    %363 = vector.shape_cast %362 : vector<8xf32> to vector<8x1xf32>
    %364 = tpu.reciprocal %363 {approx = true} : vector<8x1xf32> -> vector<8x1xf32>
    %365 = vector.broadcast %364 : vector<8x1xf32> to vector<8x8xf32>
    %366 = arith.mulf %361, %365 : vector<8x8xf32>
    %cst_149 = arith.constant dense<0.000000e+00> : vector<8x8xf32>
    %367 = tpu.matmul %366, %353, %cst_149 {dimension_numbers = #tpu.dot_dimension_numbers<[1], [0], [0], [1], [0, 0, 1, 1], [], []>} : vector<8x8xf32>, vector<8x8xf32>, vector<8x8xf32> -> vector<8x8xf32>
    %368 = vector.extract_strided_slice %316 {offsets = [0, 24], sizes = [8, 8], strides = [1, 1]} : vector<16x96xf32> to vector<8x8xf32>
    %369 = vector.extract_strided_slice %316 {offsets = [0, 56], sizes = [8, 8], strides = [1, 1]} : vector<16x96xf32> to vector<8x8xf32>
    %370 = vector.extract_strided_slice %316 {offsets = [0, 88], sizes = [8, 8], strides = [1, 1]} : vector<16x96xf32> to vector<8x8xf32>
    %cst_150 = arith.constant dense<0.000000e+00> : vector<8x8xf32>
    %371 = tpu.matmul %368, %369, %cst_150 {dimension_numbers = #tpu.dot_dimension_numbers<[1], [1], [0], [0], [0, 0, 1, 0], [], []>} : vector<8x8xf32>, vector<8x8xf32>, vector<8x8xf32> -> vector<8x8xf32>
    %372 = vector.broadcast %12 : vector<1x8xf32> to vector<8x8xf32>
    %373 = arith.addf %371, %372 : vector<8x8xf32>
    %cst_151 = arith.constant dense<0xFF800000> : vector<8xf32>
    %374 = vector.multi_reduction <maximumf>, %373, %cst_151 [1] : vector<8x8xf32> to vector<8xf32>
    %375 = vector.shape_cast %374 : vector<8xf32> to vector<8x1xf32>
    %376 = vector.broadcast %375 : vector<8x1xf32> to vector<8x8xf32>
    %377 = arith.subf %373, %376 : vector<8x8xf32>
    %378 = math.exp %377 : vector<8x8xf32>
    %cst_152 = arith.constant dense<0.000000e+00> : vector<8xf32>
    %379 = vector.multi_reduction <add>, %378, %cst_152 [1] : vector<8x8xf32> to vector<8xf32>
    %380 = vector.shape_cast %379 : vector<8xf32> to vector<8x1xf32>
    %381 = tpu.reciprocal %380 {approx = true} : vector<8x1xf32> -> vector<8x1xf32>
    %382 = vector.broadcast %381 : vector<8x1xf32> to vector<8x8xf32>
    %383 = arith.mulf %378, %382 : vector<8x8xf32>
    %cst_153 = arith.constant dense<0.000000e+00> : vector<8x8xf32>
    %384 = tpu.matmul %383, %370, %cst_153 {dimension_numbers = #tpu.dot_dimension_numbers<[1], [0], [0], [1], [0, 0, 1, 1], [], []>} : vector<8x8xf32>, vector<8x8xf32>, vector<8x8xf32> -> vector<8x8xf32>
    %385 = tpu.concatenate %333, %350, %367, %384 in 1 : vector<8x8xf32>, vector<8x8xf32>, vector<8x8xf32>, vector<8x8xf32> -> vector<8x32xf32>
    %386 = vector.extract_strided_slice %316 {offsets = [8, 0], sizes = [8, 8], strides = [1, 1]} : vector<16x96xf32> to vector<8x8xf32>
    %387 = vector.extract_strided_slice %316 {offsets = [8, 32], sizes = [8, 8], strides = [1, 1]} : vector<16x96xf32> to vector<8x8xf32>
    %388 = vector.extract_strided_slice %316 {offsets = [8, 64], sizes = [8, 8], strides = [1, 1]} : vector<16x96xf32> to vector<8x8xf32>
    %cst_154 = arith.constant dense<0.000000e+00> : vector<8x8xf32>
    %389 = tpu.matmul %386, %387, %cst_154 {dimension_numbers = #tpu.dot_dimension_numbers<[1], [1], [0], [0], [0, 0, 1, 0], [], []>} : vector<8x8xf32>, vector<8x8xf32>, vector<8x8xf32> -> vector<8x8xf32>
    %390 = vector.broadcast %12 : vector<1x8xf32> to vector<8x8xf32>
    %391 = arith.addf %389, %390 : vector<8x8xf32>
    %cst_155 = arith.constant dense<0xFF800000> : vector<8xf32>
    %392 = vector.multi_reduction <maximumf>, %391, %cst_155 [1] : vector<8x8xf32> to vector<8xf32>
    %393 = vector.shape_cast %392 : vector<8xf32> to vector<8x1xf32>
    %394 = vector.broadcast %393 : vector<8x1xf32> to vector<8x8xf32>
    %395 = arith.subf %391, %394 : vector<8x8xf32>
    %396 = math.exp %395 : vector<8x8xf32>
    %cst_156 = arith.constant dense<0.000000e+00> : vector<8xf32>
    %397 = vector.multi_reduction <add>, %396, %cst_156 [1] : vector<8x8xf32> to vector<8xf32>
    %398 = vector.shape_cast %397 : vector<8xf32> to vector<8x1xf32>
    %399 = tpu.reciprocal %398 {approx = true} : vector<8x1xf32> -> vector<8x1xf32>
    %400 = vector.broadcast %399 : vector<8x1xf32> to vector<8x8xf32>
    %401 = arith.mulf %396, %400 : vector<8x8xf32>
    %cst_157 = arith.constant dense<0.000000e+00> : vector<8x8xf32>
    %402 = tpu.matmul %401, %388, %cst_157 {dimension_numbers = #tpu.dot_dimension_numbers<[1], [0], [0], [1], [0, 0, 1, 1], [], []>} : vector<8x8xf32>, vector<8x8xf32>, vector<8x8xf32> -> vector<8x8xf32>
    %403 = vector.extract_strided_slice %316 {offsets = [8, 8], sizes = [8, 8], strides = [1, 1]} : vector<16x96xf32> to vector<8x8xf32>
    %404 = vector.extract_strided_slice %316 {offsets = [8, 40], sizes = [8, 8], strides = [1, 1]} : vector<16x96xf32> to vector<8x8xf32>
    %405 = vector.extract_strided_slice %316 {offsets = [8, 72], sizes = [8, 8], strides = [1, 1]} : vector<16x96xf32> to vector<8x8xf32>
    %cst_158 = arith.constant dense<0.000000e+00> : vector<8x8xf32>
    %406 = tpu.matmul %403, %404, %cst_158 {dimension_numbers = #tpu.dot_dimension_numbers<[1], [1], [0], [0], [0, 0, 1, 0], [], []>} : vector<8x8xf32>, vector<8x8xf32>, vector<8x8xf32> -> vector<8x8xf32>
    %407 = vector.broadcast %12 : vector<1x8xf32> to vector<8x8xf32>
    %408 = arith.addf %406, %407 : vector<8x8xf32>
    %cst_159 = arith.constant dense<0xFF800000> : vector<8xf32>
    %409 = vector.multi_reduction <maximumf>, %408, %cst_159 [1] : vector<8x8xf32> to vector<8xf32>
    %410 = vector.shape_cast %409 : vector<8xf32> to vector<8x1xf32>
    %411 = vector.broadcast %410 : vector<8x1xf32> to vector<8x8xf32>
    %412 = arith.subf %408, %411 : vector<8x8xf32>
    %413 = math.exp %412 : vector<8x8xf32>
    %cst_160 = arith.constant dense<0.000000e+00> : vector<8xf32>
    %414 = vector.multi_reduction <add>, %413, %cst_160 [1] : vector<8x8xf32> to vector<8xf32>
    %415 = vector.shape_cast %414 : vector<8xf32> to vector<8x1xf32>
    %416 = tpu.reciprocal %415 {approx = true} : vector<8x1xf32> -> vector<8x1xf32>
    %417 = vector.broadcast %416 : vector<8x1xf32> to vector<8x8xf32>
    %418 = arith.mulf %413, %417 : vector<8x8xf32>
    %cst_161 = arith.constant dense<0.000000e+00> : vector<8x8xf32>
    %419 = tpu.matmul %418, %405, %cst_161 {dimension_numbers = #tpu.dot_dimension_numbers<[1], [0], [0], [1], [0, 0, 1, 1], [], []>} : vector<8x8xf32>, vector<8x8xf32>, vector<8x8xf32> -> vector<8x8xf32>
    %420 = vector.extract_strided_slice %316 {offsets = [8, 16], sizes = [8, 8], strides = [1, 1]} : vector<16x96xf32> to vector<8x8xf32>
    %421 = vector.extract_strided_slice %316 {offsets = [8, 48], sizes = [8, 8], strides = [1, 1]} : vector<16x96xf32> to vector<8x8xf32>
    %422 = vector.extract_strided_slice %316 {offsets = [8, 80], sizes = [8, 8], strides = [1, 1]} : vector<16x96xf32> to vector<8x8xf32>
    %cst_162 = arith.constant dense<0.000000e+00> : vector<8x8xf32>
    %423 = tpu.matmul %420, %421, %cst_162 {dimension_numbers = #tpu.dot_dimension_numbers<[1], [1], [0], [0], [0, 0, 1, 0], [], []>} : vector<8x8xf32>, vector<8x8xf32>, vector<8x8xf32> -> vector<8x8xf32>
    %424 = vector.broadcast %12 : vector<1x8xf32> to vector<8x8xf32>
    %425 = arith.addf %423, %424 : vector<8x8xf32>
    %cst_163 = arith.constant dense<0xFF800000> : vector<8xf32>
    %426 = vector.multi_reduction <maximumf>, %425, %cst_163 [1] : vector<8x8xf32> to vector<8xf32>
    %427 = vector.shape_cast %426 : vector<8xf32> to vector<8x1xf32>
    %428 = vector.broadcast %427 : vector<8x1xf32> to vector<8x8xf32>
    %429 = arith.subf %425, %428 : vector<8x8xf32>
    %430 = math.exp %429 : vector<8x8xf32>
    %cst_164 = arith.constant dense<0.000000e+00> : vector<8xf32>
    %431 = vector.multi_reduction <add>, %430, %cst_164 [1] : vector<8x8xf32> to vector<8xf32>
    %432 = vector.shape_cast %431 : vector<8xf32> to vector<8x1xf32>
    %433 = tpu.reciprocal %432 {approx = true} : vector<8x1xf32> -> vector<8x1xf32>
    %434 = vector.broadcast %433 : vector<8x1xf32> to vector<8x8xf32>
    %435 = arith.mulf %430, %434 : vector<8x8xf32>
    %cst_165 = arith.constant dense<0.000000e+00> : vector<8x8xf32>
    %436 = tpu.matmul %435, %422, %cst_165 {dimension_numbers = #tpu.dot_dimension_numbers<[1], [0], [0], [1], [0, 0, 1, 1], [], []>} : vector<8x8xf32>, vector<8x8xf32>, vector<8x8xf32> -> vector<8x8xf32>
    %437 = vector.extract_strided_slice %316 {offsets = [8, 24], sizes = [8, 8], strides = [1, 1]} : vector<16x96xf32> to vector<8x8xf32>
    %438 = vector.extract_strided_slice %316 {offsets = [8, 56], sizes = [8, 8], strides = [1, 1]} : vector<16x96xf32> to vector<8x8xf32>
    %439 = vector.extract_strided_slice %316 {offsets = [8, 88], sizes = [8, 8], strides = [1, 1]} : vector<16x96xf32> to vector<8x8xf32>
    %cst_166 = arith.constant dense<0.000000e+00> : vector<8x8xf32>
    %440 = tpu.matmul %437, %438, %cst_166 {dimension_numbers = #tpu.dot_dimension_numbers<[1], [1], [0], [0], [0, 0, 1, 0], [], []>} : vector<8x8xf32>, vector<8x8xf32>, vector<8x8xf32> -> vector<8x8xf32>
    %441 = vector.broadcast %12 : vector<1x8xf32> to vector<8x8xf32>
    %442 = arith.addf %440, %441 : vector<8x8xf32>
    %cst_167 = arith.constant dense<0xFF800000> : vector<8xf32>
    %443 = vector.multi_reduction <maximumf>, %442, %cst_167 [1] : vector<8x8xf32> to vector<8xf32>
    %444 = vector.shape_cast %443 : vector<8xf32> to vector<8x1xf32>
    %445 = vector.broadcast %444 : vector<8x1xf32> to vector<8x8xf32>
    %446 = arith.subf %442, %445 : vector<8x8xf32>
    %447 = math.exp %446 : vector<8x8xf32>
    %cst_168 = arith.constant dense<0.000000e+00> : vector<8xf32>
    %448 = vector.multi_reduction <add>, %447, %cst_168 [1] : vector<8x8xf32> to vector<8xf32>
    %449 = vector.shape_cast %448 : vector<8xf32> to vector<8x1xf32>
    %450 = tpu.reciprocal %449 {approx = true} : vector<8x1xf32> -> vector<8x1xf32>
    %451 = vector.broadcast %450 : vector<8x1xf32> to vector<8x8xf32>
    %452 = arith.mulf %447, %451 : vector<8x8xf32>
    %cst_169 = arith.constant dense<0.000000e+00> : vector<8x8xf32>
    %453 = tpu.matmul %452, %439, %cst_169 {dimension_numbers = #tpu.dot_dimension_numbers<[1], [0], [0], [1], [0, 0, 1, 1], [], []>} : vector<8x8xf32>, vector<8x8xf32>, vector<8x8xf32> -> vector<8x8xf32>
    %454 = tpu.concatenate %402, %419, %436, %453 in 1 : vector<8x8xf32>, vector<8x8xf32>, vector<8x8xf32>, vector<8x8xf32> -> vector<8x32xf32>
    %455 = tpu.concatenate %385, %454 in 0 : vector<8x32xf32>, vector<8x32xf32> -> vector<16x32xf32>
    %cst_170 = arith.constant dense<0.000000e+00> : vector<16x32xf32>
    %456 = tpu.matmul %455, %289, %cst_170 {dimension_numbers = #tpu.dot_dimension_numbers<[1], [0], [0], [1], [0, 0, 1, 1], [], []>} : vector<16x32xf32>, vector<32x32xf32>, vector<16x32xf32> -> vector<16x32xf32>
    %457 = arith.addf %269, %456 : vector<16x32xf32>
    %458 = vector.broadcast %281 : vector<1x32xf32> to vector<16x32xf32>
    %459 = arith.addf %457, %458 : vector<16x32xf32>
    %cst_171 = arith.constant dense<0.000000e+00> : vector<16xf32>
    %460 = vector.multi_reduction <add>, %459, %cst_171 [1] : vector<16x32xf32> to vector<16xf32>
    %461 = vector.shape_cast %460 : vector<16xf32> to vector<16x1xf32>
    %cst_172 = arith.constant 3.200000e+01 : f32
    %462 = vector.broadcast %cst_172 : f32 to vector<16x1xf32>
    %463 = arith.divf %461, %462 : vector<16x1xf32>
    %464 = vector.broadcast %463 : vector<16x1xf32> to vector<16x32xf32>
    %465 = arith.subf %459, %464 : vector<16x32xf32>
    %466 = arith.mulf %465, %465 : vector<16x32xf32>
    %cst_173 = arith.constant dense<0.000000e+00> : vector<16xf32>
    %467 = vector.multi_reduction <add>, %466, %cst_173 [1] : vector<16x32xf32> to vector<16xf32>
    %468 = vector.shape_cast %467 : vector<16xf32> to vector<16x1xf32>
    %cst_174 = arith.constant 3.200000e+01 : f32
    %469 = vector.broadcast %cst_174 : f32 to vector<16x1xf32>
    %470 = arith.divf %468, %469 : vector<16x1xf32>
    %cst_175 = arith.constant 9.99999997E-7 : f32
    %471 = vector.broadcast %cst_175 : f32 to vector<16x1xf32>
    %472 = arith.addf %470, %471 : vector<16x1xf32>
    %473 = math.rsqrt %472 : vector<16x1xf32>
    %474 = vector.broadcast %473 : vector<16x1xf32> to vector<16x32xf32>
    %475 = arith.mulf %465, %474 : vector<16x32xf32>
    %476 = vector.broadcast %275 : vector<1x32xf32> to vector<16x32xf32>
    %477 = arith.mulf %475, %476 : vector<16x32xf32>
    %478 = vector.broadcast %277 : vector<1x32xf32> to vector<16x32xf32>
    %479 = arith.addf %477, %478 : vector<16x32xf32>
    %cst_176 = arith.constant dense<0.000000e+00> : vector<16x128xf32>
    %480 = tpu.matmul %479, %291, %cst_176 {dimension_numbers = #tpu.dot_dimension_numbers<[1], [0], [0], [1], [0, 0, 1, 1], [], []>} : vector<16x32xf32>, vector<32x128xf32>, vector<16x128xf32> -> vector<16x128xf32>
    %481 = vector.broadcast %283 : vector<1x128xf32> to vector<16x128xf32>
    %482 = arith.addf %480, %481 : vector<16x128xf32>
    %cst_177 = arith.constant 5.000000e-01 : f32
    %483 = vector.broadcast %cst_177 : f32 to vector<16x128xf32>
    %484 = arith.mulf %483, %482 : vector<16x128xf32>
    %cst_178 = arith.constant 0.707106769 : f32
    %485 = vector.broadcast %cst_178 : f32 to vector<16x128xf32>
    %486 = arith.mulf %482, %485 : vector<16x128xf32>
    %487 = math.absf %486 : vector<16x128xf32>
    %cst_179 = arith.constant 0.327591091 : f32
    %488 = vector.broadcast %cst_179 : f32 to vector<16x128xf32>
    %489 = arith.mulf %488, %487 : vector<16x128xf32>
    %cst_180 = arith.constant 1.000000e+00 : f32
    %490 = vector.broadcast %cst_180 : f32 to vector<16x128xf32>
    %491 = arith.addf %490, %489 : vector<16x128xf32>
    %cst_181 = arith.constant 1.000000e+00 : f32
    %492 = vector.broadcast %cst_181 : f32 to vector<16x128xf32>
    %493 = arith.divf %492, %491 : vector<16x128xf32>
    %cst_182 = arith.constant 1.06140542 : f32
    %494 = vector.broadcast %cst_182 : f32 to vector<16x128xf32>
    %495 = arith.mulf %494, %493 : vector<16x128xf32>
    %cst_183 = arith.constant -1.45315206 : f32
    %496 = vector.broadcast %cst_183 : f32 to vector<16x128xf32>
    %497 = arith.addf %495, %496 : vector<16x128xf32>
    %498 = arith.mulf %497, %493 : vector<16x128xf32>
    %cst_184 = arith.constant 1.42141378 : f32
    %499 = vector.broadcast %cst_184 : f32 to vector<16x128xf32>
    %500 = arith.addf %498, %499 : vector<16x128xf32>
    %501 = arith.mulf %500, %493 : vector<16x128xf32>
    %cst_185 = arith.constant -0.284496725 : f32
    %502 = vector.broadcast %cst_185 : f32 to vector<16x128xf32>
    %503 = arith.addf %501, %502 : vector<16x128xf32>
    %504 = arith.mulf %503, %493 : vector<16x128xf32>
    %cst_186 = arith.constant 0.254829586 : f32
    %505 = vector.broadcast %cst_186 : f32 to vector<16x128xf32>
    %506 = arith.addf %504, %505 : vector<16x128xf32>
    %507 = arith.mulf %506, %493 : vector<16x128xf32>
    %cst_187 = arith.constant 0.000000e+00 : f32
    %508 = vector.broadcast %cst_187 : f32 to vector<16x128xf32>
    %509 = arith.subf %508, %487 : vector<16x128xf32>
    %510 = arith.mulf %509, %487 : vector<16x128xf32>
    %511 = math.exp %510 : vector<16x128xf32>
    %512 = arith.mulf %507, %511 : vector<16x128xf32>
    %cst_188 = arith.constant 1.000000e+00 : f32
    %513 = vector.broadcast %cst_188 : f32 to vector<16x128xf32>
    %514 = arith.subf %513, %512 : vector<16x128xf32>
    %cst_189 = arith.constant 0.000000e+00 : f32
    %515 = vector.broadcast %cst_189 : f32 to vector<16x128xf32>
    %516 = arith.cmpf oge, %486, %515 : vector<16x128xf32>
    %cst_190 = arith.constant 0.000000e+00 : f32
    %517 = vector.broadcast %cst_190 : f32 to vector<16x128xf32>
    %518 = arith.subf %517, %514 : vector<16x128xf32>
    %519 = arith.select %516, %514, %518 : vector<16x128xi1>, vector<16x128xf32>
    %cst_191 = arith.constant 1.000000e+00 : f32
    %520 = vector.broadcast %cst_191 : f32 to vector<16x128xf32>
    %521 = arith.addf %520, %519 : vector<16x128xf32>
    %522 = arith.mulf %484, %521 : vector<16x128xf32>
    %cst_192 = arith.constant dense<0.000000e+00> : vector<16x32xf32>
    %523 = tpu.matmul %522, %293, %cst_192 {dimension_numbers = #tpu.dot_dimension_numbers<[1], [1], [0], [0], [0, 0, 1, 0], [], []>} : vector<16x128xf32>, vector<32x128xf32>, vector<16x32xf32> -> vector<16x32xf32>
    %524 = vector.broadcast %285 : vector<1x32xf32> to vector<16x32xf32>
    %525 = arith.addf %523, %524 : vector<16x32xf32>
    %526 = arith.addf %459, %525 : vector<16x32xf32>
    %527 = vector.extract_strided_slice %526 {offsets = [0, 0], sizes = [1, 32], strides = [1, 1]} : vector<16x32xf32> to vector<1x32xf32>
    %528 = vector.extract_strided_slice %526 {offsets = [8, 0], sizes = [1, 32], strides = [1, 1]} : vector<16x32xf32> to vector<1x32xf32>
    %529 = tpu.concatenate %527, %528 in 0 : vector<1x32xf32>, vector<1x32xf32> -> vector<2x32xf32>
    %c33 = arith.constant 33 : index
    %c0_193 = arith.constant 0 : index
    %530 = vector.load %arg6[%c33, %c0_193] : memref<48x256xf32, #tpu.memory_space<vmem>>, vector<1x32xf32>
    %c34 = arith.constant 34 : index
    %c0_194 = arith.constant 0 : index
    %531 = vector.load %arg6[%c34, %c0_194] : memref<48x256xf32, #tpu.memory_space<vmem>>, vector<1x32xf32>
    %cst_195 = arith.constant dense<0.000000e+00> : vector<2xf32>
    %532 = vector.multi_reduction <add>, %529, %cst_195 [1] : vector<2x32xf32> to vector<2xf32>
    %533 = vector.shape_cast %532 : vector<2xf32> to vector<2x1xf32>
    %cst_196 = arith.constant 3.200000e+01 : f32
    %534 = vector.broadcast %cst_196 : f32 to vector<2x1xf32>
    %535 = arith.divf %533, %534 : vector<2x1xf32>
    %536 = vector.broadcast %535 : vector<2x1xf32> to vector<2x32xf32>
    %537 = arith.subf %529, %536 : vector<2x32xf32>
    %538 = arith.mulf %537, %537 : vector<2x32xf32>
    %cst_197 = arith.constant dense<0.000000e+00> : vector<2xf32>
    %539 = vector.multi_reduction <add>, %538, %cst_197 [1] : vector<2x32xf32> to vector<2xf32>
    %540 = vector.shape_cast %539 : vector<2xf32> to vector<2x1xf32>
    %cst_198 = arith.constant 3.200000e+01 : f32
    %541 = vector.broadcast %cst_198 : f32 to vector<2x1xf32>
    %542 = arith.divf %540, %541 : vector<2x1xf32>
    %cst_199 = arith.constant 9.99999997E-7 : f32
    %543 = vector.broadcast %cst_199 : f32 to vector<2x1xf32>
    %544 = arith.addf %542, %543 : vector<2x1xf32>
    %545 = math.rsqrt %544 : vector<2x1xf32>
    %546 = vector.broadcast %545 : vector<2x1xf32> to vector<2x32xf32>
    %547 = arith.mulf %537, %546 : vector<2x32xf32>
    %548 = vector.broadcast %530 : vector<1x32xf32> to vector<2x32xf32>
    %549 = arith.mulf %547, %548 : vector<2x32xf32>
    %550 = vector.broadcast %531 : vector<1x32xf32> to vector<2x32xf32>
    %551 = arith.addf %549, %550 : vector<2x32xf32>
    %c0_200 = arith.constant 0 : index
    %c0_201 = arith.constant 0 : index
    %552 = vector.load %arg6[%c0_200, %c0_201] : memref<48x256xf32, #tpu.memory_space<vmem>>, vector<32x256xf32>
    %c32_202 = arith.constant 32 : index
    %c0_203 = arith.constant 0 : index
    %553 = vector.load %arg6[%c32_202, %c0_203] : memref<48x256xf32, #tpu.memory_space<vmem>>, vector<1x256xf32>
    %cst_204 = arith.constant dense<0.000000e+00> : vector<2x256xf32>
    %554 = tpu.matmul %551, %552, %cst_204 {dimension_numbers = #tpu.dot_dimension_numbers<[1], [0], [0], [1], [0, 0, 1, 1], [], []>} : vector<2x32xf32>, vector<32x256xf32>, vector<2x256xf32> -> vector<2x256xf32>
    %555 = vector.broadcast %553 : vector<1x256xf32> to vector<2x256xf32>
    %556 = arith.addf %554, %555 : vector<2x256xf32>
    %cst_205 = arith.constant 0.000000e+00 : f32
    %557 = vector.broadcast %cst_205 : f32 to vector<2x96xf32>
    %558 = tpu.concatenate %556, %551, %557 in 1 : vector<2x256xf32>, vector<2x32xf32>, vector<2x96xf32> -> vector<2x384xf32>
    %c0_206 = arith.constant 0 : index
    %c0_207 = arith.constant 0 : index
    %c0_208 = arith.constant 0 : index
    %559 = vector.load %arg7[%c0_206, %c0_207, %c0_208] : memref<1x2x384xf32, #tpu.memory_space<vmem>>, vector<1x2x384xf32>
    %560 = vector.shape_cast %559 : vector<1x2x384xf32> to vector<2x384xf32>
    %561 = vector.shape_cast %558 : vector<2x384xf32> to vector<1x2x384xf32>
    tpu.vector_store %arg7[%c0_206, %c0_207, %c0_208], %561 {strides = array<i32>} : memref<1x2x384xf32, #tpu.memory_space<vmem>>, vector<1x2x384xf32>,
    return
  }
  func.func @transform_0(%arg0: i32) -> (i32, i32, i32) {
    %c0_i32 = arith.constant 0 : i32
    %c0_i32_0 = arith.constant 0 : i32
    %c0_i32_1 = arith.constant 0 : i32
    return %arg0, %c0_i32, %c0_i32_0 : i32, i32, i32
  }
  func.func @transform_1(%arg0: i32) -> (i32, i32) {
    %c0_i32 = arith.constant 0 : i32
    %c0_i32_0 = arith.constant 0 : i32
    %c0_i32_1 = arith.constant 0 : i32
    return %c0_i32, %c0_i32_0 : i32, i32
  }
  func.func @transform_2(%arg0: i32) -> (i32, i32, i32) {
    %c0_i32 = arith.constant 0 : i32
    %c0_i32_0 = arith.constant 0 : i32
    %c0_i32_1 = arith.constant 0 : i32
    %c0_i32_2 = arith.constant 0 : i32
    return %c0_i32, %c0_i32_0, %c0_i32_1 : i32, i32, i32
  }
  func.func @transform_3(%arg0: i32) -> (i32, i32, i32) {
    %c0_i32 = arith.constant 0 : i32
    %c0_i32_0 = arith.constant 0 : i32
    %c0_i32_1 = arith.constant 0 : i32
    %c0_i32_2 = arith.constant 0 : i32
    return %c0_i32, %c0_i32_0, %c0_i32_1 : i32, i32, i32
  }
  func.func @transform_4(%arg0: i32) -> (i32, i32, i32) {
    %c0_i32 = arith.constant 0 : i32
    %c0_i32_0 = arith.constant 0 : i32
    %c0_i32_1 = arith.constant 0 : i32
    %c0_i32_2 = arith.constant 0 : i32
    return %c0_i32, %c0_i32_0, %c0_i32_1 : i32, i32, i32
  }
  func.func @transform_5(%arg0: i32) -> (i32, i32) {
    %c0_i32 = arith.constant 0 : i32
    %c0_i32_0 = arith.constant 0 : i32
    %c0_i32_1 = arith.constant 0 : i32
    return %c0_i32, %c0_i32_0 : i32, i32
  }
  func.func @transform_6(%arg0: i32) -> (i32, i32, i32) {
    %c0_i32 = arith.constant 0 : i32
    %c0_i32_0 = arith.constant 0 : i32
    %c0_i32_1 = arith.constant 0 : i32
    return %arg0, %c0_i32, %c0_i32_0 : i32, i32, i32
  }
}

</mosaic_0001>

<bundles_post_ra>
// kernel: vit_forward.1
= control target key start
LH: loop header
LB: loop body
LE: loop exit
PB: predicated region body
PF: predicated region fallthrough
CT: control target
= control target key end

     0   :  { %vm385_vm0 = vcmask 261120   ;;  %vm4890_vm1 = vmmov 0   ;;  %s4891_s11 = smov 96   ;;  %s4892_s12 = smov 88   ;;  %vm513_vm2 = vcmask 64512   ;;  %vm1183_vm4 = vcmask 130048   ;;  %s5873_s1 = inlined_call_operand.vmem [shape: f32[768,32], index: 1, kind: input, shape index: {}]   ;;  %s5874_s0 = inlined_call_operand.vmem [shape: f32[1,16,768], index: 0, kind: input, shape index: {}]   ;;  %s5875_s5 = inlined_call_operand.vmem [shape: f32[48,256], index: 5, kind: input, shape index: {}]   ;;  %s5876_s2 = inlined_call_operand.vmem [shape: f32[2,64,96], index: 2, kind: input, shape index: {}]   ;;  %s5877_s4 = inlined_call_operand.vmem [shape: f32[2,8,128], index: 4, kind: input, shape index: {}]   ;;  %s5878_s3 = inlined_call_operand.vmem [shape: f32[2,64,128], index: 3, kind: input, shape index: {}]   ;;  %s5879_s6 = inlined_call_operand.vmem [shape: f32[1,2,384], index: 6, kind: output, shape index: {}]  }
   0x1   :  { %v67_v0 = vld [vmem:[%s5873_s1 + $0xf8] sm:$0xff]  ;;  %v66_v2 = vld [vmem:[%s5873_s1 + $0xf0] sm:$0xff]  ;;  %v65_v6 = vld [vmem:[%s5873_s1 + $0xe8] sm:$0xff]  ;;  %s4894_s13 = smov 64   ;;  %s4895_s14 = smov 120   ;;  %vm1185_vm5 = vcmask 195584  }
   0x2   :  { %v51_v1 = vld [vmem:[%s5873_s1 + $0x78] sm:$0xff]  ;;  %4299 = vmatprep.subr.mxu0 %v67_v0  ;;  %v50_v4 = vld [vmem:[%s5873_s1 + $0x70] sm:$0xff]  ;;  %v49_v8 = vld [vmem:[%s5873_s1 + $0x68] sm:$0xff]  ;;  %s4896_s15 = smov 56   ;;  %s4897_s16 = smov 112   ;;  %vm4056_vm10 = vcmask 1040384  }
   0x3   :  { %v99_v3 = vld [vmem:[%s5873_s1 + $0x1f8] sm:$0xff]  ;;  %4300 = vmatpush3.msra.mxu0 %v51_v1  ;;  %v98_v7 = vld [vmem:[%s5873_s1 + $0x1f0] sm:$0xff]  ;;  %v97_v10 = vld [vmem:[%s5873_s1 + $0x1e8] sm:$0xff]  ;;  %s4898_s17 = smov 80   ;;  %s4899_s18 = smov 72   ;;  %vm4060_vm11 = vcmask 254976  }
   0x4   :  { %v83_v5 = vld [vmem:[%s5873_s1 + $0x178] sm:$0xff]  ;;  %4337 = vmatprep.subr.mxu1 %v99_v3  ;;  %4301 = vmatprep.subr.mxu0 %v66_v2  ;;  %v82_v9 = vld [vmem:[%s5873_s1 + $0x170] sm:$0xff]  ;;  %v64_v11 = vld [vmem:[%s5873_s1 + $0xe0] sm:$0xff]  ;;  %s4900_s19 = smov 104   ;;  %s4901_s20 = smov 48  }
   0x5   :  { %4338 = vmatpush3.msra.mxu1 %v83_v5  ;;  %4302 = vmatpush3.msra.mxu0 %v50_v4  ;;  %v81_v12 = vld [vmem:[%s5873_s1 + $0x168] sm:$0xff]  ;;  %v48_v13 = vld [vmem:[%s5873_s1 + $0x60] sm:$0xff]  ;;  %v63_v15 = vld [vmem:[%s5873_s1 + $0xd8] sm:$0xff]  ;;  %s4903_s21 = smov 16   ;;  %s4905_s26 = smov 24  }
   0x6   :  { %4339 = vmatprep.subr.mxu1 %v98_v7  ;;  %4303 = vmatprep.subr.mxu0 %v65_v6  ;;  %v96_v14 = vld [vmem:[%s5873_s1 + $0x1e0] sm:$0xff]  ;;  %v47_v17 = vld [vmem:[%s5873_s1 + $0x58] sm:$0xff]  ;;  %v62_v19 = vld [vmem:[%s5873_s1 + $0xd0] sm:$0xff] }
   0x7   :  { %4340 = vmatpush3.msra.mxu1 %v82_v9  ;;  %4304 = vmatpush3.msra.mxu0 %v49_v8  ;;  %v80_v16 = vld [vmem:[%s5873_s1 + $0x160] sm:$0xff]  ;;  %v95_v18 = vld [vmem:[%s5873_s1 + $0x1d8] sm:$0xff]  ;;  %v46_v21 = vld [vmem:[%s5873_s1 + $0x50] sm:$0xff] }
   0x8   :  { %4341 = vmatprep.subr.mxu1 %v97_v10  ;;  %4305 = vmatprep.subr.mxu0 %v64_v11  ;;  %v79_v20 = vld [vmem:[%s5873_s1 + $0x158] sm:$0xff]  ;;  %v94_v22 = vld [vmem:[%s5873_s1 + $0x1d0] sm:$0xff]  ;;  %v61_v23 = vld [vmem:[%s5873_s1 + $0xc8] sm:$0xff] }
   0x9   :  { %4342 = vmatpush3.msra.mxu1 %v81_v12  ;;  %4306 = vmatpush3.msra.mxu0 %v48_v13  ;;  %v78_v24 = vld [vmem:[%s5873_s1 + $0x150] sm:$0xff]  ;;  %v45_v25 = vld [vmem:[%s5873_s1 + $0x48] sm:$0xff]  ;;  %v60_v27 = vld [vmem:[%s5873_s1 + $0xc0] sm:$0xff] }
   0xa   :  { %4343 = vmatprep.subr.mxu1 %v96_v14  ;;  %4307 = vmatprep.subr.mxu0 %v63_v15  ;;  %v93_v26 = vld [vmem:[%s5873_s1 + $0x1c8] sm:$0xff]  ;;  %v44_v29 = vld [vmem:[%s5873_s1 + $0x40] sm:$0xff]  ;;  %v59_v31 = vld [vmem:[%s5873_s1 + $0xb8] sm:$0xff] }
   0xb   :  { %4344 = vmatpush3.msra.mxu1 %v80_v16  ;;  %4308 = vmatpush3.msra.mxu0 %v47_v17  ;;  %v77_v28 = vld [vmem:[%s5873_s1 + $0x148] sm:$0xff]  ;;  %v92_v30 = vld [vmem:[%s5873_s1 + $0x1c0] sm:$0xff]  ;;  %v43_v33 = vld [vmem:[%s5873_s1 + $0x38] sm:$0xff] }
   0xc   :  { %4345 = vmatprep.subr.mxu1 %v95_v18  ;;  %4309 = vmatprep.subr.mxu0 %v62_v19  ;;  %v76_v32 = vld [vmem:[%s5873_s1 + $0x140] sm:$0xff]  ;;  %v91_v34 = vld [vmem:[%s5873_s1 + $0x1b8] sm:$0xff]  ;;  %v58_v35 = vld [vmem:[%s5873_s1 + $0xb0] sm:$0xff] }
   0xd   :  { %4346 = vmatpush3.msra.mxu1 %v79_v20  ;;  %4310 = vmatpush3.msra.mxu0 %v46_v21  ;;  %v75_v36 = vld [vmem:[%s5873_s1 + $0x138] sm:$0xff]  ;;  %v42_v37 = vld [vmem:[%s5873_s1 + $0x30] sm:$0xff]  ;;  %v57_v39 = vld [vmem:[%s5873_s1 + $0xa8] sm:$0xff] }
   0xe   :  { %4347 = vmatprep.subr.mxu1 %v94_v22  ;;  %4311 = vmatprep.subr.mxu0 %v61_v23  ;;  %v90_v38 = vld [vmem:[%s5873_s1 + $0x1b0] sm:$0xff]  ;;  %v41_v41 = vld [vmem:[%s5873_s1 + $0x28] sm:$0xff]  ;;  %v56_v43 = vld [vmem:[%s5873_s1 + $0xa0] sm:$0xff] }
   0xf   :  { %4348 = vmatpush3.msra.mxu1 %v78_v24  ;;  %4312 = vmatpush3.msra.mxu0 %v45_v25  ;;  %v74_v40 = vld [vmem:[%s5873_s1 + $0x130] sm:$0xff]  ;;  %v89_v42 = vld [vmem:[%s5873_s1 + $0x1a8] sm:$0xff]  ;;  %v40_v45 = vld [vmem:[%s5873_s1 + $0x20] sm:$0xff] }
  0x10   :  { %4349 = vmatprep.subr.mxu1 %v93_v26  ;;  %4313 = vmatprep.subr.mxu0 %v60_v27  ;;  %v73_v44 = vld [vmem:[%s5873_s1 + $0x128] sm:$0xff]  ;;  %v88_v46 = vld [vmem:[%s5873_s1 + $0x1a0] sm:$0xff]  ;;  %v55_v47 = vld [vmem:[%s5873_s1 + $0x98] sm:$0xff] }
  0x11   :  { %4350 = vmatpush3.msra.mxu1 %v77_v28  ;;  %4314 = vmatpush3.msra.mxu0 %v44_v29  ;;  %v72_v48 = vld [vmem:[%s5873_s1 + $0x120] sm:$0xff]  ;;  %v39_v49 = vld [vmem:[%s5873_s1 + $0x18] sm:$0xff]  ;;  %v54_v51 = vld [vmem:[%s5873_s1 + $0x90] sm:$0xff] }
  0x12   :  { %4351 = vmatprep.subr.mxu1 %v92_v30  ;;  %4315 = vmatprep.subr.mxu0 %v59_v31  ;;  %v87_v50 = vld [vmem:[%s5873_s1 + $0x198] sm:$0xff]  ;;  %v38_v53 = vld [vmem:[%s5873_s1 + $0x10] sm:$0xff]  ;;  %v53_v55 = vld [vmem:[%s5873_s1 + $0x88] sm:$0xff] }
  0x13   :  { %4352 = vmatpush3.msra.mxu1 %v76_v32  ;;  %4316 = vmatpush3.msra.mxu0 %v43_v33  ;;  %v71_v52 = vld [vmem:[%s5873_s1 + $0x118] sm:$0xff]  ;;  %v86_v54 = vld [vmem:[%s5873_s1 + $0x190] sm:$0xff]  ;;  %v37_v57 = vld [vmem:[%s5873_s1 + $0x8] sm:$0xff] }
  0x14   :  { %4353 = vmatprep.subr.mxu1 %v91_v34  ;;  %4317 = vmatprep.subr.mxu0 %v58_v35  ;;  %v70_v56 = vld [vmem:[%s5873_s1 + $0x110] sm:$0xff]  ;;  %v85_v58 = vld [vmem:[%s5873_s1 + $0x188] sm:$0xff]  ;;  %v52_v59 = vld [vmem:[%s5873_s1 + $0x80] sm:$0xff] }
  0x15   :  { %4354 = vmatpush3.msra.mxu1 %v75_v36  ;;  %4318 = vmatpush3.msra.mxu0 %v42_v37  ;;  %v25_v60 = vld [vmem:[%s5874_s0 + $0x8] sm:$0xff]  ;;  %v36_v61 = vld [vmem:[%s5873_s1] sm:$0xff]  ;;  %v131_v1 = vld [vmem:[%s5873_s1 + $0x2f8] sm:$0xff] }
  0x16   :  { %4355 = vmatprep.subr.mxu1 %v90_v38  ;;  %4319 = vmatprep.subr.mxu0 %v57_v39  ;;  %v69_v62 = vld [vmem:[%s5873_s1 + $0x108] sm:$0xff]  ;;  %v24_v63 = vld [vmem:[%s5874_s0] sm:$0xff]  ;;  %v27_v3 = vld [vmem:[%s5874_s0 + $0x18] sm:$0xff] }
  0x17   :  { %4356 = vmatpush3.msra.mxu1 %v74_v40  ;;  %4320 = vmatpush3.msra.mxu0 %v41_v41  ;;  %v84_v0 = vld [vmem:[%s5873_s1 + $0x180] sm:$0xff]  ;;  %v115_v4 = vld [vmem:[%s5873_s1 + $0x278] sm:$0xff]  ;;  %v26_v5 = vld [vmem:[%s5874_s0 + $0x10] sm:$0xff] }
  0x18   :  { %4357 = vmatprep.subr.mxu1 %v89_v42  ;;  %4321 = vmatprep.subr.mxu0 %v56_v43  ;;  %v68_v2 = vld [vmem:[%s5873_s1 + $0x100] sm:$0xff]  ;;  %v130_v6 = vld [vmem:[%s5873_s1 + $0x2f0] sm:$0xff]  ;;  %v31_v8 = vld [vmem:[%s5874_s0 + $0x38] sm:$0xff] }
  0x19   :  { %4358 = vmatpush3.msra.mxu1 %v73_v44  ;;  %4322 = vmatpush3.msra.mxu0 %v40_v45  ;;  %v114_v7 = vld [vmem:[%s5873_s1 + $0x270] sm:$0xff]  ;;  %v129_v9 = vld [vmem:[%s5873_s1 + $0x2e8] sm:$0xff]  ;;  %v128_v13 = vld [vmem:[%s5873_s1 + $0x2e0] sm:$0xff] }
  0x1a   :  { %4359 = vmatprep.subr.mxu1 %v88_v46  ;;  %4323 = vmatprep.subr.mxu0 %v55_v47  ;;  %v30_v10 = vld [vmem:[%s5874_s0 + $0x30] sm:$0xff]  ;;  %v113_v11 = vld [vmem:[%s5873_s1 + $0x268] sm:$0xff]  ;;  %v32_v14 = vld [vmem:[%s5874_s0 + $0x40] sm:$0xff] }
  0x1b   :  { %4360 = vmatpush3.msra.mxu1 %v72_v48  ;;  %4324 = vmatpush3.msra.mxu0 %v39_v49  ;;  %v33_v12 = vld [vmem:[%s5874_s0 + $0x48] sm:$0xff]  ;;  %v112_v15 = vld [vmem:[%s5873_s1 + $0x260] sm:$0xff]  ;;  %v127_v17 = vld [vmem:[%s5873_s1 + $0x2d8] sm:$0xff] }
  0x1c   :  { %4361 = vmatprep.subr.mxu1 %v87_v50  ;;  %4325 = vmatprep.subr.mxu0 %v54_v51  ;;  %v29_v16 = vld [vmem:[%s5874_s0 + $0x28] sm:$0xff]  ;;  %v111_v18 = vld [vmem:[%s5873_s1 + $0x258] sm:$0xff]  ;;  %v126_v19 = vld [vmem:[%s5873_s1 + $0x2d0] sm:$0xff] }
  0x1d   :  { %4362 = vmatpush3.msra.mxu1 %v71_v52  ;;  %4326 = vmatpush3.msra.mxu0 %v38_v53  ;;  %v110_v20 = vld [vmem:[%s5873_s1 + $0x250] sm:$0xff]  ;;  %v125_v21 = vld [vmem:[%s5873_s1 + $0x2c8] sm:$0xff]  ;;  %v124_v23 = vld [vmem:[%s5873_s1 + $0x2c0] sm:$0xff] }
  0x1e   :  { %4363 = vmatprep.subr.mxu1 %v86_v54  ;;  %4327 = vmatprep.subr.mxu0 %v53_v55  ;;  %v109_v22 = vld [vmem:[%s5873_s1 + $0x248] sm:$0xff]  ;;  %v108_v24 = vld [vmem:[%s5873_s1 + $0x240] sm:$0xff]  ;;  %v123_v25 = vld [vmem:[%s5873_s1 + $0x2b8] sm:$0xff] }
  0x1f   :  { %4364 = vmatpush3.msra.mxu1 %v70_v56  ;;  %4328 = vmatpush3.msra.mxu0 %v37_v57  ;;  %v107_v26 = vld [vmem:[%s5873_s1 + $0x238] sm:$0xff]  ;;  %v122_v27 = vld [vmem:[%s5873_s1 + $0x2b0] sm:$0xff]  ;;  %v121_v29 = vld [vmem:[%s5873_s1 + $0x2a8] sm:$0xff] }
  0x20   :  { %4365 = vmatprep.subr.mxu1 %v85_v58  ;;  %4329 = vmatprep.subr.mxu0 %v52_v59  ;;  %v106_v28 = vld [vmem:[%s5873_s1 + $0x230] sm:$0xff]  ;;  %v105_v30 = vld [vmem:[%s5873_s1 + $0x228] sm:$0xff]  ;;  %v120_v31 = vld [vmem:[%s5873_s1 + $0x2a0] sm:$0xff] }
  0x21   :  { %196 = vmatprep.mubr.f32.mxu0 %v25_v60  ;;  %4330 = vmatpush3.msra.mxu0 %v36_v61  ;;  %v104_v32 = vld [vmem:[%s5873_s1 + $0x220] sm:$0xff]  ;;  %v119_v33 = vld [vmem:[%s5873_s1 + $0x298] sm:$0xff]  ;;  %v118_v35 = vld [vmem:[%s5873_s1 + $0x290] sm:$0xff] }
  0x22   :  { %4366 = vmatpush3.msra.mxu1 %v69_v62  ;;  %197 = vmatmul.mubr.f32.vlgmr.msra.gmra.mxu0 %v24_v63  ;;  %v103_v34 = vld [vmem:[%s5873_s1 + $0x218] sm:$0xff]  ;;  %v102_v36 = vld [vmem:[%s5873_s1 + $0x210] sm:$0xff]  ;;  %v117_v37 = vld [vmem:[%s5873_s1 + $0x288] sm:$0xff] }
  0x23   :  { %4367 = vmatprep.subr.mxu1 %v84_v0  ;;  %4375 = vmatprep.subr.mxu0 %v131_v1  ;;  %v101_v38 = vld [vmem:[%s5873_s1 + $0x208] sm:$0xff]  ;;  %v116_v39 = vld [vmem:[%s5873_s1 + $0x280] sm:$0xff]  ;;  %v35_v42 = vld [vmem:[%s5874_s0 + $0x58] sm:$0xff] }
  0x24   :  { %4368 = vmatpush3.msra.mxu1 %v68_v2  ;;  %271 = vmatprep.mubr.f32.mxu1 %v27_v3  ;;  %v100_v40 = vld [vmem:[%s5873_s1 + $0x200] sm:$0xff]  ;;  %v34_v43 = vld [vmem:[%s5874_s0 + $0x50] sm:$0xff]  ;;  %s4902_s1 = smov 40  }
  0x25   :  { %4376 = vmatpush3.msra.mxu0 %v115_v4  ;;  %272 = vmatmul.mubr.f32.vlgmr.msra.gmra.mxu1 %v26_v5  ;;  %v28_v41 = vld [vmem:[%s5874_s0 + $0x20] sm:$0xff]  ;;  %v23_v50 = vld [vmem:[%s5875_s5 + $0x50] sm:$0xff]  ;;  %s4904_s0 = smov 8  }
  0x26   :  { %4377 = vmatprep.subr.mxu0 %v130_v6  ;;  %201 = vmatprep.mubr.f32.mxu0 %v31_v8 }
  0x27   :  { %4378 = vmatpush3.msra.mxu0 %v114_v7  ;;  %276 = vmatprep.mubr.f32.mxu1 %v33_v12 }
  0x28   :  { %4379 = vmatprep.subr.mxu0 %v129_v9  ;;  %202 = vmatmul.mubr.f32.gmra.mxu0 %v30_v10 }
  0x29   :  { %4380 = vmatpush3.msra.mxu0 %v113_v11  ;;  %277 = vmatmul.mubr.f32.gmra.mxu1 %v32_v14 }
  0x2a   :  { %4381 = vmatprep.subr.mxu0 %v128_v13  ;;  %346 = vmatprep.mubr.f32.mxu0 %v29_v16 }
  0x2b   :  { %4382 = vmatpush3.msra.mxu0 %v112_v15 }
  0x2c   :  { %4383 = vmatprep.subr.mxu0 %v127_v17  ;;  %v372_v17 = vld [vmem:[%s5876_s2 + $0x18] sm:$0xff] }
  0x2d   :  { %4384 = vmatpush3.msra.mxu0 %v111_v18  ;;  %v371_v18 = vld [vmem:[%s5876_s2 + $0x10] sm:$0xff]  ;;  %4525 = vmatprep.subr.mxu1 %v372_v17 }
  0x2e   :  { %4385 = vmatprep.subr.mxu0 %v126_v19  ;;  %4526 = vmatpush3.msra.mxu1 %v372_v17  ;;  %v370_v19 = vld [vmem:[%s5876_s2 + $0x8] sm:$0xff] }
  0x2f   :  { %4386 = vmatpush3.msra.mxu0 %v110_v20  ;;  %4527 = vmatprep.subr.mxu1 %v371_v18  ;;  %v369_v20 = vld [vmem:[%s5876_s2] sm:$0xff] }
  0x30   :  { %4387 = vmatprep.subr.mxu0 %v125_v21  ;;  %4528 = vmatpush3.msra.mxu1 %v371_v18 }
  0x31   :  { %4388 = vmatpush3.msra.mxu0 %v109_v22  ;;  %4529 = vmatprep.subr.mxu1 %v370_v19 }
  0x32   :  { %4389 = vmatprep.subr.mxu0 %v124_v23  ;;  %4530 = vmatpush3.msra.mxu1 %v370_v19 }
  0x33   :  { %4390 = vmatpush3.msra.mxu0 %v108_v24  ;;  %4531 = vmatprep.subr.mxu1 %v369_v20 }
  0x34   :  { %4391 = vmatprep.subr.mxu0 %v123_v25  ;;  %4532 = vmatpush3.msra.mxu1 %v369_v20 }
  0x35   :  { %4392 = vmatpush3.msra.mxu0 %v107_v26 }
  0x36   :  { %4393 = vmatprep.subr.mxu0 %v122_v27 }
  0x37   :  { %4394 = vmatpush3.msra.mxu0 %v106_v28  ;;  %v4197_v28 = vld [vmem:[%s5877_s4] ss:$0 sm:$0xff] }
  0x38   :  { %4395 = vmatprep.subr.mxu0 %v121_v29 }
  0x39   :  { %4396 = vmatpush3.msra.mxu0 %v105_v30  ;;  %v4198_v30 = vld [vmem:[%s5877_s4 + $0x1] ss:$0 sm:$0xff] }
  0x3a   :  { %4397 = vmatprep.subr.mxu0 %v120_v31 }
  0x3b   :  { %4398 = vmatpush3.msra.mxu0 %v104_v32 }
  0x3c   :  { %4399 = vmatprep.subr.mxu0 %v119_v33 }
  0x3d   :  { %4400 = vmatpush3.msra.mxu0 %v103_v34 }
  0x3e   :  { %4401 = vmatprep.subr.mxu0 %v118_v35 }
  0x3f   :  { %4402 = vmatpush3.msra.mxu0 %v102_v36 }
  0x40   :  { %4403 = vmatprep.subr.mxu0 %v117_v37  ;;  %v4889_v37 = vmov 0.0  }
  0x41   :  { %4404 = vmatpush3.msra.mxu0 %v101_v38  ;;  %4536 = vmatprep.subr.mxu1 %v4889_v37  ;;  %v4199_v38 = vld [vmem:[%s5877_s4 + $0x4] ss:$0 sm:$0xff] }
  0x42   :  { %4405 = vmatprep.subr.mxu0 %v116_v39 }
  0x43   :  { %4406 = vmatpush3.msra.mxu0 %v100_v40 }
  0x44   :  { %347 = vmatmul.mubr.f32.vlgmr.msra.gmra.mxu0 %v28_v41  ;;  %4571 = vmatprep.subr.mxu0 %v4889_v37 }
  0x45   :  { %351 = vmatprep.mubr.f32.mxu0 %v35_v42 }
  0x48   :  { %352 = vmatmul.mubr.f32.gmra.mxu0 %v34_v43 }
  0x49   :  { %4573 = vmatprep.mubr.msk.f32.mxu0 %vm4890_vm1, %v4889_v37 }
  0xe2   :  { %v4331_v44 = vpop.f32.mrf.mxu0 }
  0xe4   :  { %v4332_v45 = vpop.f32.mrf.mxu0 }
  0xe5   :  { %v4369_v46 = vpop.f32.mrf.mxu1  ;;  %v4333_v49 = vadd.f32 %v4332_v45, %v4331_v44  ;;  %v357_v44 = vlaneseq }
  0xe7   :  { %v4370_v48 = vpop.f32.mrf.mxu1  ;;  %v199_v53 = vadd.f32 %v4333_v49, %v23_v50  ;;  %v358_v45 = vand.u32 127, %v357_v44 }
  0xe8   :  { %v4334_v47 = vpop.f32.mrf.mxu0  ;;  %v4371_v54 = vadd.f32 %v4370_v48, %v4369_v46  ;;  %v4893_v46 = vmov -1e+30  }
  0xe9   :  { %v4372_v52 = vpop.f32.mrf.mxu1  ;;  %vm359_vm3 = vcmp.lt.s32.totalorder %v358_v45, 5 }
  0xea   :  { %v4335_v51 = vpop.f32.mrf.mxu0  ;;  %v274_v59 = vadd.f32 %v4371_v54, %v199_v53 }
  0xeb   :  { %v4336_v55 = vadd.f32 %v4335_v51, %v4334_v47  ;;  %v4373_v56 = vpop.f32.mrf.mxu1  ;;  %v5325_v47 = vsel %vm359_vm3, 0.0, %v4893_v46 }
  0xec   :  { %v4374_v61 = vadd.f32 %v4373_v56, %v4372_v52 }
  0xed   :  { %v204_v60 = vadd.f32 %v4336_v55, %v23_v50 }
  0xef   :  { %v279_v2 = vadd.f32 %v4374_v61, %v204_v60 }
 0x104   :  { %v4407_v57 = vpop.f32.mrf.mxu0 }
 0x106   :  { %v4408_v58 = vpop.f32.mrf.mxu0 }
 0x107   :  { %v4409_v62 = vadd.f32 %v4408_v58, %v4407_v57 }
 0x108   :  { %v4410_v63 = vpop.f32.mrf.mxu0 }
 0x109   :  { %v5269_v0 = vadd.f32 %v4409_v62, %v274_v59 }
 0x10a   :  { %v4411_v1 = vpop.f32.mrf.mxu0 }
 0x10b   :  { %v4412_v3 = vadd.f32 %v4411_v1, %v4410_v63  ;;  %v386_v4 = vsel %vm385_vm0, %v5269_v0, 0.0 }
 0x10c   :  { %387 = vadd.xlane.f32.xlu0 %v386_v4 }
 0x10d   :  { %v5273_v5 = vadd.f32 %v4412_v3, %v279_v2 }
 0x10f   :  { %v389_v6 = vsel %vm385_vm0, %v5273_v5, 0.0 }
 0x110   :  { %390 = vadd.xlane.f32.xlu0 %v389_v6 }
 0x195   :  { %v388_v7 = vpop.xlane.xlu0 %387 }
 0x196   :  { %v393_v8 = vmul.f32 0.03125, %v388_v7 }
 0x198   :  { %v395_v9 = vsub.f32 %v5269_v0, %v393_v8 }
 0x199   :  { %v391_v10 = vpop.xlane.xlu0 %390 }
 0x19a   :  { %v394_v11 = vmul.f32 0.03125, %v391_v10  ;;  %v397_v12 = vmul.f32 %v395_v9, %v395_v9 }
 0x19c   :  { %v396_v13 = vsub.f32 %v5273_v5, %v394_v11  ;;  %v399_v14 = vsel %vm385_vm0, %v397_v12, 0.0 }
 0x19d   :  { %400 = vadd.xlane.f32.xlu1 %v399_v14 }
 0x19e   :  { %v398_v15 = vmul.f32 %v396_v13, %v396_v13 }
 0x1a0   :  { %v402_v16 = vsel %vm385_vm0, %v398_v15, 0.0 }
 0x1a1   :  { %403 = vadd.xlane.f32.xlu1 %v402_v16 }
 0x226   :  { %v401_v21 = vpop.xlane.xlu1 %400 }
 0x227   :  { %v405_v22 = vmul.f32 0.03125, %v401_v21 }
 0x229   :  { %v407_v23 = vadd.f32 1e-06, %v405_v22 }
 0x22a   :  { %v404_v24 = vpop.xlane.xlu1 %403 }
 0x22b   :  { %4791 = vrsqrt.f32 %v407_v23  ;;  %v406_v25 = vmul.f32 0.03125, %v404_v24 }
 0x22d   :  { %v408_v26 = vadd.f32 1e-06, %v406_v25 }
 0x22f   :  { %4793 = vrsqrt.f32 %v408_v26 }
 0x238   :  { %v4792_v27 = vpop.eup %4791 }
 0x239   :  { %v411_v29 = vmul.f32 %v4792_v27, %v395_v9 }
 0x23b   :  { %v417_v31 = vmul.f32 %v4197_v28, %v411_v29 }
 0x23c   :  { %v4794_v32 = vpop.eup %4793 }
 0x23d   :  { %v412_v33 = vmul.f32 %v4794_v32, %v396_v13  ;;  %v423_v34 = vadd.f32 %v4198_v30, %v417_v31 }
 0x23f   :  { %v418_v35 = vmul.f32 %v4197_v28, %v412_v33  ;;  %4533 = vmatprep.mubr.msk.f32.mxu1 %vm385_vm0, %v423_v34 }
 0x241   :  { %v424_v36 = vadd.f32 %v4198_v30, %v418_v35 }
 0x243   :  { %4534 = vmatmul.mubr.msk.f32.vlgmr.msra.gmra.mxu1 %vm385_vm0, %v424_v36 }
 0x244   :  { %4538 = vmatprep.mubr.msk.f32.mxu1 %vm4890_vm1, %v4889_v37 }
 0x303   :  { %v4535_v39 = vpop.f32.mrf.mxu1 }
 0x304   :  { %v5310_v40 = vadd.f32 %v4535_v39, %v4199_v38 }
 0x305   :  { %v501_v41 = vpop.f32.mrf.mxu1 }
 0x306   :  { %v5312_v42 = vadd.f32 %v4199_v38, %v501_v41 }
 0x308   :  { %511 = vrot.lane.b32.xlu0 %v5312_v42, %s4891_s11 }
 0x30c   :  { %677 = vrot.lane.b32.xlu0 %v5312_v42, %s4892_s12 }
 0x37a   :  { %v512_v43 = vpop.permute.xlu0 %511 }
 0x37b   :  { %4537 = vmatpush3.xpose.msk.msra.mxu1 %vm513_vm2, %v512_v43 }
 0x37c   :  { %4541 = vmatprep.subr.mxu1 %v4889_v37 }
 0x37e   :  { %4539 = vmatmul.mubr.msk.f32.vlgmr.msra.gmra.mxu1 %vm513_vm2, %v5312_v42  ;;  %v678_v61 = vpop.permute.xlu0 %677 }
 0x37f   :  { %4543 = vmatprep.mubr.msk.f32.mxu1 %vm4890_vm1, %v4889_v37 }
 0x43e   :  { %v584_v48 = vpop.f32.mrf.mxu1 }
 0x43f   :  { %v585_v49 = vadd.f32 %v584_v48, %v5325_v47 }
 0x440   :  { %v4540_v50 = vpop.f32.mrf.mxu1 }
 0x441   :  { %v588_v51 = vsel %vm513_vm2, %v585_v49, -inf }
 0x442   :  { %589 = vmax.xlane.f32.xlu1 %v588_v51 }
 0x453   :  { %599 = vrot.lane.b32.xlu1 %v5312_v42, %s4894_s13 }
 0x4cb   :  { %v590_v52 = vpop.xlane.xlu1 %589 }
 0x4cc   :  { %v591_v53 = vsub.f32 %v585_v49, %v590_v52 }
 0x4ce   :  { %v592_v54 = vmul.f32 1.442695, %v591_v53 }
 0x4cf   :  { %v600_v55 = vpop.permute.xlu1 %599 }
 0x4d0   :  { %4795 = vpow2.f32 %v592_v54  ;;  %4542 = vmatpush3.msra.mxu1 %v600_v55 }
 0x4d1   :  { %4546 = vmatprep.subr.mxu1 %v4889_v37 }
 0x4dd   :  { %v4796_v56 = vpop.eup %4795 }
 0x4de   :  { %v594_v57 = vsel %vm513_vm2, %v4796_v56, 0.0 }
 0x4df   :  { %595 = vadd.xlane.f32.xlu1 %v594_v57 }
 0x4f0   :  { %675 = vrot.lane.b32.xlu1 %v5312_v42, %s4895_s14 }
 0x568   :  { %v596_v58 = vpop.xlane.xlu1 %595 }
 0x569   :  { %4797 = vrcp.f32 %v596_v58 }
 0x56c   :  { %v676_v62 = vpop.permute.xlu1 %675 }
 0x576   :  { %v4798_v59 = vpop.eup %4797 }
 0x577   :  { %v598_v60 = vmul.f32 %v4798_v59, %v4796_v56 }
 0x579   :  { %4544 = vmatmul.mubr.msk.f32.vlgmr.msra.gmra.mxu1 %vm513_vm2, %v598_v60 }
 0x57a   :  { %4547 = vmatpush3.xpose.msk.msra.mxu1 %vm513_vm2, %v678_v61  ;;  %4548 = vmatprep.mubr.msk.f32.mxu1 %vm4890_vm1, %v4889_v37 }
 0x57b   :  { %4551 = vmatprep.subr.mxu1 %v4889_v37 }
 0x57d   :  { %4549 = vmatmul.mubr.msk.f32.vlgmr.msra.gmra.mxu1 %vm513_vm2, %v676_v62 }
 0x57e   :  { %4553 = vmatprep.mubr.msk.f32.mxu1 %vm4890_vm1, %v4889_v37 }
 0x639   :  { %v5343_v63 = vpop.f32.mrf.mxu1 }
 0x63b   :  { %v4545_v1 = vpop.f32.mrf.mxu1 }
 0x63d   :  { %v749_v2 = vpop.f32.mrf.mxu1 }
 0x63e   :  { %v750_v3 = vadd.f32 %v749_v2, %v5325_v47 }
 0x63f   :  { %v4550_v4 = vpop.f32.mrf.mxu1 }
 0x640   :  { %v753_v6 = vsel %vm513_vm2, %v750_v3, -inf }
 0x641   :  { %754 = vmax.xlane.f32.xlu0 %v753_v6 }
 0x657   :  { %764 = vrot.lane.b32.xlu0 %v5312_v42, %s4896_s15 }
 0x65b   :  { %840 = vrot.lane.b32.xlu0 %v5312_v42, %s4897_s16 }
 0x6ca   :  { %v755_v7 = vpop.xlane.xlu0 %754 }
 0x6cb   :  { %v756_v8 = vsub.f32 %v750_v3, %v755_v7 }
 0x6cd   :  { %v757_v9 = vmul.f32 1.442695, %v756_v8 }
 0x6ce   :  { %v765_v10 = vpop.permute.xlu0 %764 }
 0x6cf   :  { %4799 = vpow2.f32 %v757_v9  ;;  %4552 = vmatpush3.msra.mxu1 %v765_v10 }
 0x6d0   :  { %4556 = vmatprep.subr.mxu1 %v4889_v37 }
 0x6d2   :  { %v841_v17 = vpop.permute.xlu0 %840 }
 0x6dc   :  { %v4800_v11 = vpop.eup %4799 }
 0x6dd   :  { %v759_v12 = vsel %vm513_vm2, %v4800_v11, 0.0 }
 0x6de   :  { %760 = vadd.xlane.f32.xlu1 %v759_v12 }
 0x6ef   :  { %842 = vrot.lane.b32.xlu1 %v5312_v42, %s4898_s17 }
 0x767   :  { %v761_v13 = vpop.xlane.xlu1 %760 }
 0x768   :  { %4801 = vrcp.f32 %v761_v13 }
 0x76b   :  { %v843_v16 = vpop.permute.xlu1 %842 }
 0x775   :  { %v4802_v14 = vpop.eup %4801 }
 0x776   :  { %v763_v15 = vmul.f32 %v4802_v14, %v4800_v11 }
 0x778   :  { %4554 = vmatmul.mubr.msk.f32.vlgmr.msra.gmra.mxu1 %vm513_vm2, %v763_v15 }
 0x779   :  { %4557 = vmatpush3.xpose.msk.msra.mxu1 %vm513_vm2, %v843_v16  ;;  %4558 = vmatprep.mubr.msk.f32.mxu1 %vm4890_vm1, %v4889_v37 }
 0x77a   :  { %4561 = vmatprep.subr.mxu1 %v4889_v37 }
 0x77c   :  { %4559 = vmatmul.mubr.msk.f32.vlgmr.msra.gmra.mxu1 %vm513_vm2, %v841_v17 }
 0x77d   :  { %4563 = vmatprep.mubr.msk.f32.mxu1 %vm4890_vm1, %v4889_v37 }
 0x838   :  { %v5363_v18 = vpop.f32.mrf.mxu1 }
 0x83a   :  { %v4555_v19 = vpop.f32.mrf.mxu1 }
 0x83c   :  { %v914_v20 = vpop.f32.mrf.mxu1 }
 0x83d   :  { %v915_v21 = vadd.f32 %v914_v20, %v5325_v47 }
 0x83e   :  { %v4560_v22 = vpop.f32.mrf.mxu1 }
 0x83f   :  { %v918_v23 = vsel %vm513_vm2, %v915_v21, -inf }
 0x840   :  { %919 = vmax.xlane.f32.xlu1 %v918_v23 }
 0x851   :  { %1007 = vrot.lane.b32.xlu1 %v5312_v42, %s4899_s18 }
 0x855   :  { %1005 = vrot.lane.b32.xlu1 %v5312_v42, %s4900_s19 }
 0x859   :  { %1353 = vrot.lane.b32.xlu1 %v5310_v40, %s4892_s12 }
 0x85d   :  { %1518 = vrot.lane.b32.xlu1 %v5310_v40, %s4898_s17 }
 0x861   :  { %1683 = vrot.lane.b32.xlu1 %v5310_v40, %s4899_s18 }
 0x8c9   :  { %v920_v24 = vpop.xlane.xlu1 %919 }
 0x8ca   :  { %v921_v25 = vsub.f32 %v915_v21, %v920_v24 }
 0x8cc   :  { %v922_v26 = vmul.f32 1.442695, %v921_v25 }
 0x8cd   :  { %v1008_v31 = vpop.permute.xlu1 %1007 }
 0x8ce   :  { %4803 = vpow2.f32 %v922_v26 }
 0x8d1   :  { %v1006_v33 = vpop.permute.xlu1 %1005 }
 0x8d5   :  { %v1354_v36 = vpop.permute.xlu1 %1353 }
 0x8d9   :  { %v1519_v39 = vpop.permute.xlu1 %1518 }
 0x8db   :  { %v4804_v27 = vpop.eup %4803 }
 0x8dc   :  { %v924_v28 = vsel %vm513_vm2, %v4804_v27, 0.0 }
 0x8dd   :  { %925 = vadd.xlane.f32.xlu0 %v924_v28  ;;  %v1684_v43 = vpop.permute.xlu1 %1683 }
 0x8f3   :  { %929 = vrot.lane.b32.xlu0 %v5312_v42, %s4901_s20 }
 0x8f7   :  { %1188 = vrot.lane.b32.xlu0 %v5310_v40, %s4891_s11 }
 0x8fb   :  { %1351 = vrot.lane.b32.xlu0 %v5310_v40, %s4895_s14 }
 0x8ff   :  { %1516 = vrot.lane.b32.xlu0 %v5310_v40, %s4897_s16 }
 0x903   :  { %1681 = vrot.lane.b32.xlu0 %v5310_v40, %s4900_s19 }
 0x966   :  { %v926_v29 = vpop.xlane.xlu0 %925 }
 0x967   :  { %4805 = vrcp.f32 %v926_v29 }
 0x96a   :  { %v930_v30 = vpop.permute.xlu0 %929 }
 0x96b   :  { %4562 = vmatpush3.msra.mxu1 %v930_v30 }
 0x96c   :  { %4566 = vmatprep.subr.mxu1 %v4889_v37 }
 0x96e   :  { %v1189_v35 = vpop.permute.xlu0 %1188 }
 0x972   :  { %v1352_v38 = vpop.permute.xlu0 %1351 }
 0x974   :  { %v4806_v32 = vpop.eup %4805 }
 0x975   :  { %v928_v34 = vmul.f32 %v4806_v32, %v4804_v27 }
 0x976   :  { %v1517_v41 = vpop.permute.xlu0 %1516 }
 0x977   :  { %4564 = vmatmul.mubr.msk.f32.vlgmr.msra.gmra.mxu1 %vm513_vm2, %v928_v34 }
 0x978   :  { %4567 = vmatpush3.xpose.msk.msra.mxu1 %vm513_vm2, %v1008_v31  ;;  %4568 = vmatprep.mubr.msk.f32.mxu1 %vm4890_vm1, %v4889_v37 }
 0x979   :  { %4576 = vmatprep.subr.mxu1 %v4889_v37 }
 0x97a   :  { %v1682_v45 = vpop.permute.xlu0 %1681 }
 0x97b   :  { %4569 = vmatmul.mubr.msk.f32.vlgmr.msra.gmra.mxu1 %vm513_vm2, %v1006_v33 }
 0x97c   :  { %4577 = vmatpush3.xpose.msk.msra.mxu1 %vm513_vm2, %v1189_v35  ;;  %4578 = vmatprep.mubr.msk.f32.mxu1 %vm4890_vm1, %v4889_v37 }
 0x97d   :  { %4586 = vmatprep.subr.mxu1 %v4889_v37 }
 0x97f   :  { %4579 = vmatmul.mubr.msk.f32.vlgmr.msra.gmra.mxu1 %vm513_vm2, %v5310_v40 }
 0x980   :  { %4587 = vmatpush3.xpose.msk.msra.mxu1 %vm513_vm2, %v1354_v36  ;;  %4588 = vmatprep.mubr.msk.f32.mxu1 %vm4890_vm1, %v4889_v37 }
 0x981   :  { %4596 = vmatprep.subr.mxu1 %v4889_v37 }
 0x983   :  { %4589 = vmatmul.mubr.msk.f32.vlgmr.msra.gmra.mxu1 %vm513_vm2, %v1352_v38 }
 0x984   :  { %4597 = vmatpush3.xpose.msk.msra.mxu1 %vm513_vm2, %v1519_v39  ;;  %4598 = vmatprep.mubr.msk.f32.mxu1 %vm4890_vm1, %v4889_v37 }
 0x985   :  { %4606 = vmatprep.subr.mxu1 %v4889_v37 }
 0x987   :  { %4599 = vmatmul.mubr.msk.f32.vlgmr.msra.gmra.mxu1 %vm513_vm2, %v1517_v41 }
 0x988   :  { %4607 = vmatpush3.xpose.msk.msra.mxu1 %vm513_vm2, %v1684_v43  ;;  %4608 = vmatprep.mubr.msk.f32.mxu1 %vm4890_vm1, %v4889_v37 }
 0x98b   :  { %4609 = vmatmul.mubr.msk.f32.vlgmr.msra.gmra.mxu1 %vm513_vm2, %v1682_v45 }
 0xa37   :  { %v5415_v46 = vpop.f32.mrf.mxu1 }
 0xa39   :  { %v4565_v48 = vpop.f32.mrf.mxu1 }
 0xa3b   :  { %v1079_v49 = vpop.f32.mrf.mxu1 }
 0xa3c   :  { %v1080_v50 = vadd.f32 %v1079_v49, %v5325_v47 }
 0xa3d   :  { %v4570_v51 = vpop.f32.mrf.mxu1 }
 0xa3e   :  { %v1083_v52 = vsel %vm513_vm2, %v1080_v50, -inf }
 0xa3f   :  { %1084 = vmax.xlane.f32.xlu1 %v1083_v52  ;;  %v1260_v53 = vpop.f32.mrf.mxu1 }
 0xa40   :  { %v1261_v54 = vadd.f32 %v1260_v53, %v5325_v47 }
 0xa41   :  { %v4580_v55 = vpop.f32.mrf.mxu1 }
 0xa42   :  { %v1264_v56 = vsel %vm513_vm2, %v1261_v54, -inf }
 0xa43   :  { %1265 = vmax.xlane.f32.xlu0 %v1264_v56  ;;  %v1425_v57 = vpop.f32.mrf.mxu1  ;;  %v376_v56 = vld [vmem:[%s5876_s2 + $0x38] sm:$0xff] }
 0xa44   :  { %v1426_v58 = vadd.f32 %v1425_v57, %v5325_v47  ;;  %v375_v57 = vld [vmem:[%s5876_s2 + $0x30] sm:$0xff]  ;;  %4616 = vmatprep.subr.mxu1 %v376_v56 }
 0xa45   :  { %v4590_v59 = vpop.f32.mrf.mxu1  ;;  %4617 = vmatpush3.msra.mxu1 %v376_v56 }
 0xa46   :  { %v1429_v60 = vsel %vm513_vm2, %v1426_v58, -inf  ;;  %4618 = vmatprep.subr.mxu1 %v375_v57  ;;  %v374_v59 = vld [vmem:[%s5876_s2 + $0x28] sm:$0xff] }
 0xa47   :  { %1430 = vmax.xlane.f32.xlu0 %v1429_v60  ;;  %v1590_v61 = vpop.f32.mrf.mxu1  ;;  %4619 = vmatpush3.msra.mxu1 %v375_v57  ;;  %v373_v60 = vld [vmem:[%s5876_s2 + $0x20] sm:$0xff] }
 0xa48   :  { %v1591_v62 = vadd.f32 %v1590_v61, %v5325_v47  ;;  %4620 = vmatprep.subr.mxu1 %v374_v59 }
 0xa49   :  { %v4600_v1 = vpop.f32.mrf.mxu1  ;;  %4621 = vmatpush3.msra.mxu1 %v374_v59 }
 0xa4a   :  { %v1594_v2 = vsel %vm513_vm2, %v1591_v62, -inf  ;;  %4622 = vmatprep.subr.mxu1 %v373_v60 }
 0xa4b   :  { %1595 = vmax.xlane.f32.xlu0 %v1594_v2  ;;  %v1755_v3 = vpop.f32.mrf.mxu1  ;;  %4623 = vmatpush3.msra.mxu1 %v373_v60  ;;  %v384_v60 = vld [vmem:[%s5878_s3 + $0x38] sm:$0xff] }
 0xa4c   :  { %v1756_v4 = vadd.f32 %v1755_v3, %v5325_v47  ;;  %4638 = vmatprep.subr.mxu1 %v384_v60 }
 0xa4d   :  { %v4610_v6 = vpop.f32.mrf.mxu1 }
 0xa4e   :  { %v1759_v7 = vsel %vm513_vm2, %v1756_v4, -inf }
 0xa4f   :  { %1760 = vmax.xlane.f32.xlu1 %v1759_v7 }
 0xa60   :  { %1094 = vrot.lane.b32.xlu1 %v5312_v42, %s4902_s1 }
 0xac8   :  { %v1085_v8 = vpop.xlane.xlu1 %1084 }
 0xac9   :  { %v1086_v9 = vsub.f32 %v1080_v50, %v1085_v8 }
 0xacb   :  { %v1087_v10 = vmul.f32 1.442695, %v1086_v9 }
 0xacc   :  { %v1266_v11 = vpop.xlane.xlu0 %1265 }
 0xacd   :  { %4807 = vpow2.f32 %v1087_v10  ;;  %v1267_v12 = vsub.f32 %v1261_v54, %v1266_v11 }
 0xacf   :  { %v1268_v13 = vmul.f32 1.442695, %v1267_v12 }
 0xad0   :  { %v1431_v14 = vpop.xlane.xlu0 %1430 }
 0xad1   :  { %4809 = vpow2.f32 %v1268_v13  ;;  %v1432_v15 = vsub.f32 %v1426_v58, %v1431_v14 }
 0xad3   :  { %v1433_v16 = vmul.f32 1.442695, %v1432_v15 }
 0xad4   :  { %v1596_v17 = vpop.xlane.xlu0 %1595 }
 0xad5   :  { %4811 = vpow2.f32 %v1433_v16  ;;  %v1597_v19 = vsub.f32 %v1591_v62, %v1596_v17 }
 0xad7   :  { %v1598_v20 = vmul.f32 1.442695, %v1597_v19 }
 0xad8   :  { %v1761_v21 = vpop.xlane.xlu1 %1760 }
 0xad9   :  { %4813 = vpow2.f32 %v1598_v20  ;;  %v1762_v22 = vsub.f32 %v1756_v4, %v1761_v21 }
 0xada   :  { %v4808_v23 = vpop.eup %4807 }
 0xadb   :  { %v1763_v42 = vmul.f32 1.442695, %v1762_v22  ;;  %v1089_v24 = vsel %vm513_vm2, %v4808_v23, 0.0 }
 0xadc   :  { %1090 = vadd.xlane.f32.xlu0 %v1089_v24  ;;  %v1095_v25 = vpop.permute.xlu1 %1094 }
 0xadd   :  { %4815 = vpow2.f32 %v1763_v42  ;;  %4572 = vmatpush3.msra.mxu0 %v1095_v25 }
 0xade   :  { %v4810_v26 = vpop.eup %4809  ;;  %4581 = vmatprep.subr.mxu0 %v4889_v37 }
 0xadf   :  { %v1270_v27 = vsel %vm513_vm2, %v4810_v26, 0.0 }
 0xae0   :  { %1271 = vadd.xlane.f32.xlu1 %v1270_v27 }
 0xae2   :  { %v4812_v28 = vpop.eup %4811 }
 0xae3   :  { %v1435_v29 = vsel %vm513_vm2, %v4812_v28, 0.0 }
 0xae4   :  { %1436 = vadd.xlane.f32.xlu0 %v1435_v29 }
 0xae6   :  { %v4814_v30 = vpop.eup %4813 }
 0xae7   :  { %v1600_v31 = vsel %vm513_vm2, %v4814_v30, 0.0 }
 0xae8   :  { %1601 = vadd.xlane.f32.xlu1 %v1600_v31 }
 0xaea   :  { %v4816_v32 = vpop.eup %4815 }
 0xaeb   :  { %v1765_v33 = vsel %vm513_vm2, %v4816_v32, 0.0 }
 0xaec   :  { %1766 = vadd.xlane.f32.xlu0 %v1765_v33 }
 0xaf9   :  { %1440 = vrot.lane.b32.xlu1 %v5310_v40, %s4896_s15 }
 0xafd   :  { %1605 = vrot.lane.b32.xlu1 %v5310_v40, %s4901_s20 }
 0xb01   :  { %1770 = vrot.lane.b32.xlu1 %v5310_v40, %s4902_s1 }
 0xb02   :  { %1275 = vrot.lane.b32.xlu0 %v5310_v40, %s4894_s13 }
 0xb05   :  { %1175 = vrot.lane.b32.xlu1 %v5415_v46, %s4903_s21 }
 0xb06   :  { %1171 = vrot.lane.b32.xlu0 %v5363_v18, %s4904_s0 }
 0xb65   :  { %v1091_v34 = vpop.xlane.xlu0 %1090 }
 0xb66   :  { %4817 = vrcp.f32 %v1091_v34 }
 0xb69   :  { %v1272_v35 = vpop.xlane.xlu1 %1271 }
 0xb6a   :  { %4819 = vrcp.f32 %v1272_v35 }
 0xb6d   :  { %v1437_v36 = vpop.xlane.xlu0 %1436 }
 0xb6e   :  { %4821 = vrcp.f32 %v1437_v36 }
 0xb71   :  { %v1602_v38 = vpop.xlane.xlu1 %1601 }
 0xb72   :  { %4823 = vrcp.f32 %v1602_v38  ;;  %v380_v38 = vld [vmem:[%s5878_s3 + $0x18] sm:$0xff] }
 0xb73   :  { %v4818_v39 = vpop.eup %4817 }
 0xb74   :  { %v1093_v41 = vmul.f32 %v4818_v39, %v4808_v23  ;;  %v379_v39 = vld [vmem:[%s5878_s3 + $0x10] sm:$0xff] }
 0xb75   :  { %v1767_v43 = vpop.xlane.xlu0 %1766  ;;  %v1441_v45 = vpop.permute.xlu1 %1440 }
 0xb76   :  { %4825 = vrcp.f32 %v1767_v43  ;;  %4574 = vmatmul.mubr.msk.f32.vlgmr.msra.gmra.mxu0 %vm513_vm2, %v1093_v41  ;;  %v378_v41 = vld [vmem:[%s5878_s3 + $0x8] sm:$0xff]  ;;  %v377_v43 = vld [vmem:[%s5878_s3] sm:$0xff] }
 0xb77   :  { %v4820_v40 = vpop.eup %4819  ;;  %4583 = vmatprep.mubr.msk.f32.mxu0 %vm4890_vm1, %v4889_v37 }
 0xb78   :  { %v1274_v18 = vmul.f32 %v4820_v40, %v4810_v26 }
 0xb79   :  { %v1276_v46 = vpop.permute.xlu0 %1275  ;;  %v1606_v50 = vpop.permute.xlu1 %1605 }
 0xb7a   :  { %4582 = vmatpush3.msra.mxu0 %v1276_v46 }
 0xb7b   :  { %v4822_v48 = vpop.eup %4821  ;;  %4584 = vmatmul.mubr.msk.f32.vlgmr.msra.gmra.mxu0 %vm513_vm2, %v1274_v18  ;;  %4591 = vmatprep.subr.mxu0 %v4889_v37 }
 0xb7c   :  { %4592 = vmatpush3.msra.mxu0 %v1441_v45  ;;  %4593 = vmatprep.mubr.msk.f32.mxu0 %vm4890_vm1, %v4889_v37  ;;  %v1439_v49 = vmul.f32 %v4822_v48, %v4812_v28 }
 0xb7d   :  { %4601 = vmatprep.subr.mxu0 %v4889_v37  ;;  %v1771_v54 = vpop.permute.xlu1 %1770  ;;  %v1172_v9 = vpop.permute.xlu0 %1171 }
 0xb7e   :  { %v1182_v11 = vsel %vm513_vm2, %v5343_v63, %v1172_v9  ;;  %v4228_v63 = vld [vmem:[%s5877_s4 + $0x5] ss:$0 sm:$0xff] }
 0xb7f   :  { %v4824_v51 = vpop.eup %4823  ;;  %4594 = vmatmul.mubr.msk.f32.vlgmr.msra.gmra.mxu0 %vm513_vm2, %v1439_v49 }
 0xb80   :  { %4602 = vmatpush3.msra.mxu0 %v1606_v50  ;;  %4603 = vmatprep.mubr.msk.f32.mxu0 %vm4890_vm1, %v4889_v37  ;;  %v1604_v52 = vmul.f32 %v4824_v51, %v4814_v30  ;;  %v4229_v51 = vld [vmem:[%s5877_s4 + $0x2] ss:$0 sm:$0xff] }
 0xb81   :  { %4611 = vmatprep.subr.mxu0 %v4889_v37  ;;  %v1176_v10 = vpop.permute.xlu1 %1175 }
 0xb82   :  { %v1184_v12 = vsel %vm1183_vm4, %v1182_v11, %v1176_v10 }
 0xb83   :  { %v4826_v53 = vpop.eup %4825  ;;  %4604 = vmatmul.mubr.msk.f32.vlgmr.msra.gmra.mxu0 %vm513_vm2, %v1604_v52 }
 0xb84   :  { %4612 = vmatpush3.msra.mxu0 %v1771_v54  ;;  %4613 = vmatprep.mubr.msk.f32.mxu0 %vm4890_vm1, %v4889_v37  ;;  %v1769_v55 = vmul.f32 %v4826_v53, %v4816_v32  ;;  %v4230_v53 = vld [vmem:[%s5877_s4 + $0x3] ss:$0 sm:$0xff] }
 0xb85   :  { %4627 = vmatprep.subr.mxu0 %v380_v38 }
 0xb87   :  { %4614 = vmatmul.mubr.msk.f32.vlgmr.msra.gmra.mxu0 %vm513_vm2, %v1769_v55 }
 0xb88   :  { %4628 = vmatpush3.msra.mxu0 %v380_v38 }
 0xb89   :  { %4629 = vmatprep.subr.mxu0 %v379_v39 }
 0xb8a   :  { %4630 = vmatpush3.msra.mxu0 %v379_v39 }
 0xb8b   :  { %4631 = vmatprep.subr.mxu0 %v378_v41 }
 0xb8c   :  { %4632 = vmatpush3.msra.mxu0 %v378_v41 }
 0xb8d   :  { %4633 = vmatprep.subr.mxu0 %v377_v43 }
 0xb8e   :  { %4634 = vmatpush3.msra.mxu0 %v377_v43 }
 0xc36   :  { %v1166_v58 = vpop.f32.mrf.mxu0 }
 0xc37   :  { %1179 = vrot.lane.b32.xlu1 %v1166_v58, %s4905_s26 }
 0xc38   :  { %v4575_v61 = vpop.f32.mrf.mxu0 }
 0xc39   :  { %v383_v61 = vld [vmem:[%s5878_s3 + $0x30] sm:$0xff] }
 0xc3b   :  { %v1347_v62 = vpop.f32.mrf.mxu0 }
 0xc3d   :  { %v4585_v1 = vpop.f32.mrf.mxu0 }
 0xc3e   :  { %v381_v1 = vld [vmem:[%s5878_s3 + $0x20] sm:$0xff] }
 0xc3f   :  { %v1512_v2 = vpop.f32.mrf.mxu0 }
 0xc40   :  { %1847 = vrot.lane.b32.xlu0 %v1512_v2, %s4904_s0  ;;  %v4231_v2 = vld [vmem:[%s5877_s4 + $0x6] ss:$0 sm:$0xff] }
 0xc41   :  { %v4595_v3 = vpop.f32.mrf.mxu0 }
 0xc43   :  { %v1677_v4 = vpop.f32.mrf.mxu0 }
 0xc44   :  { %1851 = vrot.lane.b32.xlu0 %v1677_v4, %s4903_s21 }
 0xc45   :  { %v4605_v6 = vpop.f32.mrf.mxu0 }
 0xc47   :  { %v1842_v7 = vpop.f32.mrf.mxu0 }
 0xc48   :  { %1855 = vrot.lane.b32.xlu1 %v1842_v7, %s4905_s26 }
 0xc49   :  { %v4615_v8 = vpop.f32.mrf.mxu0 }
 0xca9   :  { %v1180_v13 = vpop.permute.xlu1 %1179 }
 0xcaa   :  { %v1186_v14 = vsel %vm1185_vm5, %v1184_v12, %v1180_v13 }
 0xcab   :  { %4624 = vmatprep.mubr.msk.f32.mxu1 %vm385_vm0, %v1186_v14 }
 0xcb2   :  { %v1848_v15 = vpop.permute.xlu0 %1847 }
 0xcb3   :  { %v1858_v17 = vsel %vm513_vm2, %v1347_v62, %v1848_v15  ;;  %v382_v62 = vld [vmem:[%s5878_s3 + $0x28] sm:$0xff] }
 0xcb6   :  { %v1852_v16 = vpop.permute.xlu0 %1851 }
 0xcb7   :  { %v1859_v19 = vsel %vm1183_vm4, %v1858_v17, %v1852_v16 }
 0xcba   :  { %v1856_v20 = vpop.permute.xlu1 %1855 }
 0xcbb   :  { %v1860_v21 = vsel %vm1185_vm5, %v1859_v19, %v1856_v20 }
 0xcbc   :  { %4625 = vmatmul.mubr.msk.f32.vlgmr.msra.gmra.mxu1 %vm385_vm0, %v1860_v21 }
 0xcbd   :  { %4639 = vmatpush3.xpose.msra.mxu1 %v384_v60  ;;  %v4234_v60 = vld [vmem:[%s5877_s4 + $0x7] ss:$0 sm:$0xff] }
 0xcbe   :  { %4640 = vmatprep.subr.mxu1 %v383_v61 }
 0xcc1   :  { %4641 = vmatpush3.xpose.msra.mxu1 %v383_v61 }
 0xcc2   :  { %4642 = vmatprep.subr.mxu1 %v382_v62 }
 0xcc5   :  { %4643 = vmatpush3.xpose.msra.mxu1 %v382_v62 }
 0xcc6   :  { %4644 = vmatprep.subr.mxu1 %v381_v1 }
 0xcc9   :  { %4645 = vmatpush3.xpose.msra.mxu1 %v381_v1 }
 0xcca   :  { %4670 = vmatprep.subr.mxu1 %v4889_v37 }
 0xd7c   :  { %v4626_v22 = vpop.f32.mrf.mxu1 }
 0xd7d   :  { %v1943_v23 = vadd.f32 %v4626_v22, %v5273_v5 }
 0xd7e   :  { %v1933_v42 = vpop.f32.mrf.mxu1 }
 0xd7f   :  { %v5492_v24 = vadd.f32 %v4228_v63, %v1943_v23  ;;  %v1942_v25 = vadd.f32 %v1933_v42, %v5269_v0 }
 0xd81   :  { %v5495_v26 = vadd.f32 %v4228_v63, %v1942_v25  ;;  %v1953_v27 = vsel %vm385_vm0, %v5492_v24, 0.0 }
 0xd82   :  { %1954 = vadd.xlane.f32.xlu1 %v1953_v27 }
 0xd83   :  { %v1950_v28 = vsel %vm385_vm0, %v5495_v26, 0.0 }
 0xd84   :  { %1951 = vadd.xlane.f32.xlu0 %v1950_v28 }
 0xe0b   :  { %v1955_v29 = vpop.xlane.xlu1 %1954 }
 0xe0c   :  { %v1957_v30 = vmul.f32 0.03125, %v1955_v29 }
 0xe0d   :  { %v1952_v31 = vpop.xlane.xlu0 %1951 }
 0xe0e   :  { %v1956_v32 = vmul.f32 0.03125, %v1952_v31  ;;  %v1959_v5 = vsub.f32 %v5492_v24, %v1957_v30 }
 0xe10   :  { %v1958_v33 = vsub.f32 %v5495_v26, %v1956_v32  ;;  %v1961_v35 = vmul.f32 %v1959_v5, %v1959_v5 }
 0xe12   :  { %v1960_v34 = vmul.f32 %v1958_v33, %v1958_v33  ;;  %v1965_v36 = vsel %vm385_vm0, %v1961_v35, 0.0 }
 0xe14   :  { %v1962_v0 = vsel %vm385_vm0, %v1960_v34, 0.0 }
 0xe15   :  { %1963 = vadd.xlane.f32.xlu0 %v1962_v0 }
 0xe19   :  { %1966 = vadd.xlane.f32.xlu0 %v1965_v36 }
 0xe9e   :  { %v1964_v40 = vpop.xlane.xlu0 %1963 }
 0xe9f   :  { %v1968_v45 = vmul.f32 0.03125, %v1964_v40 }
 0xea1   :  { %v1970_v18 = vadd.f32 1e-06, %v1968_v45 }
 0xea2   :  { %v1967_v46 = vpop.xlane.xlu0 %1966 }
 0xea3   :  { %4827 = vrsqrt.f32 %v1970_v18  ;;  %v1969_v48 = vmul.f32 0.03125, %v1967_v46 }
 0xea5   :  { %v1971_v49 = vadd.f32 1e-06, %v1969_v48 }
 0xea7   :  { %4829 = vrsqrt.f32 %v1971_v49 }
 0xeb0   :  { %v4828_v50 = vpop.eup %4827 }
 0xeb1   :  { %v1974_v52 = vmul.f32 %v4828_v50, %v1958_v33 }
 0xeb3   :  { %v1980_v54 = vmul.f32 %v4229_v51, %v1974_v52 }
 0xeb4   :  { %v4830_v55 = vpop.eup %4829 }
 0xeb5   :  { %v1975_v56 = vmul.f32 %v4830_v55, %v1959_v5  ;;  %v1986_v57 = vadd.f32 %v4230_v53, %v1980_v54 }
 0xeb7   :  { %v1981_v58 = vmul.f32 %v4229_v51, %v1975_v56  ;;  %4635 = vmatprep.mubr.msk.f32.mxu0 %vm385_vm0, %v1986_v57 }
 0xeb9   :  { %v1987_v59 = vadd.f32 %v4230_v53, %v1981_v58 }
 0xebb   :  { %4636 = vmatmul.mubr.msk.f32.vlgmr.msra.gmra.mxu0 %vm385_vm0, %v1987_v59 }
 0xf7b   :  { %v4637_v3 = vpop.f32.mrf.mxu0 }
 0xf7c   :  { %v2070_v4 = vadd.f32 %v4637_v3, %v4231_v2 }
 0xf7d   :  { %v2064_v6 = vpop.f32.mrf.mxu0 }
 0xf7e   :  { %v2076_v7 = vmul.f32 0.70710677, %v2070_v4  ;;  %v2065_v8 = vadd.f32 %v4231_v2, %v2064_v6  ;;  %v2074_v57 = vmul.f32 0.5, %v2070_v4 }
 0xf80   :  { %v2078_v9 = vand.u32 2147483647, %v2076_v7  ;;  %v2075_v10 = vmul.f32 0.70710677, %v2065_v8  ;;  %vm2118_vm6 = vcmp.ge.f32.partialorder %v2076_v7, 0.0  ;;  %v2073_v55 = vmul.f32 0.5, %v2065_v8 }
 0xf82   :  { %v2080_v11 = vmul.f32 0.3275911, %v2078_v9  ;;  %v2077_v12 = vand.u32 2147483647, %v2075_v10  ;;  %v2106_v16 = vsub.f32 0.0, %v2078_v9  ;;  %vm2117_vm7 = vcmp.ge.f32.partialorder %v2075_v10, 0.0 }
 0xf84   :  { %v2082_v13 = vadd.f32 1.0, %v2080_v11  ;;  %v2079_v14 = vmul.f32 0.3275911, %v2077_v12  ;;  %v2105_v17 = vsub.f32 0.0, %v2077_v12  ;;  %v2108_v19 = vmul.f32 %v2106_v16, %v2078_v9  ;;  %v4246_v16 = vld [vmem:[%s5876_s2 + $0x58] sm:$0xff] }
 0xf85   :  { %4649 = vmatprep.subr.mxu0 %v4246_v16 }
 0xf86   :  { %4831 = vrcp.f32 %v2082_v13  ;;  %v2081_v15 = vadd.f32 1.0, %v2079_v14  ;;  %v2107_v21 = vmul.f32 %v2105_v17, %v2077_v12  ;;  %v2111_v22 = vmul.f32 1.442695, %v2108_v19  ;;  %v4245_v17 = vld [vmem:[%s5876_s2 + $0x50] sm:$0xff]  ;;  %4650 = vmatpush3.msra.mxu0 %v4246_v16  ;;  %v4244_v19 = vld [vmem:[%s5876_s2 + $0x48] sm:$0xff] }
 0xf87   :  { %4651 = vmatprep.subr.mxu0 %v4245_v17 }
 0xf88   :  { %4833 = vrcp.f32 %v2081_v15  ;;  %v2109_v25 = vmul.f32 1.442695, %v2107_v21  ;;  %4652 = vmatpush3.msra.mxu0 %v4245_v17 }
 0xf89   :  { %4835 = vpow2.f32 %v2111_v22  ;;  %4653 = vmatprep.subr.mxu0 %v4244_v19 }
 0xf8a   :  { %4837 = vpow2.f32 %v2109_v25  ;;  %4654 = vmatpush3.msra.mxu0 %v4244_v19 }
 0xf93   :  { %v4832_v20 = vpop.eup %4831 }
 0xf94   :  { %v2088_v63 = vmul.f32 1.0614054, %v4832_v20 }
 0xf95   :  { %v4834_v23 = vpop.eup %4833 }
 0xf96   :  { %v2090_v42 = vadd.f32 -1.4531521, %v2088_v63  ;;  %v2087_v27 = vmul.f32 1.0614054, %v4834_v23  ;;  %v4836_v41 = vpop.eup %4835 }
 0xf97   :  { %v4838_v18 = vpop.eup %4837 }
 0xf98   :  { %v2092_v28 = vmul.f32 %v4832_v20, %v2090_v42  ;;  %v2089_v29 = vadd.f32 -1.4531521, %v2087_v27 }
 0xf9a   :  { %v2094_v30 = vadd.f32 1.4214138, %v2092_v28  ;;  %v2091_v31 = vmul.f32 %v4834_v23, %v2089_v29  ;;  %v4259_v28 = vld [vmem:[%s5877_s4 + $0x8] ss:$0 sm:$0xff] }
 0xf9c   :  { %v2096_v32 = vmul.f32 %v4832_v20, %v2094_v30  ;;  %v2093_v5 = vadd.f32 1.4214138, %v2091_v31 }
 0xf9e   :  { %v2098_v33 = vadd.f32 -0.28449672, %v2096_v32  ;;  %v2095_v34 = vmul.f32 %v4834_v23, %v2093_v5  ;;  %v4260_v5 = vld [vmem:[%s5877_s4 + $0x9] ss:$0 sm:$0xff] }
 0xfa0   :  { %v2100_v0 = vmul.f32 %v4832_v20, %v2098_v33  ;;  %v2097_v35 = vadd.f32 -0.28449672, %v2095_v34 }
 0xfa2   :  { %v2102_v36 = vadd.f32 0.2548296, %v2100_v0  ;;  %v2099_v38 = vmul.f32 %v4834_v23, %v2097_v35 }
 0xfa4   :  { %v2104_v39 = vmul.f32 %v4832_v20, %v2102_v36  ;;  %v2101_v43 = vadd.f32 0.2548296, %v2099_v38  ;;  %v4243_v20 = vld [vmem:[%s5876_s2 + $0x40] sm:$0xff]  ;;  %v4261_v36 = vld [vmem:[%s5877_s4 + $0xc] ss:$0 sm:$0xff] }
 0xfa5   :  { %4655 = vmatprep.subr.mxu0 %v4243_v20 }
 0xfa6   :  { %v2114_v40 = vmul.f32 %v4836_v41, %v2104_v39  ;;  %v2103_v45 = vmul.f32 %v4834_v23, %v2101_v43  ;;  %4656 = vmatpush3.msra.mxu0 %v4243_v20 }
 0xfa7   :  { %4660 = vmatprep.subr.mxu0 %v4889_v37 }
 0xfa8   :  { %v2116_v46 = vsub.f32 1.0, %v2114_v40  ;;  %v2113_v48 = vmul.f32 %v4838_v18, %v2103_v45 }
 0xfaa   :  { %v2120_v49 = vsub.f32 0.0, %v2116_v46  ;;  %v2115_v50 = vsub.f32 1.0, %v2113_v48 }
 0xfac   :  { %v2122_v51 = vsel %vm2118_vm6, %v2116_v46, %v2120_v49  ;;  %v2119_v52 = vsub.f32 0.0, %v2115_v50 }
 0xfad   :  { %v2124_v53 = vadd.f32 1.0, %v2122_v51 }
 0xfae   :  { %v2121_v54 = vsel %vm2117_vm7, %v2115_v50, %v2119_v52 }
 0xfaf   :  { %v2123_v56 = vadd.f32 1.0, %v2121_v54  ;;  %v2126_v59 = vmul.f32 %v2124_v53, %v2074_v57 }
 0xfb1   :  { %v2125_v58 = vmul.f32 %v2123_v56, %v2073_v55 }
 0xfb3   :  { %4646 = vmatprep.mubr.f32.mxu1 %v2125_v58 }
 0xfb4   :  { %4647 = vmatmul.mubr.f32.vlgmr.msra.gmra.mxu1 %v2126_v59 }
 0xfb5   :  { %4672 = vmatprep.mubr.msk.f32.mxu1 %vm4890_vm1, %v4889_v37 }
0x1074   :  { %v4648_v61 = vpop.f32.mrf.mxu1 }
0x1075   :  { %v2203_v62 = vadd.f32 %v4648_v61, %v4234_v60 }
0x1076   :  { %v2197_v1 = vpop.f32.mrf.mxu1 }
0x1077   :  { %v5547_v2 = vadd.f32 %v2203_v62, %v5492_v24  ;;  %v2198_v3 = vadd.f32 %v4234_v60, %v2197_v1 }
0x1079   :  { %v5550_v4 = vadd.f32 %v2198_v3, %v5495_v26  ;;  %v2238_v6 = vsel %vm385_vm0, %v5547_v2, 0.0 }
0x107a   :  { %2239 = vadd.xlane.f32.xlu1 %v2238_v6 }
0x107b   :  { %v2235_v7 = vsel %vm385_vm0, %v5550_v4, 0.0 }
0x107c   :  { %2236 = vadd.xlane.f32.xlu0 %v2235_v7 }
0x1103   :  { %v2240_v8 = vpop.xlane.xlu1 %2239 }
0x1104   :  { %v2242_v9 = vmul.f32 0.03125, %v2240_v8 }
0x1105   :  { %v2237_v10 = vpop.xlane.xlu0 %2236 }
0x1106   :  { %v2244_v11 = vsub.f32 %v5547_v2, %v2242_v9  ;;  %v2241_v12 = vmul.f32 0.03125, %v2237_v10 }
0x1108   :  { %v2243_v24 = vsub.f32 %v5550_v4, %v2241_v12  ;;  %v2246_v13 = vmul.f32 %v2244_v11, %v2244_v11 }
0x110a   :  { %v2250_v26 = vsel %vm385_vm0, %v2246_v13, 0.0  ;;  %v2245_v14 = vmul.f32 %v2243_v24, %v2243_v24 }
0x110b   :  { %2251 = vadd.xlane.f32.xlu1 %v2250_v26 }
0x110c   :  { %v2247_v15 = vsel %vm385_vm0, %v2245_v14, 0.0 }
0x110d   :  { %2248 = vadd.xlane.f32.xlu0 %v2247_v15 }
0x1194   :  { %v2252_v21 = vpop.xlane.xlu1 %2251 }
0x1195   :  { %v2254_v63 = vmul.f32 0.03125, %v2252_v21 }
0x1196   :  { %v2249_v22 = vpop.xlane.xlu0 %2248 }
0x1197   :  { %v2256_v23 = vadd.f32 1e-06, %v2254_v63  ;;  %v2253_v42 = vmul.f32 0.03125, %v2249_v22 }
0x1199   :  { %4839 = vrsqrt.f32 %v2256_v23  ;;  %v2255_v25 = vadd.f32 1e-06, %v2253_v42 }
0x119b   :  { %4841 = vrsqrt.f32 %v2255_v25 }
0x11a6   :  { %v4840_v27 = vpop.eup %4839 }
0x11a7   :  { %v2260_v29 = vmul.f32 %v4840_v27, %v2244_v11 }
0x11a8   :  { %v4842_v30 = vpop.eup %4841 }
0x11a9   :  { %v2259_v31 = vmul.f32 %v4842_v30, %v2243_v24  ;;  %v2266_v32 = vmul.f32 %v4259_v28, %v2260_v29 }
0x11ab   :  { %v2265_v33 = vmul.f32 %v4259_v28, %v2259_v31  ;;  %v2272_v0 = vadd.f32 %v4260_v5, %v2266_v32 }
0x11ad   :  { %v2271_v34 = vadd.f32 %v4260_v5, %v2265_v33 }
0x11af   :  { %4657 = vmatprep.mubr.msk.f32.mxu0 %vm385_vm0, %v2271_v34 }
0x11b0   :  { %4658 = vmatmul.mubr.msk.f32.vlgmr.msra.gmra.mxu0 %vm385_vm0, %v2272_v0 }
0x11b1   :  { %4662 = vmatprep.mubr.msk.f32.mxu0 %vm4890_vm1, %v4889_v37 }
0x1270   :  { %v4659_v35 = vpop.f32.mrf.mxu0 }
0x1271   :  { %v5600_v41 = vadd.f32 %v4659_v35, %v4261_v36 }
0x1272   :  { %v2349_v38 = vpop.f32.mrf.mxu0 }
0x1273   :  { %v5586_v39 = vadd.f32 %v4261_v36, %v2349_v38 }
0x1275   :  { %2524 = vrot.lane.b32.xlu1 %v5586_v39, %s4892_s12  ;;  %2359 = vrot.lane.b32.xlu0 %v5586_v39, %s4891_s11 }
0x1279   :  { %2522 = vrot.lane.b32.xlu1 %v5586_v39, %s4895_s14  ;;  %2687 = vrot.lane.b32.xlu0 %v5586_v39, %s4897_s16 }
0x127d   :  { %2689 = vrot.lane.b32.xlu1 %v5586_v39, %s4898_s17  ;;  %2852 = vrot.lane.b32.xlu0 %v5586_v39, %s4900_s19 }
0x1281   :  { %2854 = vrot.lane.b32.xlu1 %v5586_v39, %s4899_s18  ;;  %3198 = vrot.lane.b32.xlu0 %v5600_v41, %s4892_s12 }
0x1285   :  { %3033 = vrot.lane.b32.xlu1 %v5600_v41, %s4891_s11  ;;  %3363 = vrot.lane.b32.xlu0 %v5600_v41, %s4898_s17 }
0x1289   :  { %3196 = vrot.lane.b32.xlu1 %v5600_v41, %s4895_s14  ;;  %3528 = vrot.lane.b32.xlu0 %v5600_v41, %s4899_s18 }
0x128d   :  { %3361 = vrot.lane.b32.xlu1 %v5600_v41, %s4897_s16 }
0x1291   :  { %3526 = vrot.lane.b32.xlu1 %v5600_v41, %s4900_s19 }
0x12e7   :  { %v2525_v43 = vpop.permute.xlu1 %2524  ;;  %v2360_v40 = vpop.permute.xlu0 %2359 }
0x12e8   :  { %4661 = vmatpush3.xpose.msk.msra.mxu0 %vm513_vm2, %v2360_v40  ;;  %4671 = vmatpush3.xpose.msk.msra.mxu1 %vm513_vm2, %v2525_v43 }
0x12e9   :  { %4680 = vmatprep.subr.mxu1 %v4889_v37  ;;  %4665 = vmatprep.subr.mxu0 %v4889_v37 }
0x12eb   :  { %v2523_v45 = vpop.permute.xlu1 %2522  ;;  %4663 = vmatmul.mubr.msk.f32.vlgmr.msra.gmra.mxu0 %vm513_vm2, %v5586_v39  ;;  %v2688_v18 = vpop.permute.xlu0 %2687 }
0x12ec   :  { %4673 = vmatmul.mubr.msk.f32.vlgmr.msra.gmra.mxu1 %vm513_vm2, %v2523_v45  ;;  %4667 = vmatprep.mubr.msk.f32.mxu0 %vm4890_vm1, %v4889_v37 }
0x12ed   :  { %4682 = vmatprep.mubr.msk.f32.mxu1 %vm4890_vm1, %v4889_v37 }
0x12ef   :  { %v2690_v46 = vpop.permute.xlu1 %2689  ;;  %v2853_v48 = vpop.permute.xlu0 %2852 }
0x12f0   :  { %4681 = vmatpush3.xpose.msk.msra.mxu1 %vm513_vm2, %v2690_v46 }
0x12f1   :  { %4690 = vmatprep.subr.mxu1 %v4889_v37 }
0x12f3   :  { %v2855_v49 = vpop.permute.xlu1 %2854  ;;  %4683 = vmatmul.mubr.msk.f32.vlgmr.msra.gmra.mxu1 %vm513_vm2, %v2688_v18  ;;  %v3199_v50 = vpop.permute.xlu0 %3198 }
0x12f4   :  { %4691 = vmatpush3.xpose.msk.msra.mxu1 %vm513_vm2, %v2855_v49  ;;  %4692 = vmatprep.mubr.msk.f32.mxu1 %vm4890_vm1, %v4889_v37 }
0x12f5   :  { %4700 = vmatprep.subr.mxu1 %v4889_v37 }
0x12f7   :  { %v3034_v51 = vpop.permute.xlu1 %3033  ;;  %4693 = vmatmul.mubr.msk.f32.vlgmr.msra.gmra.mxu1 %vm513_vm2, %v2853_v48  ;;  %v3364_v53 = vpop.permute.xlu0 %3363 }
0x12f8   :  { %4701 = vmatpush3.xpose.msk.msra.mxu1 %vm513_vm2, %v3034_v51  ;;  %4702 = vmatprep.mubr.msk.f32.mxu1 %vm4890_vm1, %v4889_v37 }
0x12f9   :  { %4710 = vmatprep.subr.mxu1 %v4889_v37 }
0x12fb   :  { %v3197_v52 = vpop.permute.xlu1 %3196  ;;  %4703 = vmatmul.mubr.msk.f32.vlgmr.msra.gmra.mxu1 %vm513_vm2, %v5600_v41  ;;  %v3529_v55 = vpop.permute.xlu0 %3528 }
0x12fc   :  { %4711 = vmatpush3.xpose.msk.msra.mxu1 %vm513_vm2, %v3199_v50  ;;  %4712 = vmatprep.mubr.msk.f32.mxu1 %vm4890_vm1, %v4889_v37 }
0x12fd   :  { %4720 = vmatprep.subr.mxu1 %v4889_v37 }
0x12ff   :  { %4713 = vmatmul.mubr.msk.f32.vlgmr.msra.gmra.mxu1 %vm513_vm2, %v3197_v52  ;;  %v3362_v54 = vpop.permute.xlu1 %3361 }
0x1300   :  { %4721 = vmatpush3.xpose.msk.msra.mxu1 %vm513_vm2, %v3364_v53  ;;  %4722 = vmatprep.mubr.msk.f32.mxu1 %vm4890_vm1, %v4889_v37 }
0x1301   :  { %4730 = vmatprep.subr.mxu1 %v4889_v37 }
0x1303   :  { %4723 = vmatmul.mubr.msk.f32.vlgmr.msra.gmra.mxu1 %vm513_vm2, %v3362_v54  ;;  %v3527_v56 = vpop.permute.xlu1 %3526 }
0x1304   :  { %4731 = vmatpush3.xpose.msk.msra.mxu1 %vm513_vm2, %v3529_v55  ;;  %4732 = vmatprep.mubr.msk.f32.mxu1 %vm4890_vm1, %v4889_v37 }
0x1307   :  { %4733 = vmatmul.mubr.msk.f32.vlgmr.msra.gmra.mxu1 %vm513_vm2, %v3527_v56 }
0x13ab   :  { %v2431_v57 = vpop.f32.mrf.mxu0 }
0x13ac   :  { %v2432_v58 = vadd.f32 %v2431_v57, %v5325_v47  ;;  %v2596_v59 = vpop.f32.mrf.mxu1 }
0x13ad   :  { %v2597_v60 = vadd.f32 %v2596_v59, %v5325_v47  ;;  %v4664_v61 = vpop.f32.mrf.mxu0 }
0x13ae   :  { %v4674_v62 = vpop.f32.mrf.mxu1  ;;  %v2435_v1 = vsel %vm513_vm2, %v2432_v58, -inf }
0x13af   :  { %2436 = vmax.xlane.f32.xlu0 %v2435_v1  ;;  %v2600_v3 = vsel %vm513_vm2, %v2597_v60, -inf }
0x13b0   :  { %2601 = vmax.xlane.f32.xlu1 %v2600_v3 }
0x13b3   :  { %v2761_v6 = vpop.f32.mrf.mxu1 }
0x13b4   :  { %v5662_v7 = vadd.f32 %v2761_v6, %v5325_v47 }
0x13b5   :  { %v4684_v8 = vpop.f32.mrf.mxu1 }
0x13b6   :  { %v2765_v9 = vsel %vm513_vm2, %v5662_v7, -inf }
0x13b7   :  { %2766 = vmax.xlane.f32.xlu0 %v2765_v9  ;;  %v2926_v10 = vpop.f32.mrf.mxu1 }
0x13b8   :  { %v2927_v11 = vadd.f32 %v2926_v10, %v5325_v47 }
0x13b9   :  { %v4694_v12 = vpop.f32.mrf.mxu1 }
0x13ba   :  { %v2930_v24 = vsel %vm513_vm2, %v2927_v11, -inf }
0x13bb   :  { %2931 = vmax.xlane.f32.xlu0 %v2930_v24  ;;  %v3105_v13 = vpop.f32.mrf.mxu1 }
0x13bc   :  { %v3106_v26 = vadd.f32 %v3105_v13, %v5325_v47 }
0x13bd   :  { %v4704_v14 = vpop.f32.mrf.mxu1 }
0x13be   :  { %v3109_v15 = vsel %vm513_vm2, %v3106_v26, -inf }
0x13bf   :  { %3110 = vmax.xlane.f32.xlu0 %v3109_v15  ;;  %v3270_v16 = vpop.f32.mrf.mxu1 }
0x13c0   :  { %v3271_v17 = vadd.f32 %v3270_v16, %v5325_v47 }
0x13c1   :  { %v4714_v19 = vpop.f32.mrf.mxu1 }
0x13c2   :  { %v3274_v20 = vsel %vm513_vm2, %v3271_v17, -inf }
0x13c3   :  { %3275 = vmax.xlane.f32.xlu1 %v3274_v20  ;;  %v3435_v21 = vpop.f32.mrf.mxu1 }
0x13c4   :  { %v3436_v63 = vadd.f32 %v3435_v21, %v5325_v47 }
0x13c5   :  { %v4724_v22 = vpop.f32.mrf.mxu1 }
0x13c6   :  { %v3439_v23 = vsel %vm513_vm2, %v3436_v63, -inf }
0x13c7   :  { %3440 = vmax.xlane.f32.xlu0 %v3439_v23  ;;  %v3600_v42 = vpop.f32.mrf.mxu1 }
0x13c8   :  { %v3601_v27 = vadd.f32 %v3600_v42, %v5325_v47 }
0x13c9   :  { %v4734_v25 = vpop.f32.mrf.mxu1 }
0x13ca   :  { %v3604_v28 = vsel %vm513_vm2, %v3601_v27, -inf }
0x13d4   :  { %2446 = vrot.lane.b32.xlu1 %v5586_v39, %s4894_s13 }
0x13f8   :  { %3605 = vmax.xlane.f32.xlu1 %v3604_v28 }
0x1409   :  { %2776 = vrot.lane.b32.xlu1 %v5586_v39, %s4901_s20 }
0x140d   :  { %2941 = vrot.lane.b32.xlu1 %v5586_v39, %s4902_s1 }
0x1411   :  { %3120 = vrot.lane.b32.xlu1 %v5600_v41, %s4894_s13 }
0x1438   :  { %v2437_v29 = vpop.xlane.xlu0 %2436 }
0x1439   :  { %v2438_v30 = vsub.f32 %v2432_v58, %v2437_v29  ;;  %v2602_v31 = vpop.xlane.xlu1 %2601 }
0x143a   :  { %v2603_v32 = vsub.f32 %v2597_v60, %v2602_v31 }
0x143b   :  { %v2439_v5 = vmul.f32 1.442695, %v2438_v30 }
0x143c   :  { %v2604_v33 = vmul.f32 1.442695, %v2603_v32 }
0x143d   :  { %4843 = vpow2.f32 %v2439_v5 }
0x143e   :  { %4845 = vpow2.f32 %v2604_v33 }
0x1440   :  { %v2767_v47 = vpop.xlane.xlu0 %2766 }
0x1441   :  { %v2768_v49 = vsub.f32 %v5662_v7, %v2767_v47 }
0x1443   :  { %v2769_v51 = vmul.f32 1.442695, %v2768_v49  ;;  %v4249_v49 = vld [vmem:[%s5876_s2 + $0x70] sm:$0xff] }
0x1444   :  { %v2932_v34 = vpop.xlane.xlu0 %2931 }
0x1445   :  { %v2933_v0 = vsub.f32 %v2927_v11, %v2932_v34 }
0x1447   :  { %v2934_v35 = vmul.f32 1.442695, %v2933_v0 }
0x1448   :  { %v3111_v50 = vpop.xlane.xlu0 %3110 }
0x1449   :  { %4847 = vpow2.f32 %v2934_v35  ;;  %v3112_v52 = vsub.f32 %v3106_v26, %v3111_v50 }
0x144a   :  { %v4844_v36 = vpop.eup %4843  ;;  %4849 = vpow2.f32 %v2769_v51 }
0x144b   :  { %v5684_v38 = vpop.eup %4845  ;;  %v2441_v43 = vsel %vm513_vm2, %v4844_v36, 0.0  ;;  %v3113_v54 = vmul.f32 1.442695, %v3112_v52  ;;  %v4248_v52 = vld [vmem:[%s5876_s2 + $0x68] sm:$0xff] }
0x144c   :  { %v3276_v40 = vpop.xlane.xlu1 %3275  ;;  %2442 = vadd.xlane.f32.xlu0 %v2441_v43  ;;  %v2606_v45 = vsel %vm513_vm2, %v5684_v38, 0.0 }
0x144d   :  { %2607 = vadd.xlane.f32.xlu1 %v2606_v45  ;;  %4851 = vpow2.f32 %v3113_v54  ;;  %v3277_v56 = vsub.f32 %v3271_v17, %v3276_v40 }
0x144f   :  { %v3278_v58 = vmul.f32 1.442695, %v3277_v56 }
0x1450   :  { %v2447_v18 = vpop.permute.xlu1 %2446  ;;  %v3441_v53 = vpop.xlane.xlu0 %3440 }
0x1451   :  { %4666 = vmatpush3.msra.mxu0 %v2447_v18  ;;  %v3442_v55 = vsub.f32 %v3436_v63, %v3441_v53  ;;  %v4247_v53 = vld [vmem:[%s5876_s2 + $0x60] sm:$0xff] }
0x1452   :  { %4675 = vmatprep.subr.mxu0 %v4889_v37 }
0x1453   :  { %v3443_v57 = vmul.f32 1.442695, %v3442_v55 }
0x1455   :  { %4853 = vpow2.f32 %v3443_v57 }
0x1456   :  { %v5690_v46 = vpop.eup %4847  ;;  %4855 = vpow2.f32 %v3278_v58 }
0x1457   :  { %v2936_v48 = vsel %vm513_vm2, %v5690_v46, 0.0  ;;  %v4850_v59 = vpop.eup %4849 }
0x1458   :  { %2937 = vadd.xlane.f32.xlu1 %v2936_v48  ;;  %v4250_v48 = vld [vmem:[%s5876_s2 + $0x78] sm:$0xff] }
0x1459   :  { %4740 = vmatprep.subr.mxu1 %v4250_v48 }
0x145a   :  { %v5700_v60 = vpop.eup %4851  ;;  %4741 = vmatpush3.msra.mxu1 %v4250_v48 }
0x145b   :  { %v3115_v3 = vsel %vm513_vm2, %v5700_v60, 0.0  ;;  %4742 = vmatprep.subr.mxu1 %v4249_v49 }
0x145c   :  { %4743 = vmatpush3.msra.mxu1 %v4249_v49 }
0x145d   :  { %4744 = vmatprep.subr.mxu1 %v4248_v52 }
0x145e   :  { %4745 = vmatpush3.msra.mxu1 %v4248_v52  ;;  %v4258_v52 = vld [vmem:[%s5878_s3 + $0x78] sm:$0xff] }
0x145f   :  { %4746 = vmatprep.subr.mxu1 %v4247_v53 }
0x1460   :  { %4747 = vmatpush3.msra.mxu1 %v4247_v53  ;;  %v4257_v53 = vld [vmem:[%s5878_s3 + $0x70] sm:$0xff] }
0x1461   :  { %4762 = vmatprep.subr.mxu1 %v4258_v52 }
0x1462   :  { %2611 = vrot.lane.b32.xlu0 %v5586_v39, %s4896_s15  ;;  %v2771_v39 = vsel %vm513_vm2, %v4850_v59, 0.0  ;;  %v5704_v6 = vpop.eup %4853 }
0x1463   :  { %v3445_v7 = vsel %vm513_vm2, %v5704_v6, 0.0  ;;  %v4856_v8 = vpop.eup %4855 }
0x1464   :  { %v3280_v9 = vsel %vm513_vm2, %v4856_v8, 0.0 }
0x1469   :  { %3285 = vrot.lane.b32.xlu1 %v5600_v41, %s4896_s15 }
0x1481   :  { %v3606_v61 = vpop.xlane.xlu1 %3605  ;;  %2772 = vadd.xlane.f32.xlu0 %v2771_v39 }
0x1482   :  { %v3607_v62 = vsub.f32 %v3601_v27, %v3606_v61 }
0x1484   :  { %v3608_v1 = vmul.f32 1.442695, %v3607_v62 }
0x1485   :  { %3116 = vadd.xlane.f32.xlu0 %v3115_v3  ;;  %v2777_v12 = vpop.permute.xlu1 %2776 }
0x1486   :  { %4857 = vpow2.f32 %v3608_v1 }
0x1489   :  { %3446 = vadd.xlane.f32.xlu0 %v3445_v7  ;;  %v2942_v24 = vpop.permute.xlu1 %2941 }
0x148d   :  { %3281 = vadd.xlane.f32.xlu1 %v3280_v9  ;;  %v3121_v13 = vpop.permute.xlu1 %3120 }
0x1493   :  { %v5709_v10 = vpop.eup %4857 }
0x1494   :  { %v3610_v11 = vsel %vm513_vm2, %v5709_v10, 0.0 }
0x1495   :  { %3611 = vadd.xlane.f32.xlu0 %v3610_v11 }
0x149e   :  { %3615 = vrot.lane.b32.xlu1 %v5600_v41, %s4902_s1 }
0x14ab   :  { %3450 = vrot.lane.b32.xlu0 %v5600_v41, %s4901_s20 }
0x14d5   :  { %v2443_v26 = vpop.xlane.xlu0 %2442 }
0x14d6   :  { %4859 = vrcp.f32 %v2443_v26  ;;  %v2608_v14 = vpop.xlane.xlu1 %2607  ;;  %v4290_v26 = vld [vmem:[%s5877_s4 + $0xd] ss:$0 sm:$0xff] }
0x14d7   :  { %4861 = vrcp.f32 %v2608_v14 }
0x14d9   :  { %v2612_v19 = vpop.permute.xlu0 %2611 }
0x14e1   :  { %v2938_v20 = vpop.xlane.xlu1 %2937 }
0x14e3   :  { %v4860_v15 = vpop.eup %4859 }
0x14e4   :  { %v2445_v16 = vmul.f32 %v4860_v15, %v4844_v36  ;;  %v4862_v17 = vpop.eup %4861 }
0x14e5   :  { %v2610_v41 = vmul.f32 %v4862_v17, %v5684_v38  ;;  %v3286_v22 = vpop.permute.xlu1 %3285 }
0x14e6   :  { %4668 = vmatmul.mubr.msk.f32.vlgmr.msra.gmra.mxu0 %vm513_vm2, %v2445_v16 }
0x14e7   :  { %4676 = vmatpush3.msra.mxu0 %v2612_v19  ;;  %4677 = vmatprep.mubr.msk.f32.mxu0 %vm4890_vm1, %v4889_v37 }
0x14e8   :  { %4685 = vmatprep.subr.mxu0 %v4889_v37 }
0x14ea   :  { %4678 = vmatmul.mubr.msk.f32.vlgmr.msra.gmra.mxu0 %vm513_vm2, %v2610_v41 }
0x14eb   :  { %4686 = vmatpush3.msra.mxu0 %v2777_v12  ;;  %4687 = vmatprep.mubr.msk.f32.mxu0 %vm4890_vm1, %v4889_v37 }
0x14ec   :  { %4695 = vmatprep.subr.mxu0 %v4889_v37 }
0x150a   :  { %v2773_v21 = vpop.xlane.xlu0 %2772 }
0x150b   :  { %4863 = vrcp.f32 %v2773_v21 }
0x150c   :  { %4865 = vrcp.f32 %v2938_v20 }
0x150e   :  { %v3117_v63 = vpop.xlane.xlu0 %3116 }
0x150f   :  { %4867 = vrcp.f32 %v3117_v63 }
0x1512   :  { %v3447_v23 = vpop.xlane.xlu0 %3446 }
0x1516   :  { %v3282_v42 = vpop.xlane.xlu1 %3281 }
0x1517   :  { %4869 = vrcp.f32 %v3282_v42 }
0x1518   :  { %v4864_v25 = vpop.eup %4863  ;;  %4871 = vrcp.f32 %v3447_v23 }
0x1519   :  { %v2775_v27 = vmul.f32 %v4864_v25, %v4850_v59  ;;  %v4866_v28 = vpop.eup %4865 }
0x151a   :  { %v2940_v29 = vmul.f32 %v4866_v28, %v5690_v46  ;;  %v3616_v35 = vpop.permute.xlu1 %3615 }
0x151b   :  { %4688 = vmatmul.mubr.msk.f32.vlgmr.msra.gmra.mxu0 %vm513_vm2, %v2775_v27 }
0x151c   :  { %4696 = vmatpush3.msra.mxu0 %v2942_v24  ;;  %4697 = vmatprep.mubr.msk.f32.mxu0 %vm4890_vm1, %v4889_v37  ;;  %v4868_v30 = vpop.eup %4867 }
0x151d   :  { %4705 = vmatprep.subr.mxu0 %v4889_v37  ;;  %v3119_v32 = vmul.f32 %v4868_v30, %v5700_v60  ;;  %v4254_v30 = vld [vmem:[%s5878_s3 + $0x58] sm:$0xff] }
0x151e   :  { %v3612_v31 = vpop.xlane.xlu0 %3611 }
0x151f   :  { %4873 = vrcp.f32 %v3612_v31  ;;  %4698 = vmatmul.mubr.msk.f32.vlgmr.msra.gmra.mxu0 %vm513_vm2, %v2940_v29  ;;  %v4253_v31 = vld [vmem:[%s5878_s3 + $0x50] sm:$0xff] }
0x1520   :  { %4706 = vmatpush3.msra.mxu0 %v3121_v13  ;;  %4707 = vmatprep.mubr.msk.f32.mxu0 %vm4890_vm1, %v4889_v37 }
0x1521   :  { %4715 = vmatprep.subr.mxu0 %v4889_v37 }
0x1522   :  { %v3451_v34 = vpop.permute.xlu0 %3450 }
0x1523   :  { %4708 = vmatmul.mubr.msk.f32.vlgmr.msra.gmra.mxu0 %vm513_vm2, %v3119_v32  ;;  %v4252_v32 = vld [vmem:[%s5878_s3 + $0x48] sm:$0xff] }
0x1524   :  { %v4870_v5 = vpop.eup %4869  ;;  %4716 = vmatpush3.msra.mxu0 %v3286_v22  ;;  %4717 = vmatprep.mubr.msk.f32.mxu0 %vm4890_vm1, %v4889_v37 }
0x1525   :  { %4725 = vmatprep.subr.mxu0 %v4889_v37  ;;  %v3284_v33 = vmul.f32 %v4870_v5, %v4856_v8  ;;  %v4872_v47 = vpop.eup %4871  ;;  %v4251_v5 = vld [vmem:[%s5878_s3 + $0x40] sm:$0xff] }
0x1526   :  { %v3449_v0 = vmul.f32 %v4872_v47, %v5704_v6 }
0x1527   :  { %4718 = vmatmul.mubr.msk.f32.vlgmr.msra.gmra.mxu0 %vm513_vm2, %v3284_v33 }
0x1528   :  { %4726 = vmatpush3.msra.mxu0 %v3451_v34  ;;  %4727 = vmatprep.mubr.msk.f32.mxu0 %vm4890_vm1, %v4889_v37 }
0x1529   :  { %4735 = vmatprep.subr.mxu0 %v4889_v37 }
0x152b   :  { %4728 = vmatmul.mubr.msk.f32.vlgmr.msra.gmra.mxu0 %vm513_vm2, %v3449_v0 }
0x152c   :  { %v4874_v36 = vpop.eup %4873  ;;  %4736 = vmatpush3.msra.mxu0 %v3616_v35  ;;  %4737 = vmatprep.mubr.msk.f32.mxu0 %vm4890_vm1, %v4889_v37 }
0x152d   :  { %v3614_v38 = vmul.f32 %v4874_v36, %v5709_v10  ;;  %4751 = vmatprep.subr.mxu0 %v4254_v30 }
0x152f   :  { %4738 = vmatmul.mubr.msk.f32.vlgmr.msra.gmra.mxu0 %vm513_vm2, %v3614_v38 }
0x1530   :  { %4752 = vmatpush3.msra.mxu0 %v4254_v30 }
0x1531   :  { %4753 = vmatprep.subr.mxu0 %v4253_v31 }
0x1532   :  { %4754 = vmatpush3.msra.mxu0 %v4253_v31 }
0x1533   :  { %4755 = vmatprep.subr.mxu0 %v4252_v32 }
0x1534   :  { %4756 = vmatpush3.msra.mxu0 %v4252_v32 }
0x1535   :  { %4757 = vmatprep.subr.mxu0 %v4251_v5 }
0x1536   :  { %4758 = vmatpush3.msra.mxu0 %v4251_v5 }
0x15a6   :  { %v2518_v43 = vpop.f32.mrf.mxu0 }
0x15a8   :  { %v4669_v40 = vpop.f32.mrf.mxu0 }
0x15aa   :  { %v2683_v45 = vpop.f32.mrf.mxu0 }
0x15ab   :  { %3018 = vrot.lane.b32.xlu0 %v2683_v45, %s4904_s0  ;;  %v4292_v45 = vld [vmem:[%s5877_s4 + $0xb] ss:$0 sm:$0xff] }
0x15ac   :  { %v4679_v18 = vpop.f32.mrf.mxu0 }
0x15db   :  { %v2848_v46 = vpop.f32.mrf.mxu0 }
0x15dc   :  { %3022 = vrot.lane.b32.xlu1 %v2848_v46, %s4903_s21 }
0x15dd   :  { %v4689_v50 = vpop.f32.mrf.mxu0 }
0x15df   :  { %v3013_v51 = vpop.f32.mrf.mxu0 }
0x15e0   :  { %3026 = vrot.lane.b32.xlu1 %v3013_v51, %s4905_s26 }
0x15e1   :  { %v4699_v54 = vpop.f32.mrf.mxu0 }
0x15e2   :  { %v4256_v54 = vld [vmem:[%s5878_s3 + $0x68] sm:$0xff] }
0x15e3   :  { %v3192_v55 = vpop.f32.mrf.mxu0 }
0x15e5   :  { %v4709_v56 = vpop.f32.mrf.mxu0 }
0x15e7   :  { %v3357_v57 = vpop.f32.mrf.mxu0 }
0x15e8   :  { %3692 = vrot.lane.b32.xlu0 %v3357_v57, %s4904_s0 }
0x15e9   :  { %v4719_v58 = vpop.f32.mrf.mxu0 }
0x15eb   :  { %v3522_v59 = vpop.f32.mrf.mxu0 }
0x15ec   :  { %3696 = vrot.lane.b32.xlu0 %v3522_v59, %s4903_s21 }
0x15ed   :  { %v4729_v39 = vpop.f32.mrf.mxu0 }
0x15ef   :  { %v3687_v60 = vpop.f32.mrf.mxu0 }
0x15f0   :  { %3700 = vrot.lane.b32.xlu1 %v3687_v60, %s4905_s26 }
0x15f1   :  { %v4739_v61 = vpop.f32.mrf.mxu0 }
0x161d   :  { %v3019_v62 = vpop.permute.xlu0 %3018 }
0x161e   :  { %v3029_v3 = vsel %vm513_vm2, %v2518_v43, %v3019_v62  ;;  %v4291_v43 = vld [vmem:[%s5877_s4 + $0xa] ss:$0 sm:$0xff] }
0x164e   :  { %v3023_v1 = vpop.permute.xlu1 %3022 }
0x164f   :  { %v3030_v6 = vsel %vm1183_vm4, %v3029_v3, %v3023_v1 }
0x1652   :  { %v3027_v7 = vpop.permute.xlu1 %3026 }
0x1653   :  { %v3031_v8 = vsel %vm1185_vm5, %v3030_v6, %v3027_v7 }
0x1654   :  { %4748 = vmatprep.mubr.msk.f32.mxu1 %vm385_vm0, %v3031_v8 }
0x165a   :  { %v3693_v9 = vpop.permute.xlu0 %3692 }
0x165b   :  { %v3703_v11 = vsel %vm513_vm2, %v3192_v55, %v3693_v9  ;;  %v4293_v55 = vld [vmem:[%s5877_s4 + $0xe] ss:$0 sm:$0xff] }
0x165e   :  { %v3697_v10 = vpop.permute.xlu0 %3696 }
0x165f   :  { %v3704_v12 = vsel %vm1183_vm4, %v3703_v11, %v3697_v10 }
0x1662   :  { %v3701_v24 = vpop.permute.xlu1 %3700 }
0x1663   :  { %v3705_v13 = vsel %vm1185_vm5, %v3704_v12, %v3701_v24 }
0x1664   :  { %4749 = vmatmul.mubr.msk.f32.vlgmr.msra.gmra.mxu1 %vm385_vm0, %v3705_v13 }
0x1665   :  { %4763 = vmatpush3.xpose.msra.mxu1 %v4258_v52 }
0x1666   :  { %4764 = vmatprep.subr.mxu1 %v4257_v53 }
0x1669   :  { %4765 = vmatpush3.xpose.msra.mxu1 %v4257_v53 }
0x166a   :  { %4766 = vmatprep.subr.mxu1 %v4256_v54 }
0x166d   :  { %4767 = vmatpush3.xpose.msra.mxu1 %v4256_v54 }
0x1724   :  { %v4750_v14 = vpop.f32.mrf.mxu1 }
0x1725   :  { %v3788_v15 = vadd.f32 %v4750_v14, %v5547_v2 }
0x1726   :  { %v3778_v16 = vpop.f32.mrf.mxu1 }
0x1727   :  { %v5780_v17 = vadd.f32 %v4290_v26, %v3788_v15  ;;  %v3787_v19 = vadd.f32 %v3778_v16, %v5550_v4 }
0x1729   :  { %v5783_v41 = vadd.f32 %v4290_v26, %v3787_v19  ;;  %v3798_v20 = vsel %vm385_vm0, %v5780_v17, 0.0 }
0x172a   :  { %3799 = vadd.xlane.f32.xlu1 %v3798_v20 }
0x172b   :  { %v3795_v21 = vsel %vm385_vm0, %v5783_v41, 0.0 }
0x172c   :  { %3796 = vadd.xlane.f32.xlu0 %v3795_v21 }
0x17b3   :  { %v3800_v63 = vpop.xlane.xlu1 %3799 }
0x17b4   :  { %v3802_v22 = vmul.f32 0.03125, %v3800_v63 }
0x17b5   :  { %v3797_v23 = vpop.xlane.xlu0 %3796 }
0x17b6   :  { %v3801_v42 = vmul.f32 0.03125, %v3797_v23  ;;  %v3804_v2 = vsub.f32 %v5780_v17, %v3802_v22 }
0x17b8   :  { %v3803_v25 = vsub.f32 %v5783_v41, %v3801_v42  ;;  %v3806_v28 = vmul.f32 %v3804_v2, %v3804_v2 }
0x17ba   :  { %v3805_v27 = vmul.f32 %v3803_v25, %v3803_v25  ;;  %v3810_v29 = vsel %vm385_vm0, %v3806_v28, 0.0 }
0x17bc   :  { %v3807_v4 = vsel %vm385_vm0, %v3805_v27, 0.0 }
0x17bd   :  { %3808 = vadd.xlane.f32.xlu0 %v3807_v4 }
0x17c1   :  { %3811 = vadd.xlane.f32.xlu0 %v3810_v29 }
0x1846   :  { %v3809_v33 = vpop.xlane.xlu0 %3808 }
0x1847   :  { %v3813_v47 = vmul.f32 0.03125, %v3809_v33 }
0x1849   :  { %v3815_v34 = vadd.f32 1e-06, %v3813_v47 }
0x184a   :  { %v3812_v0 = vpop.xlane.xlu0 %3811 }
0x184b   :  { %4875 = vrsqrt.f32 %v3815_v34  ;;  %v3814_v35 = vmul.f32 0.03125, %v3812_v0 }
0x184d   :  { %v3816_v36 = vadd.f32 1e-06, %v3814_v35 }
0x184f   :  { %4877 = vrsqrt.f32 %v3816_v36 }
0x1858   :  { %v4876_v38 = vpop.eup %4875 }
0x1859   :  { %v3819_v40 = vmul.f32 %v4876_v38, %v3803_v25 }
0x185b   :  { %v3825_v18 = vmul.f32 %v4291_v43, %v3819_v40 }
0x185c   :  { %v4878_v46 = vpop.eup %4877 }
0x185d   :  { %v3820_v48 = vmul.f32 %v4878_v46, %v3804_v2  ;;  %v3831_v49 = vadd.f32 %v4292_v45, %v3825_v18 }
0x185f   :  { %v3826_v50 = vmul.f32 %v4291_v43, %v3820_v48  ;;  %4759 = vmatprep.mubr.msk.f32.mxu0 %vm385_vm0, %v3831_v49 }
0x1861   :  { %v3832_v51 = vadd.f32 %v4292_v45, %v3826_v50  ;;  %v4296_v50 = vld [vmem:[%s5877_s4 + $0xf] ss:$0 sm:$0xff] }
0x1863   :  { %4760 = vmatmul.mubr.msk.f32.vlgmr.msra.gmra.mxu0 %vm385_vm0, %v3832_v51 }
0x1864   :  { %4164 = vmatprep.mubr.f32.mxu0 %v4889_v37  ;;  %v4255_v37 = vld [vmem:[%s5878_s3 + $0x60] sm:$0xff] }
0x1865   :  { %4768 = vmatprep.subr.mxu1 %v4255_v37 }
0x1866   :  { %4769 = vmatpush3.xpose.msra.mxu1 %v4255_v37 }
0x1923   :  { %v4761_v56 = vpop.f32.mrf.mxu0 }
0x1924   :  { %v3915_v57 = vadd.f32 %v4761_v56, %v4293_v55 }
0x1925   :  { %v3909_v58 = vpop.f32.mrf.mxu0 }
0x1926   :  { %v3921_v59 = vmul.f32 0.70710677, %v3915_v57  ;;  %v3910_v39 = vadd.f32 %v4293_v55, %v3909_v58  ;;  %v3919_v46 = vmul.f32 0.5, %v3915_v57 }
0x1928   :  { %v3923_v60 = vand.u32 2147483647, %v3921_v59  ;;  %v3920_v61 = vmul.f32 0.70710677, %v3910_v39  ;;  %vm3963_vm8 = vcmp.ge.f32.partialorder %v3921_v59, 0.0  ;;  %v3918_v45 = vmul.f32 0.5, %v3910_v39 }
0x192a   :  { %v3925_v62 = vmul.f32 0.3275911, %v3923_v60  ;;  %v3922_v1 = vand.u32 2147483647, %v3920_v61  ;;  %v3951_v8 = vsub.f32 0.0, %v3923_v60  ;;  %vm3962_vm9 = vcmp.ge.f32.partialorder %v3920_v61, 0.0 }
0x192c   :  { %v3927_v3 = vadd.f32 1.0, %v3925_v62  ;;  %v3924_v6 = vmul.f32 0.3275911, %v3922_v1  ;;  %v3950_v9 = vsub.f32 0.0, %v3922_v1  ;;  %v3953_v10 = vmul.f32 %v3951_v8, %v3923_v60  ;;  %v4077_v8 = vld [vmem:[%s5875_s5 + $0x8] sm:$0xff] }
0x192e   :  { %4879 = vrcp.f32 %v3927_v3  ;;  %v3926_v7 = vadd.f32 1.0, %v3924_v6  ;;  %v3952_v12 = vmul.f32 %v3950_v9, %v3922_v1  ;;  %v3956_v13 = vmul.f32 1.442695, %v3953_v10  ;;  %v4083_v1 = vld [vmem:[%s5875_s5 + $0x38] sm:$0xff]  ;;  %v4080_v3 = vld [vmem:[%s5875_s5 + $0x20] sm:$0xff] }
0x192f   :  { %4124 = vmatprep.subr.mxu0 %v4083_v1  ;;  %v4079_v6 = vld [vmem:[%s5875_s5 + $0x18] sm:$0xff]  ;;  %v4076_v9 = vld [vmem:[%s5875_s5] sm:$0xff] }
0x1930   :  { %4881 = vrcp.f32 %v3926_v7  ;;  %v3954_v15 = vmul.f32 1.442695, %v3952_v12  ;;  %v4078_v7 = vld [vmem:[%s5875_s5 + $0x10] sm:$0xff] }
0x1931   :  { %4883 = vpow2.f32 %v3956_v13  ;;  %v4058_v13 = vld [vmem:[%s5875_s5 + $0x41] ss:$0 sm:$0xff] }
0x1932   :  { %4885 = vpow2.f32 %v3954_v15 }
0x193b   :  { %v4880_v11 = vpop.eup %4879 }
0x193c   :  { %v3933_v24 = vmul.f32 1.0614054, %v4880_v11 }
0x193d   :  { %v4882_v26 = vpop.eup %4881 }
0x193e   :  { %v3935_v14 = vadd.f32 -1.4531521, %v3933_v24  ;;  %v3932_v16 = vmul.f32 1.0614054, %v4882_v26  ;;  %v4884_v30 = vpop.eup %4883 }
0x193f   :  { %v4886_v33 = vpop.eup %4885 }
0x1940   :  { %v3937_v19 = vmul.f32 %v4880_v11, %v3935_v14  ;;  %v3934_v20 = vadd.f32 -1.4531521, %v3932_v16  ;;  %v4059_v14 = vld [vmem:[%s5875_s5 + $0x42] ss:$0 sm:$0xff] }
0x1942   :  { %v3939_v21 = vadd.f32 1.4214138, %v3937_v19  ;;  %v3936_v63 = vmul.f32 %v4882_v26, %v3934_v20  ;;  %v4088_v19 = vshrl.u32 %v357_v44, 7 }
0x1944   :  { %v3941_v22 = vmul.f32 %v4880_v11, %v3939_v21  ;;  %v3938_v23 = vadd.f32 1.4214138, %v3936_v63  ;;  %v4089_v20 = vsub.s32 0, %v4088_v19  ;;  %v4093_v21 = vsub.s32 1, %v4088_v19 }
0x1945   :  { %v4906_v63 = vmov 1983009808  }
0x1946   :  { %v3943_v42 = vadd.f32 -0.28449672, %v3941_v22  ;;  %v3940_v2 = vmul.f32 %v4882_v26, %v3938_v23  ;;  %v4177_v22 = vunpack.c.l.s4 %v4906_v63  ;;  %v4297_v23 = vld [vmem:[%s5875_s5 + $0x40] ss:$8 sm:$0x3] }
0x1948   :  { %v3945_v25 = vmul.f32 %v4880_v11, %v3943_v42  ;;  %v3942_v27 = vadd.f32 -0.28449672, %v3940_v2  ;;  %v4090_v42 = vrot.slane %v4297_v23, %v4089_v20  ;;  %v4094_v2 = vrot.slane %v4297_v23, %v4093_v21 }
0x194a   :  { %v3947_v4 = vadd.f32 0.2548296, %v3945_v25  ;;  %v3944_v28 = vmul.f32 %v4882_v26, %v3942_v27  ;;  %v4178_v25 = vunpack.c.0.s8 %v4177_v22 }
0x194c   :  { %v3949_v29 = vmul.f32 %v4880_v11, %v3947_v4  ;;  %v3946_v31 = vadd.f32 0.2548296, %v3944_v28 }
0x194e   :  { %v3959_v32 = vmul.f32 %v4884_v30, %v3949_v29  ;;  %v3948_v5 = vmul.f32 %v4882_v26, %v3946_v31  ;;  %v4181_v30 = vsub.s32 %v4178_v25, %v4088_v19 }
0x1950   :  { %v3961_v47 = vsub.f32 1.0, %v3959_v32  ;;  %v3958_v34 = vmul.f32 %v4886_v33, %v3948_v5 }
0x1952   :  { %v3965_v0 = vsub.f32 0.0, %v3961_v47  ;;  %v3960_v35 = vsub.f32 1.0, %v3958_v34 }
0x1954   :  { %v3967_v36 = vsel %vm3963_vm8, %v3961_v47, %v3965_v0  ;;  %v3964_v38 = vsub.f32 0.0, %v3960_v35 }
0x1955   :  { %v3969_v43 = vadd.f32 1.0, %v3967_v36 }
0x1956   :  { %v3966_v40 = vsel %vm3962_vm9, %v3960_v35, %v3964_v38 }
0x1957   :  { %v3968_v18 = vadd.f32 1.0, %v3966_v40  ;;  %v3971_v49 = vmul.f32 %v3969_v43, %v3919_v46 }
0x1959   :  { %v3970_v48 = vmul.f32 %v3968_v18, %v3918_v45 }
0x195b   :  { %4770 = vmatprep.mubr.f32.mxu1 %v3970_v48 }
0x195c   :  { %4771 = vmatmul.mubr.f32.vlgmr.msra.gmra.mxu1 %v3971_v49 }
0x1a1c   :  { %v4772_v51 = vpop.f32.mrf.mxu1 }
0x1a1d   :  { %v4048_v52 = vadd.f32 %v4772_v51, %v4296_v50 }
0x1a1e   :  { %v4042_v53 = vpop.f32.mrf.mxu1 }
0x1a1f   :  { %v4052_v54 = vadd.f32 %v4048_v52, %v5780_v17  ;;  %v4043_v37 = vadd.f32 %v4296_v50, %v4042_v53  ;;  %v4082_v17 = vld [vmem:[%s5875_s5 + $0x30] sm:$0xff] }
0x1a20   :  { %4125 = vmatpush1.msra.mxu0 %v4082_v17 }
0x1a21   :  { %v4054_v55 = vrot.slane %v4052_v54, 7  ;;  %v4051_v56 = vadd.f32 %v4043_v37, %v5783_v41  ;;  %v4081_v41 = vld [vmem:[%s5875_s5 + $0x28] sm:$0xff] }
0x1a22   :  { %4126 = vmatprep.subr.mxu0 %v4081_v41 }
0x1a23   :  { %v4057_v57 = vsel %vm4056_vm10, %v4051_v56, %v4054_v55  ;;  %4127 = vmatpush1.msra.mxu0 %v4080_v3 }
0x1a24   :  { %v4061_v58 = vsel %vm4060_vm11, %v4057_v57, 0.0  ;;  %4128 = vmatprep.subr.mxu0 %v4079_v6 }
0x1a25   :  { %4062 = vadd.xlane.f32.xlu0 %v4061_v58  ;;  %4129 = vmatpush1.msra.mxu0 %v4078_v7 }
0x1a26   :  { %4130 = vmatprep.subr.mxu0 %v4077_v8 }
0x1a27   :  { %4131 = vmatpush1.msra.mxu0 %v4076_v9 }
0x1aae   :  { %v4063_v59 = vpop.xlane.xlu0 %4062 }
0x1aaf   :  { %v4064_v39 = vmul.f32 0.03125, %v4063_v59 }
0x1ab1   :  { %v4065_v60 = vsub.f32 %v4057_v57, %v4064_v39 }
0x1ab3   :  { %v4066_v61 = vmul.f32 %v4065_v60, %v4065_v60 }
0x1ab5   :  { %v4067_v62 = vsel %vm4060_vm11, %v4066_v61, 0.0 }
0x1ab6   :  { %4068 = vadd.xlane.f32.xlu1 %v4067_v62 }
0x1b3f   :  { %v4069_v10 = vpop.xlane.xlu1 %4068 }
0x1b40   :  { %v4070_v11 = vmul.f32 0.03125, %v4069_v10 }
0x1b42   :  { %v4071_v12 = vadd.f32 1e-06, %v4070_v11 }
0x1b44   :  { %4887 = vrsqrt.f32 %v4071_v12 }
0x1b51   :  { %v4888_v24 = vpop.eup %4887 }
0x1b52   :  { %v4073_v26 = vmul.f32 %v4888_v24, %v4065_v60 }
0x1b54   :  { %v4074_v15 = vmul.f32 %v4073_v26, %v4058_v13 }
0x1b56   :  { %v4075_v16 = vadd.f32 %v4074_v15, %v4059_v14 }
0x1b58   :  { %4298 = vmatmul.mubr.msk.f32.vlgmr.msra.gmra.mxu0 %vm385_vm0, %v4075_v16  ;;  %v4171_v31 = vsel %vm385_vm0, %v4075_v16, 0.0 }
0x1b59   :  { %v4189_v5 = vrot.slane %v4171_v31, %v4181_v30 }
0x1c18   :  { %v4166_v27 = vpop.f32.mrf.mxu0 }
0x1c19   :  { %v4167_v28 = vadd.f32 %v4166_v27, %v4090_v42 }
0x1c1a   :  { %v4168_v4 = vpop.f32.mrf.mxu0 }
0x1c1b   :  { %v4169_v29 = vadd.f32 %v4168_v4, %v4094_v2 }
0x1c1d   :  { %v4175_v32 = vcombine.low %v4167_v28, %v4169_v29 }
0x1c1f   :  { %v4182_v44 = vrot.slane %v4175_v32, %v4181_v30 }
0x1c21   :  { %v4190_v33 = vcombine.low %v4182_v44, %v4189_v5 }
0x1c23   :  { %4192 = vst [vmem:[%s5879_s6] sm:$0x3f] %v4190_v33 }

</bundles_post_ra>
